<compile_context>
chip_gen: v7x
topology: tpu7x:2x2x1
jax: 0.10.0
libtpu: 0.0.40
codegen_flags: <defaults>
</compile_context>

<pallas_src>
import functools

import jax
import jax.numpy as jnp
from jax.experimental import pallas as pl
from jax.experimental.pallas import tpu as pltpu

EPS = 1e-5
_TM = 512                       # row tile for the pointwise kernels


def _round_up(x, m):
    return ((x + m - 1) // m) * m


def _vmem_limit_bytes():
    """Generation-aware scoped-VMEM cap (~70% of physical, clamped [32, 96] MiB)."""
    try:
        cap = int(pltpu.get_tpu_info().vmem_capacity_bytes)
        return int(max(32 << 20, min(int(cap * 0.7), 96 << 20)))
    except Exception:
        return 32 << 20


# ---------------------------------------------------------------------------
# Kernel 1: depthwise conv on one (image, channel-tile) + BN1 moments.
# ---------------------------------------------------------------------------
def _dw_conv_stats_kernel(x_ref, w_ref, h_ref, s_ref, q_ref, *, kh, kw, stride,
                          h_out, w_out):
    x = x_ref[...]                        # (1, Hp, Wp, TC) f32 padded input slab
    w = w_ref[...]                        # (KH, KW, TC)    depthwise filter
    acc = jnp.zeros(h_ref.shape, jnp.float32)
    # TODO(synk): for stride > 1, pre-split x into stride phases (space-to-depth)
    # in the wrapper so these tap reads stay sublane-dense (pure VALU, no XLU).
    for i in range(kh):
        for j in range(kw):
            patch = x[:,
                      i:i + (h_out - 1) * stride + 1:stride,
                      j:j + (w_out - 1) * stride + 1:stride,
                      :]
            acc = acc + patch * w[i, j][None, None, None, :]

    # per-(image, channel-tile) moments from the f32 accumulator (before bf16 cast)
    s_ref[...] = jnp.sum(acc, axis=(0, 1, 2), keepdims=True).reshape(s_ref.shape)
    q_ref[...] = jnp.sum(acc * acc, axis=(0, 1, 2), keepdims=True).reshape(q_ref.shape)

    h_ref[...] = acc.astype(h_ref.dtype)  # bf16 intermediate -> halves HBM traffic


# ---------------------------------------------------------------------------
# Kernel 2: BN1(affine)+ReLU + 1x1 conv; write z once + per-tile BN2 moments.
# ---------------------------------------------------------------------------
def _pw_stats_kernel(h_ref, a1_ref, b1_ref, w_ref, z_ref, s_ref, q_ref, *,
                     tm, m_true):
    t = pl.program_id(0)
    y1 = jnp.maximum(h_ref[...].astype(jnp.float32) * a1_ref[...] + b1_ref[...],
                     0.0)                                             # (TM, Cin)
    z = jnp.dot(y1.astype(w_ref.dtype), w_ref[...],
                preferred_element_type=jnp.float32)                   # (TM, Cout)
    z_ref[...] = z.astype(z_ref.dtype)    # pre-BN2 activations, written once (bf16)

    zs = z
    if m_true % tm != 0:   # mask zero-padded rows out of the batch statistics
        rows = jax.lax.broadcasted_iota(jnp.int32, (tm, 1), 0) + t * tm
        zs = jnp.where(rows < m_true, z, 0.0)
    s_ref[...] = jnp.sum(zs, axis=0, keepdims=True).reshape(s_ref.shape)
    q_ref[...] = jnp.sum(zs * zs, axis=0, keepdims=True).reshape(q_ref.shape)


# ---------------------------------------------------------------------------
# Kernel 3: pure elementwise BN2(affine) + ReLU over z (no matmul recompute).
# ---------------------------------------------------------------------------
def _bn2_relu_kernel(z_ref, a2_ref, b2_ref, o_ref):
    z = z_ref[...].astype(jnp.float32)
    o_ref[...] = jnp.maximum(z * a2_ref[...] + b2_ref[...], 0.0)


# ---------------------------------------------------------------------------
# Wrapper (layout glue, padding, parameter reshapes, tiny BN moment math).
# ---------------------------------------------------------------------------
def depthwise_separable_conv(x, dw_w, pw_w, g1, b1, g2, b2, *, stride=1,
                             padding=0):
    N, C, H, W = x.shape
    KH, KW = dw_w.shape[2], dw_w.shape[3]
    Cout = pw_w.shape[0]
    H_out = (H + 2 * padding - KH) // stride + 1
    W_out = (W + 2 * padding - KW) // stride + 1
    Hp, Wp = H + 2 * padding, W + 2 * padding
    vmem_limit = _vmem_limit_bytes()

    # NCHW -> padded NHWC so channels land on the 128-lane axis.
    # TODO(synk): fold the pad into K1 (zero-init VMEM scratch + manual DMA) and keep
    # NHWC end-to-end to drop these wrapper-side full-array passes.
    x_nhwc = jnp.transpose(x.astype(jnp.float32), (0, 2, 3, 1))
    x_pad = jnp.pad(x_nhwc, ((0, 0), (padding, padding),
                             (padding, padding), (0, 0)))
    w_dw = jnp.transpose(dw_w[:, 0], (1, 2, 0)).astype(jnp.float32)    # (KH,KW,C)
    w_pw = pw_w[:, :, 0, 0].T.astype(jnp.bfloat16)                     # (Cin,Cout)

    # channel tile: lane-dense 128 when possible, else the full (small) channel axis
    TC = 128 if C % 128 == 0 else C
    c_tiles = C // TC

    # ---- K1: depthwise conv + per-(image, channel-tile) BN1 moments -----------
    # fully "parallel" grid (no accumulators) -> shards across both v7x TensorCores.
    h_raw, s1, q1 = pl.pallas_call(
        functools.partial(_dw_conv_stats_kernel, kh=KH, kw=KW, stride=stride,
                          h_out=H_out, w_out=W_out),
        grid=(N, c_tiles),
        in_specs=[
            pl.BlockSpec((1, Hp, Wp, TC), lambda n, c: (n, 0, 0, c)),
            pl.BlockSpec((KH, KW, TC), lambda n, c: (0, 0, c)),
        ],
        out_specs=[
            pl.BlockSpec((1, H_out, W_out, TC), lambda n, c: (n, 0, 0, c)),
            pl.BlockSpec((1, 1, TC), lambda n, c: (n, 0, c)),
            pl.BlockSpec((1, 1, TC), lambda n, c: (n, 0, c)),
        ],
        out_shape=[
            jax.ShapeDtypeStruct((N, H_out, W_out, C), jnp.bfloat16),
            jax.ShapeDtypeStruct((N, 1, C), jnp.float32),
            jax.ShapeDtypeStruct((N, 1, C), jnp.float32),
        ],
        compiler_params=pltpu.CompilerParams(
            dimension_semantics=("parallel", "parallel"),
            vmem_limit_bytes=vmem_limit),
    )(x_pad, w_dw)
    # TODO(synk): for very large single-image H*W (v7x 64 MiB VMEM), add output-row
    # tiling with a (KH-1)-row halo via memory_space=pl.ANY + pltpu.make_async_copy.

    # tiny per-channel BN1 scale/shift from the accumulated moments (wrapper glue)
    cnt1 = float(N * H_out * W_out)
    mean1 = jnp.sum(s1, axis=0) / cnt1                                 # (1, C)
    var1 = jnp.maximum(jnp.sum(q1, axis=0) / cnt1 - mean1 * mean1, 0.0)
    scale1 = g1.reshape(1, C) * jax.lax.rsqrt(var1 + EPS)
    shift1 = b1.reshape(1, C) - mean1 * scale1
    # TODO(synk): switch to shifted sum-of-squares / Welford merge if cancellation
    # ever matters for very large M.

    # ---- K2: BN1+ReLU -> 1x1 conv (MXU) + z writeback + per-tile BN2 moments --
    M = N * H_out * W_out
    h2 = h_raw.reshape(M, C)
    TM = min(_TM, _round_up(M, 8))
    M_pad = _round_up(M, TM)
    if M_pad != M:
        h2 = jnp.pad(h2, ((0, M_pad - M), (0, 0)))
    m_tiles = M_pad // TM

    row_in_spec = pl.BlockSpec((TM, C), lambda m: (m, 0))
    cin_spec = pl.BlockSpec((1, C), lambda m: (0, 0))
    wpw_spec = pl.BlockSpec((C, Cout), lambda m: (0, 0))
    cout_spec = pl.BlockSpec((1, Cout), lambda m: (0, 0))
    row_out_spec = pl.BlockSpec((TM, Cout), lambda m: (m, 0))
    mom_spec = pl.BlockSpec((1, 1, Cout), lambda m: (m, 0, 0))

    z, s2, q2 = pl.pallas_call(
        functools.partial(_pw_stats_kernel, tm=TM, m_true=M),
        grid=(m_tiles,),
        in_specs=[row_in_spec, cin_spec, cin_spec, wpw_spec],
        out_specs=[row_out_spec, mom_spec, mom_spec],
        out_shape=[jax.ShapeDtypeStruct((M_pad, Cout), jnp.bfloat16),
                   jax.ShapeDtypeStruct((m_tiles, 1, Cout), jnp.float32),
                   jax.ShapeDtypeStruct((m_tiles, 1, Cout), jnp.float32)],
        compiler_params=pltpu.CompilerParams(
            dimension_semantics=("parallel",),
            vmem_limit_bytes=vmem_limit),
    )(h2, scale1, shift1, w_pw)

    mean2 = jnp.sum(s2, axis=0) / float(M)                             # (1, Cout)
    var2 = jnp.maximum(jnp.sum(q2, axis=0) / float(M) - mean2 * mean2, 0.0)
    scale2 = g2.reshape(1, Cout) * jax.lax.rsqrt(var2 + EPS)
    shift2 = b2.reshape(1, Cout) - mean2 * scale2

    # ---- K3: elementwise BN2 + ReLU over z -------------------------------------
    # TODO(synk): for Cout < 128 the output last dim is not lane-dense (masked vst);
    # pack rows or pad Cout if a store-bound epilogue ever shows up in profiles.
    out_flat = pl.pallas_call(
        _bn2_relu_kernel,
        grid=(m_tiles,),
        in_specs=[row_out_spec, cout_spec, cout_spec],
        out_specs=row_out_spec,
        out_shape=jax.ShapeDtypeStruct((M_pad, Cout), jnp.float32),
        compiler_params=pltpu.CompilerParams(
            dimension_semantics=("parallel",),
            vmem_limit_bytes=vmem_limit),
    )(z, scale2, shift2)

    out = out_flat[:M].reshape(N, H_out, W_out, Cout)
    return jnp.transpose(out, (0, 3, 1, 2))


# ---------------------------------------------------------------------------
# Pure-JAX reference (mirrors the PyTorch forward, training-mode BatchNorm).
# ---------------------------------------------------------------------------
def _reference(x, dw_w, pw_w, g1, b1, g2, b2, stride, padding):
    dn = jax.lax.conv_dimension_numbers(x.shape, dw_w.shape,
                                        ("NCHW", "OIHW", "NCHW"))

    def bn_relu(y, g, b):
        m = y.mean(axis=(0, 2, 3), keepdims=True)
        v = ((y - m) ** 2).mean(axis=(0, 2, 3), keepdims=True)
        y = (y - m) * jax.lax.rsqrt(v + EPS)
        y = y * g.reshape(1, -1, 1, 1) + b.reshape(1, -1, 1, 1)
        return jnp.maximum(y, 0.0)

    h = jax.lax.conv_general_dilated(
        x, dw_w, (stride, stride), [(padding, padding), (padding, padding)],
        dimension_numbers=dn, feature_group_count=x.shape[1],
        precision=jax.lax.Precision.HIGHEST)
    h = bn_relu(h, g1, b1)
    h = jax.lax.conv_general_dilated(
        h, pw_w, (1, 1), [(0, 0), (0, 0)], dimension_numbers=dn,
        precision=jax.lax.Precision.HIGHEST)
    return bn_relu(h, g2, b2)


if __name__ == "__main__":
    key = jax.random.PRNGKey(0)
    k_x, k_dw, k_pw = jax.random.split(key, 3)

    N, Cin, H, W = 2, 4, 16, 16
    Cout, K, stride, padding = 8, 3, 1, 1

    x = jax.random.normal(k_x, (N, Cin, H, W), jnp.float32)
    # nn.Conv2d depthwise weight: (in_channels, 1, K, K), no bias
    dw_w = jax.random.normal(k_dw, (Cin, 1, K, K), jnp.float32) * 0.1
    # nn.Conv2d pointwise weight: (out_channels, in_channels, 1, 1), no bias
    pw_w = jax.random.normal(k_pw, (Cout, Cin, 1, 1), jnp.float32) * 0.1
    # BatchNorm affine params (deterministic non-trivial values)
    g1 = 1.0 + 0.05 * jnp.arange(Cin, dtype=jnp.float32)
    b1 = 0.02 * jnp.arange(Cin, dtype=jnp.float32)
    g2 = 1.0 + 0.05 * jnp.arange(Cout, dtype=jnp.float32)
    b2 = 0.02 * jnp.arange(Cout, dtype=jnp.float32)

    out = depthwise_separable_conv(x, dw_w, pw_w, g1, b1, g2, b2,
                                   stride=stride, padding=padding)
    out = jax.block_until_ready(out)

    ref = _reference(x, dw_w, pw_w, g1, b1, g2, b2, stride, padding)
    assert out.shape == (N, Cout, H, W), out.shape
    # bf16 intermediates (h_raw, z) + default MXU precision vs. an f32 HIGHEST-
    # precision reference -> a few e-2 absolute error on BN-normalized outputs.
    err = float(jnp.max(jnp.abs(out - ref)))
    assert jnp.allclose(out, ref, atol=5e-2, rtol=5e-2), err

    print("KERNEL_OK")
</pallas_src>

<mosaic_0001>
module attributes {stable_mosaic.version = 11 : i64} {
  func.func @_dw_conv_stats_kernel(%arg0: i32, %arg1: i32, %arg2: memref<1x18x18x4xf32, #tpu.memory_space<vmem>>, %arg3: memref<3x3x4xf32, #tpu.memory_space<vmem>>, %arg4: memref<1x16x16x4xbf16, #tpu.memory_space<vmem>>, %arg5: memref<1x1x4xf32, #tpu.memory_space<vmem>>, %arg6: memref<1x1x4xf32, #tpu.memory_space<vmem>>) attributes {dimension_semantics = [#tpu.dimension_semantics<parallel>, #tpu.dimension_semantics<parallel>], iteration_bounds = array<i64: 2, 1>, scalar_prefetch = 0 : i64, scratch_operands = 0 : i64, tpu.core_type = #tpu.core_type<tc>, window_params = [{transform_indices = @transform_0, window_bounds = array<i64: 1, 18, 18, 4>}, {transform_indices = @transform_1, window_bounds = array<i64: 3, 3, 4>}, {transform_indices = @transform_2, window_bounds = array<i64: 1, 16, 16, 4>}, {transform_indices = @transform_3, window_bounds = array<i64: 1, 1, 4>}, {transform_indices = @transform_4, window_bounds = array<i64: 1, 1, 4>}]} {
    %c0 = arith.constant 0 : index
    %c0_0 = arith.constant 0 : index
    %c0_1 = arith.constant 0 : index
    %c0_2 = arith.constant 0 : index
    %0 = vector.load %arg2[%c0, %c0_0, %c0_1, %c0_2] : memref<1x18x18x4xf32, #tpu.memory_space<vmem>>, vector<1x18x18x4xf32>
    %c0_3 = arith.constant 0 : index
    %c0_4 = arith.constant 0 : index
    %c0_5 = arith.constant 0 : index
    %1 = vector.load %arg3[%c0_3, %c0_4, %c0_5] : memref<3x3x4xf32, #tpu.memory_space<vmem>>, vector<3x3x4xf32>
    %cst = arith.constant 0.000000e+00 : f32
    %2 = vector.broadcast %cst : f32 to vector<1x16x16x4xf32>
    %3 = vector.extract_strided_slice %0 {offsets = [0, 0, 0, 0], sizes = [1, 16, 16, 4], strides = [1, 1, 1, 1]} : vector<1x18x18x4xf32> to vector<1x16x16x4xf32>
    %4 = vector.extract_strided_slice %1 {offsets = [0, 0, 0], sizes = [1, 1, 4], strides = [1, 1, 1]} : vector<3x3x4xf32> to vector<1x1x4xf32>
    %5 = vector.shape_cast %4 : vector<1x1x4xf32> to vector<4xf32>
    %6 = vector.shape_cast %5 : vector<4xf32> to vector<1x1x1x4xf32>
    %7 = vector.broadcast %6 : vector<1x1x1x4xf32> to vector<1x16x16x4xf32>
    %8 = arith.mulf %3, %7 : vector<1x16x16x4xf32>
    %9 = arith.addf %2, %8 : vector<1x16x16x4xf32>
    %10 = vector.extract_strided_slice %0 {offsets = [0, 0, 1, 0], sizes = [1, 16, 16, 4], strides = [1, 1, 1, 1]} : vector<1x18x18x4xf32> to vector<1x16x16x4xf32>
    %11 = vector.extract_strided_slice %1 {offsets = [0, 1, 0], sizes = [1, 1, 4], strides = [1, 1, 1]} : vector<3x3x4xf32> to vector<1x1x4xf32>
    %12 = vector.shape_cast %11 : vector<1x1x4xf32> to vector<4xf32>
    %13 = vector.shape_cast %12 : vector<4xf32> to vector<1x1x1x4xf32>
    %14 = vector.broadcast %13 : vector<1x1x1x4xf32> to vector<1x16x16x4xf32>
    %15 = arith.mulf %10, %14 : vector<1x16x16x4xf32>
    %16 = arith.addf %9, %15 : vector<1x16x16x4xf32>
    %17 = vector.extract_strided_slice %0 {offsets = [0, 0, 2, 0], sizes = [1, 16, 16, 4], strides = [1, 1, 1, 1]} : vector<1x18x18x4xf32> to vector<1x16x16x4xf32>
    %18 = vector.extract_strided_slice %1 {offsets = [0, 2, 0], sizes = [1, 1, 4], strides = [1, 1, 1]} : vector<3x3x4xf32> to vector<1x1x4xf32>
    %19 = vector.shape_cast %18 : vector<1x1x4xf32> to vector<4xf32>
    %20 = vector.shape_cast %19 : vector<4xf32> to vector<1x1x1x4xf32>
    %21 = vector.broadcast %20 : vector<1x1x1x4xf32> to vector<1x16x16x4xf32>
    %22 = arith.mulf %17, %21 : vector<1x16x16x4xf32>
    %23 = arith.addf %16, %22 : vector<1x16x16x4xf32>
    %24 = vector.extract_strided_slice %0 {offsets = [0, 1, 0, 0], sizes = [1, 16, 16, 4], strides = [1, 1, 1, 1]} : vector<1x18x18x4xf32> to vector<1x16x16x4xf32>
    %25 = vector.extract_strided_slice %1 {offsets = [1, 0, 0], sizes = [1, 1, 4], strides = [1, 1, 1]} : vector<3x3x4xf32> to vector<1x1x4xf32>
    %26 = vector.shape_cast %25 : vector<1x1x4xf32> to vector<4xf32>
    %27 = vector.shape_cast %26 : vector<4xf32> to vector<1x1x1x4xf32>
    %28 = vector.broadcast %27 : vector<1x1x1x4xf32> to vector<1x16x16x4xf32>
    %29 = arith.mulf %24, %28 : vector<1x16x16x4xf32>
    %30 = arith.addf %23, %29 : vector<1x16x16x4xf32>
    %31 = vector.extract_strided_slice %0 {offsets = [0, 1, 1, 0], sizes = [1, 16, 16, 4], strides = [1, 1, 1, 1]} : vector<1x18x18x4xf32> to vector<1x16x16x4xf32>
    %32 = vector.extract_strided_slice %1 {offsets = [1, 1, 0], sizes = [1, 1, 4], strides = [1, 1, 1]} : vector<3x3x4xf32> to vector<1x1x4xf32>
    %33 = vector.shape_cast %32 : vector<1x1x4xf32> to vector<4xf32>
    %34 = vector.shape_cast %33 : vector<4xf32> to vector<1x1x1x4xf32>
    %35 = vector.broadcast %34 : vector<1x1x1x4xf32> to vector<1x16x16x4xf32>
    %36 = arith.mulf %31, %35 : vector<1x16x16x4xf32>
    %37 = arith.addf %30, %36 : vector<1x16x16x4xf32>
    %38 = vector.extract_strided_slice %0 {offsets = [0, 1, 2, 0], sizes = [1, 16, 16, 4], strides = [1, 1, 1, 1]} : vector<1x18x18x4xf32> to vector<1x16x16x4xf32>
    %39 = vector.extract_strided_slice %1 {offsets = [1, 2, 0], sizes = [1, 1, 4], strides = [1, 1, 1]} : vector<3x3x4xf32> to vector<1x1x4xf32>
    %40 = vector.shape_cast %39 : vector<1x1x4xf32> to vector<4xf32>
    %41 = vector.shape_cast %40 : vector<4xf32> to vector<1x1x1x4xf32>
    %42 = vector.broadcast %41 : vector<1x1x1x4xf32> to vector<1x16x16x4xf32>
    %43 = arith.mulf %38, %42 : vector<1x16x16x4xf32>
    %44 = arith.addf %37, %43 : vector<1x16x16x4xf32>
    %45 = vector.extract_strided_slice %0 {offsets = [0, 2, 0, 0], sizes = [1, 16, 16, 4], strides = [1, 1, 1, 1]} : vector<1x18x18x4xf32> to vector<1x16x16x4xf32>
    %46 = vector.extract_strided_slice %1 {offsets = [2, 0, 0], sizes = [1, 1, 4], strides = [1, 1, 1]} : vector<3x3x4xf32> to vector<1x1x4xf32>
    %47 = vector.shape_cast %46 : vector<1x1x4xf32> to vector<4xf32>
    %48 = vector.shape_cast %47 : vector<4xf32> to vector<1x1x1x4xf32>
    %49 = vector.broadcast %48 : vector<1x1x1x4xf32> to vector<1x16x16x4xf32>
    %50 = arith.mulf %45, %49 : vector<1x16x16x4xf32>
    %51 = arith.addf %44, %50 : vector<1x16x16x4xf32>
    %52 = vector.extract_strided_slice %0 {offsets = [0, 2, 1, 0], sizes = [1, 16, 16, 4], strides = [1, 1, 1, 1]} : vector<1x18x18x4xf32> to vector<1x16x16x4xf32>
    %53 = vector.extract_strided_slice %1 {offsets = [2, 1, 0], sizes = [1, 1, 4], strides = [1, 1, 1]} : vector<3x3x4xf32> to vector<1x1x4xf32>
    %54 = vector.shape_cast %53 : vector<1x1x4xf32> to vector<4xf32>
    %55 = vector.shape_cast %54 : vector<4xf32> to vector<1x1x1x4xf32>
    %56 = vector.broadcast %55 : vector<1x1x1x4xf32> to vector<1x16x16x4xf32>
    %57 = arith.mulf %52, %56 : vector<1x16x16x4xf32>
    %58 = arith.addf %51, %57 : vector<1x16x16x4xf32>
    %59 = vector.extract_strided_slice %0 {offsets = [0, 2, 2, 0], sizes = [1, 16, 16, 4], strides = [1, 1, 1, 1]} : vector<1x18x18x4xf32> to vector<1x16x16x4xf32>
    %60 = vector.extract_strided_slice %1 {offsets = [2, 2, 0], sizes = [1, 1, 4], strides = [1, 1, 1]} : vector<3x3x4xf32> to vector<1x1x4xf32>
    %61 = vector.shape_cast %60 : vector<1x1x4xf32> to vector<4xf32>
    %62 = vector.shape_cast %61 : vector<4xf32> to vector<1x1x1x4xf32>
    %63 = vector.broadcast %62 : vector<1x1x1x4xf32> to vector<1x16x16x4xf32>
    %64 = arith.mulf %59, %63 : vector<1x16x16x4xf32>
    %65 = arith.addf %58, %64 : vector<1x16x16x4xf32>
    %cst_6 = arith.constant dense<0.000000e+00> : vector<4xf32>
    %66 = vector.multi_reduction <add>, %65, %cst_6 [0, 1, 2] : vector<1x16x16x4xf32> to vector<4xf32>
    %67 = vector.shape_cast %66 : vector<4xf32> to vector<1x1x1x4xf32>
    %68 = vector.shape_cast %67 : vector<1x1x1x4xf32> to vector<1x1x4xf32>
    %c0_7 = arith.constant 0 : index
    %c0_8 = arith.constant 0 : index
    %c0_9 = arith.constant 0 : index
    %69 = vector.load %arg5[%c0_7, %c0_8, %c0_9] : memref<1x1x4xf32, #tpu.memory_space<vmem>>, vector<1x1x4xf32>
    tpu.vector_store %arg5[%c0_7, %c0_8, %c0_9], %68 {strides = array<i32>} : memref<1x1x4xf32, #tpu.memory_space<vmem>>, vector<1x1x4xf32>,
    %70 = arith.mulf %65, %65 : vector<1x16x16x4xf32>
    %cst_10 = arith.constant dense<0.000000e+00> : vector<4xf32>
    %71 = vector.multi_reduction <add>, %70, %cst_10 [0, 1, 2] : vector<1x16x16x4xf32> to vector<4xf32>
    %72 = vector.shape_cast %71 : vector<4xf32> to vector<1x1x1x4xf32>
    %73 = vector.shape_cast %72 : vector<1x1x1x4xf32> to vector<1x1x4xf32>
    %c0_11 = arith.constant 0 : index
    %c0_12 = arith.constant 0 : index
    %c0_13 = arith.constant 0 : index
    %74 = vector.load %arg6[%c0_11, %c0_12, %c0_13] : memref<1x1x4xf32, #tpu.memory_space<vmem>>, vector<1x1x4xf32>
    tpu.vector_store %arg6[%c0_11, %c0_12, %c0_13], %73 {strides = array<i32>} : memref<1x1x4xf32, #tpu.memory_space<vmem>>, vector<1x1x4xf32>,
    %75 = arith.truncf %65 : vector<1x16x16x4xf32> to vector<1x16x16x4xbf16>
    %c0_14 = arith.constant 0 : index
    %c0_15 = arith.constant 0 : index
    %c0_16 = arith.constant 0 : index
    %c0_17 = arith.constant 0 : index
    %76 = vector.load %arg4[%c0_14, %c0_15, %c0_16, %c0_17] : memref<1x16x16x4xbf16, #tpu.memory_space<vmem>>, vector<1x16x16x4xbf16>
    tpu.vector_store %arg4[%c0_14, %c0_15, %c0_16, %c0_17], %75 {strides = array<i32>} : memref<1x16x16x4xbf16, #tpu.memory_space<vmem>>, vector<1x16x16x4xbf16>,
    return
  }
  func.func @transform_0(%arg0: i32, %arg1: i32) -> (i32, i32, i32, i32) {
    %c0_i32 = arith.constant 0 : i32
    %c0_i32_0 = arith.constant 0 : i32
    %c0_i32_1 = arith.constant 0 : i32
    return %arg0, %c0_i32, %c0_i32_0, %arg1 : i32, i32, i32, i32
  }
  func.func @transform_1(%arg0: i32, %arg1: i32) -> (i32, i32, i32) {
    %c0_i32 = arith.constant 0 : i32
    %c0_i32_0 = arith.constant 0 : i32
    %c0_i32_1 = arith.constant 0 : i32
    return %c0_i32, %c0_i32_0, %arg1 : i32, i32, i32
  }
  func.func @transform_2(%arg0: i32, %arg1: i32) -> (i32, i32, i32, i32) {
    %c0_i32 = arith.constant 0 : i32
    %c0_i32_0 = arith.constant 0 : i32
    %c0_i32_1 = arith.constant 0 : i32
    return %arg0, %c0_i32, %c0_i32_0, %arg1 : i32, i32, i32, i32
  }
  func.func @transform_3(%arg0: i32, %arg1: i32) -> (i32, i32, i32) {
    %c0_i32 = arith.constant 0 : i32
    %c0_i32_0 = arith.constant 0 : i32
    return %arg0, %c0_i32, %arg1 : i32, i32, i32
  }
  func.func @transform_4(%arg0: i32, %arg1: i32) -> (i32, i32, i32) {
    %c0_i32 = arith.constant 0 : i32
    %c0_i32_0 = arith.constant 0 : i32
    return %arg0, %c0_i32, %arg1 : i32, i32, i32
  }
}

</mosaic_0001>

<bundles_post_ra>
// kernel: tpu_custom_call.1
= control target key start
LH: loop header
LB: loop body
LE: loop exit
PB: predicated region body
PF: predicated region fallthrough
CT: control target
= control target key end

     0   :  { %10 = vsyncpa [#allocation3], 0  ;;  %s6324_s0 = inlined_call_operand.vmem [shape: f32[2,18,18,4], index: 0, kind: input, shape index: {}]   ;;  %s6325_s1 = inlined_call_operand.vmem [shape: f32[3,3,4], index: 1, kind: input, shape index: {}]   ;;  %s6326_s2 = inlined_call_operand.vmem [shape: bf16[2,16,16,4], index: 2, kind: output, shape index: {0}]   ;;  %s6327_s3 = inlined_call_operand.hbm [shape: f32[2,1,4], index: 3, kind: output, shape index: {1}]   ;;  %s6328_s4 = inlined_call_operand.hbm [shape: f32[2,1,4], index: 4, kind: output, shape index: {2}]  }
   0x1   :  { %12 = vsyncpa [#allocation3 + $0x1], 0 }
   0x2   :  { %13 = vsyncpa [#allocation5], 0 }
   0x3   :  { %15 = vsyncpa [#allocation5 + $0x1], 0  ;;  %s2851_s15 = smov 0   ;;  %s2853_s16 = smov 0  }
   0x4   :  { %s2855_s17 = smov 0   ;;  %s2857_s18 = smov 0  }
   0x5   :  { %s2859_s19 = smov 0   ;;  %s2861_s20 = smov 0  }
   0x6 LB: > { %s2524_s21 = sadd.s32 4294967295, %s2822_s20   ;;  %s2525_s22 = sadd.s32 4294967294, %s2822_s20   ;;  %s2822_s20 = sphi %s2861_s20, %s21_s20   ;;  %s2818_s19 = sphi %s2859_s19, %s7236_s19   ;;  %s2814_s18 = sphi %s2857_s18, %s7235_s18   ;;  %s2810_s17 = sphi %s2855_s17, %s7234_s17   ;;  %s2806_s16 = sphi %s2853_s16, %s7233_s16   ;;  %s2802_s15 = sphi %s2851_s15, %s7232_s15  }
   0x7   : > { %s33_s23 = sadd.s32 1, %s2818_s19  ;;  %s124_s24 = sadd.s32 1, %s2810_s17 }
   0x8   : > { %p35_p0 = scmp.ge.s32.totalorder %s33_s23, 2  ;;  %p134_p1 = scmp.ne.s32.totalorder %s2810_s17, %s2806_s16 }
   0x9   : > { %p135_p2 = scmp.eq.s32.totalorder %s2524_s21, 1  ;;  %p140_p3 = scmp.ne.s32.totalorder %s2806_s16, %s2802_s15 }
   0xa   : > { %s7238_s23 = smov (%p35_p0, %s33_s23), 0  ;;  %p141_p5 = scmp.eq.s32.totalorder %s2525_s22, 1 }
   0xb   : > { %p2891_p4 = por %p135_p2, %p134_p1  ;;  %s119_s26 = ssub.s32 %s2818_s19, %s7238_s23 }
   0xc   : > { %p2529_p6 = scmp.ge.s32.totalorder %s2822_s20, 1  ;;  %p122_p7 = scmp.eq.s32.totalorder %s119_s26, 0 }
   0xd   : > { %p2898_p8 = por %p141_p5, %p140_p3  ;;  %p205_p9 = scmp.lt.s32.totalorder %s2822_s20, 3 }
   0xe   : > { %s2904_s28 = scalar_select %p122_p7, %s2810_s17, %s124_s24  }
   0xf   : > { %p206_p10 = pnand %p2529_p6, %p205_p9 }
  0x11   : > { %209 = sbr.rel (%p206_p10) target bundleno = 476 (0x1dc), region = 28 }
  0x18   : > { %p249_p11 = scmp.lt.s32.totalorder %s2814_s18, 1  ;;  %v326_v0 = vlaneseq  ;;  %v323_v4 = vld [vmem:[%s6325_s1] sm:$0x7]  ;;  %v324_v7 = vld [vmem:[%s6325_s1 + $0x4] sm:$0x7]  ;;  %vm494_vm0 = vcmask 1046528  }
  0x19   : > { %vm739_vm1 = vcmask 1045504   ;;  %vm1996_vm2 = vcmask 31744   ;;  %vm2298_vm3 = vcmask 27648   ;;  %s2565_s7 = sshll.u32 %s2814_s18, 4  ;;  %vm2066_vm4 = vcmask 24576   ;;  %s2824_s13 = smov [#allocation2]  }
  0x1a   : > { %s2908_s29 = scalar_select %p249_p11, %s2814_s18, 1  ;;  %v327_v1 = vshrl.u32 %v326_v0, 7 }
  0x1b   : > { %s6242_s10 = scalar_lea.hbm %s6327_s3, %s2565_s7  ;;  %s2716_s14 = sshll.u32 %s2824_s13, 4  ;;  %s2717_s14 = int_to_ptr.vmem [resolvable:$false] %s2716_s14 }
  0x1c   : > { %s2602_s30 = smul.u32 432, %s2908_s29  ;;  %v2911_v2 = vsub.s32 0, %v327_v1  ;;  %v2913_v3 = vsub.s32 1, %v327_v1  ;;  %v2926_v6 = vsub.s32 2, %v327_v1  ;;  %s2569_s22 = sshll.u32 %s2908_s29, 7 }
  0x1d   : > { %s6018_s29 = scalar_lea.vmem %s6326_s2, %s2569_s22  ;;  %s2718_s21 = scalar_lea.vmem %s2717_s14, 32 }
  0x1e   : > { %6528 = vst [vmem:[#allocation8_spill] sm:$0xff] %v2911_v2  ;;  %6529 = vst [vmem:[#allocation9_spill] sm:$0xff] %v2913_v3  ;;  %s2921_s9 = scalar_lea.vmem %s6324_s0, %s2602_s30  ;;  %v2924_v5 = vrot.slane %v323_v4, %v2911_v2  ;;  %v2932_v8 = vrot.slane %v323_v4, %v2913_v3  ;;  %v2957_v16 = vrot.slane %v323_v4, %v2926_v6  ;;  %s6216_s30 = sand.u32 1, %s2806_s16  }
  0x1f   : > { %6530 = vst [vmem:[#allocation10_spill] sm:$0xff] %v2926_v6  ;;  %v2935_v9 = vld [vmem:[%s2921_s9] sm:$0xff]  ;;  %v2938_v10 = vld [vmem:[%s2921_s9 + $0x8] sm:$0xff]  ;;  %v2941_v11 = vld [vmem:[%s2921_s9 + $0x10] sm:$0x3]  ;;  %v2960_v17 = vrot.slane %v324_v7, %v2911_v2  ;;  %v2963_v18 = vrot.slane %v324_v7, %v2913_v3  ;;  %s242_s5 = scalar_lea.vmem [#allocation2], %s6216_s30 }
  0x20   : > { %6531 = vst [vmem:[#allocation11_spill] sm:$0xff] %v2935_v9  ;;  %6532 = vst [vmem:[#allocation12_spill] sm:$0xff] %v2938_v10  ;;  %v2944_v12 = vld [vmem:[%s2921_s9 + $0x18] sm:$0xff]  ;;  %v2947_v13 = vld [vmem:[%s2921_s9 + $0x20] sm:$0xff]  ;;  %v2954_v15 = vmul.f32 %v2924_v5, %v2935_v9  ;;  %v2973_v21 = vmul.f32 %v2924_v5, %v2938_v10  ;;  %v2981_v23 = vmul.f32 %v2932_v8, %v2935_v9  ;;  %s2360_s6 = sshll.u32 %s242_s5, 4  ;;  %s2340_s11 = scalar_lea.sflag [#allocation3], %s6216_s30  ;;  %s6232_s6 = int_to_ptr.vmem [resolvable:$true] %s2360_s6 }
  0x21   : > { %6533 = vst [vmem:[#allocation13_spill] sm:$0xff] %v2941_v11  ;;  %6534 = vst [vmem:[#allocation14_spill] sm:$0xff] %v2944_v12  ;;  %v2950_v14 = vld [vmem:[%s2921_s9 + $0x28] sm:$0x3]  ;;  %v2966_v19 = vld [vmem:[%s2921_s9 + $0x30] sm:$0xff]  ;;  %v2977_v22 = vmul.f32 %v2924_v5, %v2944_v12  ;;  %v2985_v24 = vmul.f32 %v2932_v8, %v2938_v10  ;;  %v2995_v27 = vmul.f32 %v2924_v5, %v2947_v13  ;;  %s2712_s12 = scalar_lea.vmem %s6232_s6, 16  ;;  %p2719_p1 = scmp.lt.s32.totalorder %s6232_s6, %s2717_s14 }
  0x22   : > { %6535 = vst [vmem:[#allocation15_spill] sm:$0xff] %v2947_v13  ;;  %6536 = vst [vmem:[#allocation16_spill] sm:$0xff] %v2950_v14  ;;  %v2969_v20 = vld [vmem:[%s2921_s9 + $0x38] sm:$0xff]  ;;  %v2988_v25 = vld [vmem:[%s2921_s9 + $0x40] sm:$0x3]  ;;  %v2999_v28 = vmul.f32 %v2924_v5, %v2966_v19  ;;  %v3003_v29 = vmul.f32 %v2932_v8, %v2941_v11  ;;  %v3007_v30 = vmul.f32 %v2932_v8, %v2944_v12  ;;  %p2713_p12 = scmp.ne.s32.totalorder %s6232_s6, %s2712_s12  ;;  %p2720_p2 = scmp.lt.s32.totalorder %s2718_s21, %s2712_s12 }
  0x23   : > { %6537 = vst [vmem:[#allocation17_spill] sm:$0xff] %v2957_v16  ;;  %6538 = vst [vmem:[#allocation18_spill] sm:$0xff] %v2960_v17  ;;  %v2991_v26 = vld [vmem:[%s2921_s9 + $0x48] sm:$0xff]  ;;  %v3010_v31 = vld [vmem:[%s2921_s9 + $0x50] sm:$0xff]  ;;  %v3020_v34 = vmul.f32 %v2924_v5, %v2969_v20  ;;  %v3028_v36 = vmul.f32 %v2932_v8, %v2947_v13  ;;  %v3032_v37 = vmul.f32 %v2932_v8, %v2950_v14 }
  0x24   : > { %6539 = vst [vmem:[#allocation19_spill] sm:$0xff] %v2963_v18  ;;  %6540 = vst [vmem:[#allocation20_spill] sm:$0xff] %v2966_v19  ;;  %v3013_v32 = vld [vmem:[%s2921_s9 + $0x58] sm:$0x3]  ;;  %v3016_v33 = vld [vmem:[%s2921_s9 + $0x60] sm:$0xff]  ;;  %v3024_v35 = vmul.f32 %v2924_v5, %v2991_v26  ;;  %v3042_v40 = vmul.f32 %v2924_v5, %v3010_v31  ;;  %v3050_v42 = vmul.f32 %v2932_v8, %v2966_v19  ;;  %p2714_p13 = pnand %p2713_p12, %p2891_p4  ;;  %p2721_p3 = por %p2720_p2, %p2719_p1 }
  0x25   : > { %6541 = vst [vmem:[#allocation21_spill] sm:$0xff] %v2969_v20  ;;  %6542 = vst [vmem:[#allocation22_spill] sm:$0xff] %v2988_v25  ;;  %v3035_v38 = vld [vmem:[%s2921_s9 + $0x68] sm:$0xff]  ;;  %v3038_v39 = vld [vmem:[%s2921_s9 + $0x78] sm:$0xff]  ;;  %v3046_v41 = vmul.f32 %v2924_v5, %v3016_v33  ;;  %v3054_v43 = vmul.f32 %v2932_v8, %v2969_v20  ;;  %v3075_v49 = vmul.f32 %v2932_v8, %v2988_v25 }
  0x26   : > { %6543 = vst [vmem:[#allocation23_spill] sm:$0xff] %v2991_v26  ;;  %6544 = vst [vmem:[#allocation24_spill] sm:$0xff] %v3010_v31  ;;  %v3057_v44 = vld [vmem:[%s2921_s9 + $0x70] sm:$0x3]  ;;  %v3060_v45 = vld [vmem:[%s2921_s9 + $0x80] sm:$0xff]  ;;  %v3067_v47 = vmul.f32 %v2924_v5, %v3035_v38  ;;  %v3071_v48 = vmul.f32 %v2924_v5, %v3038_v39  ;;  %v3079_v50 = vmul.f32 %v2932_v8, %v2991_v26  ;;  %p2715_p0 = pneg %p2714_p13 }
  0x27   : > { %6545 = vst [vmem:[#allocation25_spill] sm:$0xff] %v3013_v32  ;;  %6546 = vst [vmem:[#allocation26_spill] sm:$0xff] %v3016_v33  ;;  %v3063_v46 = vld [vmem:[%s2921_s9 + $0x90] sm:$0xff]  ;;  %v3082_v51 = vld [vmem:[%s2921_s9 + $0x88] sm:$0x3]  ;;  %v3092_v54 = vmul.f32 %v2924_v5, %v3060_v45  ;;  %v3100_v56 = vmul.f32 %v2932_v8, %v3010_v31  ;;  %v3104_v57 = vmul.f32 %v2932_v8, %v3013_v32 }
  0x28   : > { %6547 = vst [vmem:[#allocation27_spill] sm:$0xff] %v3024_v35  ;;  %6548 = vst [vmem:[#allocation28_spill] sm:$0xff] %v3035_v38  ;;  %v3085_v52 = vld [vmem:[%s2921_s9 + $0x98] sm:$0xff]  ;;  %v3088_v53 = vld [vmem:[%s2921_s9 + $0xa8] sm:$0xff]  ;;  %v3096_v55 = vmul.f32 %v2924_v5, %v3063_v46  ;;  %v3122_v62 = vmul.f32 %v2932_v8, %v3016_v33  ;;  %v3126_v63 = vmul.f32 %v2932_v8, %v3035_v38  ;;  %v508_v35 = vrot.slane %v3075_v49, 1  ;;  %p2722_p5 = pnand %p2721_p3, %p2715_p0 }
  0x29   : > { %6549 = vst [vmem:[#allocation29_spill] sm:$0xff] %v3038_v39  ;;  %6550 = vst [vmem:[#allocation30_spill] sm:$0xff] %v3042_v40  ;;  %v3107_v58 = vld [vmem:[%s2921_s9 + $0xb0] sm:$0xff]  ;;  %v3110_v59 = vld [vmem:[%s2921_s9 + $0xc0] sm:$0xff]  ;;  %v3114_v60 = vmul.f32 %v2924_v5, %v3085_v52  ;;  %v3118_v61 = vmul.f32 %v2924_v5, %v3088_v53  ;;  %v3147_v2 = vmul.f32 %v2932_v8, %v3057_v44  ;;  %v506_v40 = vrot.slane %v3054_v43, 1 }
  0x2a   : > { %6551 = vst [vmem:[#allocation31_spill] sm:$0xff] %v3046_v41  ;;  %6552 = vst [vmem:[#allocation32_spill] sm:$0xff] %v3057_v44  ;;  %v3129_v0 = vld [vmem:[%s2921_s9 + $0xa0] sm:$0x3]  ;;  %v3132_v1 = vld [vmem:[%s2921_s9 + $0xc8] sm:$0xff]  ;;  %v3139_v7 = vmul.f32 %v2924_v5, %v3107_v58  ;;  %v3143_v3 = vmul.f32 %v2924_v5, %v3110_v59  ;;  %v3151_v6 = vmul.f32 %v2932_v8, %v3038_v39  ;;  %v498_v41 = vrot.slane %v3003_v29, 1 }
  0x2b   : > { %6553 = vst [vmem:[#allocation33_spill] sm:$0xff] %v3060_v45  ;;  %6554 = vst [vmem:[#allocation34_spill] sm:$0xff] %v3063_v46  ;;  %v3135_v4 = vld [vmem:[%s2921_s9 + $0xd8] sm:$0xff]  ;;  %v3157_v17 = vld [vmem:[%s2921_s9 + $0xe0] sm:$0xff]  ;;  %v3164_v33 = vmul.f32 %v2924_v5, %v3132_v1  ;;  %v3172_v32 = vmul.f32 %v2932_v8, %v3060_v45  ;;  %v3176_v39 = vmul.f32 %v2932_v8, %v3082_v51 }
  0x2c   : > { %6555 = vst [vmem:[#allocation35_spill] sm:$0xff] %v3067_v47  ;;  %6556 = vst [vmem:[#allocation36_spill] sm:$0xff] %v3071_v48  ;;  %v3154_v18 = vld [vmem:[%s2921_s9 + $0xb8] sm:$0x3]  ;;  %v3160_v38 = vld [vmem:[%s2921_s9 + $0xf0] sm:$0xff]  ;;  %v3168_v44 = vmul.f32 %v2924_v5, %v3135_v4  ;;  %v3186_v25 = vmul.f32 %v2924_v5, %v3157_v17  ;;  %v3194_v45 = vmul.f32 %v2932_v8, %v3063_v46  ;;  %v496_v47 = vrot.slane %v2985_v24, 1 }
  0x2d   : > { %6557 = vst [vmem:[#allocation37_spill] sm:$0xff] %v3082_v51  ;;  %6558 = vst [vmem:[#allocation38_spill] sm:$0xff] %v3085_v52  ;;  %v3179_v31 = vld [vmem:[%s2921_s9 + $0xf8] sm:$0xff]  ;;  %v3182_v26 = vld [vmem:[%s2921_s9 + $0x108] sm:$0xff]  ;;  %v3190_v20 = vmul.f32 %v2924_v5, %v3160_v38  ;;  %v3198_v51 = vmul.f32 %v2932_v8, %v3085_v52  ;;  %v3219_v52 = vmul.f32 %v2932_v8, %v3129_v0  ;;  %v521_v43 = vrot.slane %v3172_v32, 1 }
  0x2e   : > { %6559 = vst [vmem:[#allocation39_spill] sm:$0xff] %v3088_v53  ;;  %6560 = vst [vmem:[#allocation40_spill] sm:$0xff] %v3092_v54  ;;  %v3201_v19 = vld [vmem:[%s2921_s9 + $0xd0] sm:$0x3]  ;;  %v3207_v13 = vld [vmem:[%s2921_s9 + $0x120] sm:$0xff]  ;;  %v3211_v12 = vmul.f32 %v2924_v5, %v3179_v31  ;;  %v3215_v46 = vmul.f32 %v2924_v5, %v3182_v26  ;;  %v3223_v11 = vmul.f32 %v2932_v8, %v3088_v53 }
  0x2f   : > { %6561 = vst [vmem:[#allocation41_spill] sm:$0xff] %v3096_v55  ;;  %6562 = vst [vmem:[#allocation42_spill] sm:$0xff] %v3107_v58  ;;  %v3204_v14 = vld [vmem:[%s2921_s9 + $0x110] sm:$0xff]  ;;  %v3226_v10 = vld [vmem:[%s2921_s9 + $0xe8] sm:$0x3]  ;;  %v3244_v53 = vmul.f32 %v2932_v8, %v3107_v58  ;;  %v3346_v48 = vmul.f32 %v2932_v8, %v3182_v26  ;;  %v526_v49 = vrot.slane %v3198_v51, 1  ;;  %v509_v51 = vsel %vm494_vm0, %v506_v40, %v508_v35 }
  0x30   : > { %6563 = vst [vmem:[#allocation43_spill] sm:$0xff] %v3110_v59  ;;  %6564 = vst [vmem:[#allocation44_spill] sm:$0xff] %v3114_v60  ;;  %v3229_v16 = vld [vmem:[%s2921_s9 + $0x128] sm:$0xff]  ;;  %v3232_v9 = vld [vmem:[%s2921_s9 + $0x138] sm:$0xff] }
  0x31   : > { %6565 = vst [vmem:[#allocation45_spill] sm:$0xff] %v3118_v61  ;;  %6566 = vst [vmem:[#allocation46_spill] sm:$0xff] %v3129_v0  ;;  %v3240_v0 = vmul.f32 %v2924_v5, %v3207_v13  ;;  %v3265_v58 = vmul.f32 %v2924_v5, %v3232_v9  ;;  %v3301_v61 = vld [vmem:[%s2921_s9 + $0x130] sm:$0x3]  ;;  %v3323_v55 = vld [vmem:[%s2921_s9 + $0x148] sm:$0x3] }
  0x32   : > { %6567 = vst [vmem:[#allocation47_spill] sm:$0xff] %v3132_v1  ;;  %6568 = vst [vmem:[#allocation48_spill] sm:$0xff] %v3135_v4  ;;  %v3304_v60 = vld [vmem:[%s2921_s9 + $0x170] sm:$0xff] }
  0x33   : > { %6569 = vst [vmem:[#allocation49_spill] sm:$0xff] %v3139_v7  ;;  %6570 = vst [vmem:[#allocation50_spill] sm:$0xff] %v3143_v3  ;;  %v3279_v3 = vld [vmem:[%s2921_s9 + $0x158] sm:$0xff]  ;;  %v3282_v7 = vld [vmem:[%s2921_s9 + $0x168] sm:$0xff]  ;;  %v3327_v54 = vmul.f32 %v2924_v5, %v3304_v60 }
  0x34   : > { %6571 = vst [vmem:[#allocation51_spill] sm:$0xff] %v3154_v18  ;;  %6572 = vst [vmem:[#allocation52_spill] sm:$0xff] %v3157_v17 }
  0x35   : > { %6573 = vst [vmem:[#allocation53_spill] sm:$0xff] %v3160_v38  ;;  %6574 = vst [vmem:[#allocation54_spill] sm:$0xff] %v3164_v33  ;;  %v3276_v33 = vld [vmem:[%s2921_s9 + $0x118] sm:$0x3] }
  0x36   : > { %6575 = vst [vmem:[#allocation55_spill] sm:$0xff] %v3168_v44  ;;  %6576 = vst [vmem:[#allocation56_spill] sm:$0xff] %v3179_v31  ;;  %v3257_v44 = vld [vmem:[%s2921_s9 + $0x150] sm:$0xff] }
  0x37   : > { %6577 = vst [vmem:[#allocation57_spill] sm:$0xff] %v3182_v26  ;;  %6578 = vst [vmem:[#allocation58_spill] sm:$0xff] %v3186_v25  ;;  %v3254_v25 = vld [vmem:[%s2921_s9 + $0x140] sm:$0xff]  ;;  %v3369_v26 = vmul.f32 %v2932_v8, %v3301_v61 }
  0x38   : > { %6579 = vst [vmem:[#allocation59_spill] sm:$0xff] %v3190_v20  ;;  %6580 = vst [vmem:[#allocation60_spill] sm:$0xff] %v3201_v19  ;;  %v3251_v20 = vld [vmem:[%s2921_s9 + $0x100] sm:$0x3] }
  0x39   : > { %6581 = vst [vmem:[#allocation61_spill] sm:$0xff] %v3204_v14  ;;  %6582 = vst [vmem:[#allocation62_spill] sm:$0xff] %v3207_v13 }
  0x3a   : > { %6583 = vst [vmem:[#allocation63_spill] sm:$0xff] %v3211_v12  ;;  %6584 = vst [vmem:[#allocation64_spill] sm:$0xff] %v3215_v46  ;;  %v3236_v46 = vmul.f32 %v2924_v5, %v3204_v14  ;;  %v3248_v12 = vmul.f32 %v2932_v8, %v3154_v18  ;;  %v3269_v18 = vmul.f32 %v2932_v8, %v3110_v59 }
  0x3b   : > { %6585 = vst [vmem:[#allocation65_spill] sm:$0xff] %v3226_v10  ;;  %6586 = vst [vmem:[#allocation66_spill] sm:$0xff] %v3229_v16  ;;  %v3294_v59 = vmul.f32 %v2932_v8, %v3201_v19  ;;  %v3316_v19 = vmul.f32 %v2932_v8, %v3157_v17  ;;  %v3339_v17 = vmul.f32 %v2932_v8, %v3251_v20 }
  0x3c   : > { %6587 = vst [vmem:[#allocation67_spill] sm:$0xff] %v3232_v9  ;;  %6588 = vst [vmem:[#allocation68_spill] sm:$0xff] %v3236_v46  ;;  %v3261_v46 = vmul.f32 %v2924_v5, %v3229_v16 }
  0x3d   : > { %6589 = vst [vmem:[#allocation69_spill] sm:$0xff] %v3240_v0  ;;  %6590 = vst [vmem:[#allocation70_spill] sm:$0xff] %v3251_v20  ;;  %v3273_v0 = vmul.f32 %v2932_v8, %v3132_v1  ;;  %v3298_v1 = vmul.f32 %v2932_v8, %v3135_v4  ;;  %v3320_v4 = vmul.f32 %v2932_v8, %v3226_v10  ;;  %v3342_v10 = vld [vmem:[%s2921_s9 + $0x160] sm:$0x3]  ;;  %v3361_v20 = vld [vmem:[%s2921_s9 + $0x178] sm:$0x3] }
  0x3e   : > { %6591 = vst [vmem:[#allocation71_spill] sm:$0xff] %v3254_v25  ;;  %6592 = vst [vmem:[#allocation72_spill] sm:$0xff] %v3257_v44  ;;  %v3396_v24 = vmul.f32 %v2932_v8, %v3342_v10  ;;  %v3408_v29 = vmul.f32 %v2932_v8, %v3361_v20 }
  0x3f   : > { %6593 = vst [vmem:[#allocation73_spill] sm:$0xff] %v3261_v46  ;;  %6594 = vst [vmem:[#allocation74_spill] sm:$0xff] %v3265_v58  ;;  %v3286_v46 = vmul.f32 %v2924_v5, %v3254_v25  ;;  %v3290_v58 = vmul.f32 %v2924_v5, %v3257_v44  ;;  %v536_v32 = vrot.slane %v3273_v0, 1  ;;  %v538_v0 = vrot.slane %v3294_v59, 1 }
  0x40   : > { %6595 = vst [vmem:[#allocation75_spill] sm:$0xff] %v3276_v33  ;;  %6596 = vst [vmem:[#allocation76_spill] sm:$0xff] %v3279_v3 }
  0x41   : > { %6597 = vst [vmem:[#allocation77_spill] sm:$0xff] %v3282_v7  ;;  %6598 = vst [vmem:[#allocation78_spill] sm:$0xff] %v3286_v46  ;;  %v3308_v46 = vmul.f32 %v2924_v5, %v3279_v3 }
  0x42   : > { %6599 = vst [vmem:[#allocation79_spill] sm:$0xff] %v3290_v58  ;;  %6600 = vst [vmem:[#allocation80_spill] sm:$0xff] %v3301_v61  ;;  %v3312_v58 = vmul.f32 %v2924_v5, %v3282_v7  ;;  %v3350_v5 = vmul.f32 %v2932_v8, %v3204_v14  ;;  %v495_v14 = vrot.slane %v2981_v23, 1  ;;  %v3388_v61 = vmul.f32 %v2932_v8, %v3257_v44 }
  0x43   : > { %6601 = vst [vmem:[#allocation81_spill] sm:$0xff] %v3304_v60  ;;  %6602 = vst [vmem:[#allocation82_spill] sm:$0xff] %v3308_v46  ;;  %v3331_v46 = vmul.f32 %v2932_v8, %v3160_v38  ;;  %v3354_v38 = vmul.f32 %v2932_v8, %v3276_v33  ;;  %v3375_v33 = vmul.f32 %v2932_v8, %v3232_v9  ;;  %v500_v44 = vrot.slane %v3007_v30, 1 }
  0x44   : > { %6603 = vst [vmem:[#allocation83_spill] sm:$0xff] %v3312_v58  ;;  %6604 = vst [vmem:[#allocation84_spill] sm:$0xff] %v3323_v55  ;;  %v3335_v58 = vmul.f32 %v2932_v8, %v3179_v31  ;;  %v3358_v31 = vmul.f32 %v2932_v8, %v3207_v13  ;;  %v3379_v13 = vmul.f32 %v2932_v8, %v3254_v25  ;;  %v511_v30 = vrot.slane %v3100_v56, 1 }
  0x45   : > { %6605 = vst [vmem:[#allocation85_spill] sm:$0xff] %v3327_v54  ;;  %6606 = vst [vmem:[#allocation86_spill] sm:$0xff] %v3342_v10  ;;  %v3365_v54 = vmul.f32 %v2932_v8, %v3229_v16  ;;  %v3383_v16 = vmul.f32 %v2932_v8, %v3323_v55  ;;  %v3392_v23 = vmul.f32 %v2932_v8, %v3279_v3  ;;  %v501_v3 = vrot.slane %v3028_v36, 1 }
  0x46   : > { %6607 = vst [vmem:[#allocation87_spill] sm:$0xff] %v3361_v20  ;;  %v3400_v25 = vmul.f32 %v2932_v8, %v3282_v7  ;;  %v3404_v55 = vmul.f32 %v2932_v8, %v3304_v60  ;;  %v3413_v9 = vsel %vm494_vm0, %v495_v14, %v496_v47  ;;  %v503_v10 = vrot.slane %v3032_v37, 1 }
  0x47   : > { %v505_v7 = vrot.slane %v3050_v42, 1  ;;  %v3419_v60 = vsel %vm494_vm0, %v496_v47, %v498_v41  ;;  %v510_v8 = vrot.slane %v3079_v50, 1  ;;  %v513_v36 = vrot.slane %v3104_v57, 1 }
  0x48   : > { %v515_v14 = vrot.slane %v3122_v62, 1  ;;  %v516_v20 = vrot.slane %v3126_v63, 1  ;;  %v518_v37 = vrot.slane %v3147_v2, 1  ;;  %v520_v42 = vrot.slane %v3151_v6, 1 }
  0x49   : > { %v523_v41 = vrot.slane %v3176_v39, 1  ;;  %v525_v47 = vrot.slane %v3194_v45, 1  ;;  %v528_v50 = vrot.slane %v3219_v52, 1  ;;  %v530_v56 = vrot.slane %v3223_v11, 1 }
  0x4a   : > { %v531_v57 = vrot.slane %v3244_v53, 1  ;;  %v502_v62 = vsel %vm494_vm0, %v500_v44, %v501_v3  ;;  %v533_v2 = vrot.slane %v3248_v12, 1  ;;  %v535_v6 = vrot.slane %v3269_v18, 1 }
  0x4b   : > { %v504_v39 = vsel %vm494_vm0, %v501_v3, %v503_v10  ;;  %v507_v45 = vsel %vm494_vm0, %v505_v7, %v506_v40  ;;  %v512_v52 = vsel %vm494_vm0, %v510_v8, %v511_v30  ;;  %v514_v11 = vsel %vm494_vm0, %v511_v30, %v513_v36 }
  0x4c   : > { %v517_v53 = vsel %vm494_vm0, %v515_v14, %v516_v20  ;;  %v519_v44 = vsel %vm494_vm0, %v516_v20, %v518_v37  ;;  %v522_v12 = vsel %vm494_vm0, %v520_v42, %v521_v43  ;;  %v524_v18 = vsel %vm494_vm0, %v521_v43, %v523_v41 }
  0x4d   : > { %v527_v63 = vsel %vm494_vm0, %v525_v47, %v526_v49  ;;  %v529_v3 = vsel %vm494_vm0, %v526_v49, %v528_v50  ;;  %v532_v10 = vsel %vm494_vm0, %v530_v56, %v531_v57  ;;  %v534_v35 = vsel %vm494_vm0, %v531_v57, %v533_v2 }
  0x4e   : > { %v537_v40 = vsel %vm494_vm0, %v535_v6, %v536_v32  ;;  %v540_v7 = vrot.slane %v3298_v1, 1  ;;  %v541_v20 = vrot.slane %v3316_v19, 1  ;;  %v543_v8 = vrot.slane %v3320_v4, 1 }
  0x4f   : > { %v545_v30 = vrot.slane %v3331_v46, 1  ;;  %v546_v36 = vrot.slane %v3335_v58, 1  ;;  %v548_v14 = vrot.slane %v3339_v17, 1  ;;  %v550_v37 = vrot.slane %v3346_v48, 1 }
  0x50   : > { %v551_v42 = vrot.slane %v3350_v5, 1  ;;  %v553_v43 = vrot.slane %v3354_v38, 1  ;;  %v555_v59 = vrot.slane %v3358_v31, 1  ;;  %v556_v1 = vrot.slane %v3365_v54, 1 }
  0x51   : > { %v558_v19 = vrot.slane %v3369_v26, 1  ;;  %v560_v4 = vrot.slane %v3375_v33, 1  ;;  %v561_v46 = vrot.slane %v3379_v13, 1  ;;  %v563_v58 = vrot.slane %v3383_v16, 1 }
  0x52   : > { %v565_v17 = vrot.slane %v3388_v61, 1  ;;  %v566_v48 = vrot.slane %v3392_v23, 1  ;;  %v539_v5 = vsel %vm494_vm0, %v536_v32, %v538_v0  ;;  %v568_v38 = vrot.slane %v3396_v24, 1 }
  0x53   : > { %v570_v31 = vrot.slane %v3400_v25, 1  ;;  %v571_v54 = vrot.slane %v3404_v55, 1  ;;  %v542_v26 = vsel %vm494_vm0, %v540_v7, %v541_v20  ;;  %v544_v33 = vsel %vm494_vm0, %v541_v20, %v543_v8  ;;  %v6610_v20 = vld [vmem:[#allocation30_spill] sm:$0xff] }
  0x54   : > { %v547_v13 = vsel %vm494_vm0, %v545_v30, %v546_v36  ;;  %v573_v16 = vrot.slane %v3408_v29, 1  ;;  %v549_v61 = vsel %vm494_vm0, %v546_v36, %v548_v14  ;;  %v552_v23 = vsel %vm494_vm0, %v550_v37, %v551_v42 }
  0x55   : > { %v554_v41 = vsel %vm494_vm0, %v551_v42, %v553_v43  ;;  %v557_v24 = vsel %vm494_vm0, %v555_v59, %v556_v1  ;;  %v559_v25 = vsel %vm494_vm0, %v556_v1, %v558_v19  ;;  %v562_v55 = vsel %vm494_vm0, %v560_v4, %v561_v46 }
  0x56   : > { %v564_v47 = vsel %vm494_vm0, %v561_v46, %v563_v58  ;;  %v567_v49 = vsel %vm494_vm0, %v565_v17, %v566_v48  ;;  %v569_v50 = vsel %vm494_vm0, %v566_v48, %v568_v38  ;;  %v572_v29 = vsel %vm494_vm0, %v570_v31, %v571_v54  ;;  %v6644_v58 = vld [vmem:[#allocation69_spill] sm:$0xff]  ;;  %v6648_v38 = vld [vmem:[#allocation74_spill] sm:$0xff] }
  0x57   : > { %v3492_v56 = vadd.f32 %v3413_v9, %v2954_v15  ;;  %v3496_v57 = vadd.f32 %v3419_v60, %v2973_v21  ;;  %v574_v2 = vsel %vm494_vm0, %v571_v54, %v573_v16  ;;  %v3500_v6 = vadd.f32 %v502_v62, %v2977_v22  ;;  %v6608_v9 = vld [vmem:[#allocation27_spill] sm:$0xff]  ;;  %v6646_v48 = vld [vmem:[#allocation73_spill] sm:$0xff]  ;;  %v6650_v54 = vld [vmem:[#allocation78_spill] sm:$0xff] }
  0x58   : > { %v3503_v32 = vadd.f32 %v504_v39, %v2995_v27  ;;  %v3506_v0 = vadd.f32 %v507_v45, %v2999_v28  ;;  %v3509_v7 = vadd.f32 %v509_v51, %v3020_v34  ;;  %v3512_v15 = vadd.f32 %v512_v52, %v6608_v9  ;;  %v6612_v60 = vld [vmem:[#allocation31_spill] sm:$0xff]  ;;  %v6616_v27 = vld [vmem:[#allocation36_spill] sm:$0xff]  ;;  %v6620_v34 = vld [vmem:[#allocation41_spill] sm:$0xff] }
  0x59   : > { %v3515_v21 = vadd.f32 %v514_v11, %v6610_v20  ;;  %v3518_v8 = vadd.f32 %v517_v53, %v6612_v60  ;;  %v6614_v22 = vld [vmem:[#allocation35_spill] sm:$0xff]  ;;  %v3524_v39 = vadd.f32 %v522_v12, %v6616_v27  ;;  %v6618_v28 = vld [vmem:[#allocation40_spill] sm:$0xff]  ;;  %v3530_v51 = vadd.f32 %v527_v63, %v6620_v34  ;;  %v6624_v11 = vld [vmem:[#allocation45_spill] sm:$0xff] }
  0x5a   : > { %6609 = vst [vmem:[#allocation27_spill] sm:$0xff] %v3512_v15  ;;  %v3521_v62 = vadd.f32 %v519_v44, %v6614_v22  ;;  %v3527_v45 = vadd.f32 %v524_v18, %v6618_v28  ;;  %v6622_v52 = vld [vmem:[#allocation44_spill] sm:$0xff]  ;;  %v3536_v36 = vadd.f32 %v532_v10, %v6624_v11  ;;  %v6626_v53 = vld [vmem:[#allocation49_spill] sm:$0xff]  ;;  %v6628_v44 = vld [vmem:[#allocation50_spill] sm:$0xff]  ;;  %v3566_v17 = vadd.f32 %v557_v24, %v6644_v58 }
  0x5b   : > { %6611 = vst [vmem:[#allocation30_spill] sm:$0xff] %v3515_v21  ;;  %6613 = vst [vmem:[#allocation31_spill] sm:$0xff] %v3518_v8  ;;  %v3533_v30 = vadd.f32 %v529_v3, %v6622_v52  ;;  %v3539_v14 = vadd.f32 %v534_v35, %v6626_v53  ;;  %v3542_v37 = vadd.f32 %v537_v40, %v6628_v44  ;;  %v6630_v12 = vld [vmem:[#allocation54_spill] sm:$0xff]  ;;  %v6632_v18 = vld [vmem:[#allocation55_spill] sm:$0xff] }
  0x5c   : > { %6615 = vst [vmem:[#allocation35_spill] sm:$0xff] %v3521_v62  ;;  %6617 = vst [vmem:[#allocation36_spill] sm:$0xff] %v3524_v39  ;;  %v3545_v42 = vadd.f32 %v539_v5, %v6630_v12  ;;  %v3548_v43 = vadd.f32 %v542_v26, %v6632_v18  ;;  %v6634_v63 = vld [vmem:[#allocation58_spill] sm:$0xff]  ;;  %v6636_v3 = vld [vmem:[#allocation59_spill] sm:$0xff]  ;;  %v3569_v5 = vadd.f32 %v559_v25, %v6646_v48 }
  0x5d   : > { %6619 = vst [vmem:[#allocation40_spill] sm:$0xff] %v3527_v45  ;;  %6621 = vst [vmem:[#allocation41_spill] sm:$0xff] %v3530_v51  ;;  %v3551_v59 = vadd.f32 %v544_v33, %v6634_v63  ;;  %v3554_v1 = vadd.f32 %v547_v13, %v6636_v3  ;;  %v6638_v10 = vld [vmem:[#allocation63_spill] sm:$0xff]  ;;  %v6640_v35 = vld [vmem:[#allocation64_spill] sm:$0xff]  ;;  %v3572_v31 = vadd.f32 %v562_v55, %v6648_v38 }
  0x5e   : > { %6623 = vst [vmem:[#allocation44_spill] sm:$0xff] %v3533_v30  ;;  %6625 = vst [vmem:[#allocation45_spill] sm:$0xff] %v3536_v36  ;;  %v3557_v19 = vadd.f32 %v549_v61, %v6638_v10  ;;  %v3560_v4 = vadd.f32 %v552_v23, %v6640_v35  ;;  %v6642_v40 = vld [vmem:[#allocation68_spill] sm:$0xff]  ;;  %v3575_v26 = vadd.f32 %v564_v47, %v6650_v54  ;;  %v6652_v33 = vld [vmem:[#allocation79_spill] sm:$0xff] }
  0x5f   : > { %6627 = vst [vmem:[#allocation49_spill] sm:$0xff] %v3539_v14  ;;  %6629 = vst [vmem:[#allocation50_spill] sm:$0xff] %v3542_v37  ;;  %v3563_v46 = vadd.f32 %v554_v41, %v6642_v40  ;;  %v3578_v13 = vadd.f32 %v567_v49, %v6652_v33  ;;  %v6654_v16 = vld [vmem:[#allocation82_spill] sm:$0xff]  ;;  %v6656_v23 = vld [vmem:[#allocation83_spill] sm:$0xff] }
  0x60   : > { %6631 = vst [vmem:[#allocation54_spill] sm:$0xff] %v3545_v42  ;;  %6633 = vst [vmem:[#allocation55_spill] sm:$0xff] %v3548_v43  ;;  %v3581_v61 = vadd.f32 %v569_v50, %v6654_v16  ;;  %v3584_v41 = vadd.f32 %v572_v29, %v6656_v23  ;;  %v6658_v24 = vld [vmem:[#allocation85_spill] sm:$0xff]  ;;  %v6660_v25 = vld [vmem:[#allocation11_spill] sm:$0xff] }
  0x61   : > { %6635 = vst [vmem:[#allocation58_spill] sm:$0xff] %v3551_v59  ;;  %6637 = vst [vmem:[#allocation59_spill] sm:$0xff] %v3554_v1  ;;  %v3587_v9 = vadd.f32 %v574_v2, %v6658_v24  ;;  %v6661_v20 = vld [vmem:[#allocation17_spill] sm:$0xff]  ;;  %v6662_v55 = vld [vmem:[#allocation12_spill] sm:$0xff] }
  0x62   : > { %6639 = vst [vmem:[#allocation63_spill] sm:$0xff] %v3557_v19  ;;  %6641 = vst [vmem:[#allocation64_spill] sm:$0xff] %v3560_v4  ;;  %v643_v60 = vmul.f32 %v6661_v20, %v6660_v25  ;;  %v644_v22 = vmul.f32 %v6661_v20, %v6662_v55  ;;  %v6663_v47 = vld [vmem:[#allocation13_spill] sm:$0xff]  ;;  %v6664_v49 = vld [vmem:[#allocation14_spill] sm:$0xff] }
  0x63   : > { %6643 = vst [vmem:[#allocation68_spill] sm:$0xff] %v3563_v46  ;;  %6645 = vst [vmem:[#allocation69_spill] sm:$0xff] %v3566_v17  ;;  %v645_v27 = vmul.f32 %v6661_v20, %v6663_v47  ;;  %v3597_v28 = vmul.f32 %v6661_v20, %v6664_v49  ;;  %v6665_v50 = vld [vmem:[#allocation15_spill] sm:$0xff]  ;;  %v6666_v34 = vld [vmem:[#allocation16_spill] sm:$0xff] }
  0x64   : > { %6647 = vst [vmem:[#allocation73_spill] sm:$0xff] %v3569_v5  ;;  %6649 = vst [vmem:[#allocation74_spill] sm:$0xff] %v3572_v31  ;;  %v3601_v29 = vmul.f32 %v6661_v20, %v6665_v50  ;;  %v3605_v2 = vmul.f32 %v6661_v20, %v6666_v34  ;;  %v6667_v52 = vld [vmem:[#allocation20_spill] sm:$0xff]  ;;  %v6668_v53 = vld [vmem:[#allocation21_spill] sm:$0xff]  ;;  %v740_v43 = vrot.slane %v643_v60, 2  ;;  %v741_v42 = vrot.slane %v644_v22, 2 }
  0x65   : > { %6651 = vst [vmem:[#allocation78_spill] sm:$0xff] %v3575_v26  ;;  %6653 = vst [vmem:[#allocation79_spill] sm:$0xff] %v3578_v13  ;;  %v3609_v11 = vmul.f32 %v6661_v20, %v6667_v52  ;;  %v3613_v44 = vmul.f32 %v6661_v20, %v6668_v53  ;;  %v6669_v12 = vld [vmem:[#allocation22_spill] sm:$0xff]  ;;  %v6670_v63 = vld [vmem:[#allocation23_spill] sm:$0xff]  ;;  %v745_v62 = vrot.slane %v3597_v28, 2 }
  0x66   : > { %6655 = vst [vmem:[#allocation82_spill] sm:$0xff] %v3581_v61  ;;  %6657 = vst [vmem:[#allocation83_spill] sm:$0xff] %v3584_v41  ;;  %v3617_v18 = vmul.f32 %v6661_v20, %v6669_v12  ;;  %v3621_v3 = vmul.f32 %v6661_v20, %v6670_v63  ;;  %v6671_v10 = vld [vmem:[#allocation24_spill] sm:$0xff]  ;;  %v6672_v40 = vld [vmem:[#allocation25_spill] sm:$0xff]  ;;  %v3778_v8 = vsel %vm739_vm1, %v740_v43, %v741_v42 }
  0x67   : > { %6659 = vst [vmem:[#allocation85_spill] sm:$0xff] %v3587_v9  ;;  %v3625_v35 = vmul.f32 %v6661_v20, %v6671_v10  ;;  %v3629_v58 = vmul.f32 %v6661_v20, %v6672_v40  ;;  %v6673_v48 = vld [vmem:[#allocation26_spill] sm:$0xff]  ;;  %v6674_v54 = vld [vmem:[#allocation28_spill] sm:$0xff]  ;;  %v6676_v24 = vld [vmem:[#allocation29_spill] sm:$0xff]  ;;  %v751_v21 = vrot.slane %v3613_v44, 2 }
  0x68   : > { %v3633_v38 = vmul.f32 %v6661_v20, %v6673_v48  ;;  %v3637_v33 = vmul.f32 %v6661_v20, %v6674_v54  ;;  %v6675_v16 = vld [vmem:[#allocation32_spill] sm:$0xff]  ;;  %v3645_v25 = vmul.f32 %v6661_v20, %v6676_v24  ;;  %v6677_v55 = vld [vmem:[#allocation33_spill] sm:$0xff]  ;;  %v6679_v34 = vld [vmem:[#allocation34_spill] sm:$0xff]  ;;  %v753_v15 = vrot.slane %v3617_v18, 2 }
  0x69   : > { %v3641_v23 = vmul.f32 %v6661_v20, %v6675_v16  ;;  %v3649_v47 = vmul.f32 %v6661_v20, %v6677_v55  ;;  %v6678_v40 = vld [vmem:[#allocation37_spill] sm:$0xff]  ;;  %v3657_v54 = vmul.f32 %v6661_v20, %v6679_v34  ;;  %v6680_v48 = vld [vmem:[#allocation38_spill] sm:$0xff]  ;;  %v6682_v63 = vld [vmem:[#allocation39_spill] sm:$0xff]  ;;  %v756_v28 = vrot.slane %v3625_v35, 2 }
  0x6a   : > { %v3653_v12 = vmul.f32 %v6661_v20, %v6678_v40  ;;  %v3661_v16 = vmul.f32 %v6661_v20, %v6680_v48  ;;  %v6681_v10 = vld [vmem:[#allocation46_spill] sm:$0xff]  ;;  %v3669_v55 = vmul.f32 %v6661_v20, %v6682_v63  ;;  %v6684_v52 = vld [vmem:[#allocation51_spill] sm:$0xff]  ;;  %v6687_v9 = vld [vmem:[#allocation60_spill] sm:$0xff]  ;;  %v760_v43 = vrot.slane %v3633_v38, 2 }
  0x6b   : > { %v3665_v24 = vmul.f32 %v6661_v20, %v6681_v10  ;;  %v6683_v53 = vld [vmem:[#allocation42_spill] sm:$0xff]  ;;  %v3677_v34 = vmul.f32 %v6661_v20, %v6684_v52  ;;  %v6685_v50 = vld [vmem:[#allocation43_spill] sm:$0xff]  ;;  %v3689_v63 = vmul.f32 %v6661_v20, %v6687_v9  ;;  %v6688_v41 = vld [vmem:[#allocation48_spill] sm:$0xff]  ;;  %v766_v44 = vrot.slane %v3649_v47, 2 }
  0x6c   : > { %v3673_v40 = vmul.f32 %v6661_v20, %v6683_v53  ;;  %v3681_v48 = vmul.f32 %v6661_v20, %v6685_v50  ;;  %v6686_v49 = vld [vmem:[#allocation47_spill] sm:$0xff]  ;;  %v3693_v53 = vmul.f32 %v6661_v20, %v6688_v41  ;;  %v6689_v61 = vld [vmem:[#allocation52_spill] sm:$0xff]  ;;  %v6690_v13 = vld [vmem:[#allocation65_spill] sm:$0xff]  ;;  %v771_v18 = vrot.slane %v3661_v16, 2 }
  0x6d   : > { %v3685_v10 = vmul.f32 %v6661_v20, %v6686_v49  ;;  %v3697_v52 = vmul.f32 %v6661_v20, %v6689_v61  ;;  %v3701_v50 = vmul.f32 %v6661_v20, %v6690_v13  ;;  %v6691_v26 = vld [vmem:[#allocation53_spill] sm:$0xff]  ;;  %v6692_v31 = vld [vmem:[#allocation56_spill] sm:$0xff]  ;;  %v6693_v5 = vld [vmem:[#allocation70_spill] sm:$0xff]  ;;  %v775_v35 = vrot.slane %v3669_v55, 2 }
  0x6e   : > { %v3705_v49 = vmul.f32 %v6661_v20, %v6691_v26  ;;  %v3709_v9 = vmul.f32 %v6661_v20, %v6692_v31  ;;  %v3713_v41 = vmul.f32 %v6661_v20, %v6693_v5  ;;  %v6694_v17 = vld [vmem:[#allocation57_spill] sm:$0xff]  ;;  %v6696_v4 = vld [vmem:[#allocation75_spill] sm:$0xff]  ;;  %v6697_v19 = vld [vmem:[#allocation62_spill] sm:$0xff]  ;;  %v754_v16 = vsel %vm739_vm1, %v751_v21, %v753_v15 }
  0x6f   : > { %v3717_v61 = vmul.f32 %v6661_v20, %v6694_v17  ;;  %v6695_v46 = vld [vmem:[#allocation61_spill] sm:$0xff]  ;;  %v3725_v26 = vmul.f32 %v6661_v20, %v6696_v4  ;;  %v3729_v31 = vmul.f32 %v6661_v20, %v6697_v19  ;;  %v6698_v1 = vld [vmem:[#allocation66_spill] sm:$0xff]  ;;  %v6699_v59 = vld [vmem:[#allocation80_spill] sm:$0xff]  ;;  %v783_v47 = vrot.slane %v3689_v63, 2 }
  0x70   : > { %v3721_v13 = vmul.f32 %v6661_v20, %v6695_v46  ;;  %v3733_v5 = vmul.f32 %v6661_v20, %v6698_v1  ;;  %v3737_v17 = vmul.f32 %v6661_v20, %v6699_v59  ;;  %v6700_v46 = vld [vmem:[#allocation67_spill] sm:$0xff]  ;;  %v6702_v19 = vld [vmem:[#allocation84_spill] sm:$0xff]  ;;  %v743_v1 = vrot.slane %v645_v27, 2  ;;  %v6705_v22 = vld [vmem:[#allocation86_spill] sm:$0xff] }
  0x71   : > { %v3741_v37 = vmul.f32 %v6661_v20, %v6700_v46  ;;  %v6701_v4 = vld [vmem:[#allocation71_spill] sm:$0xff]  ;;  %v3749_v36 = vmul.f32 %v6661_v20, %v6702_v19  ;;  %v6703_v30 = vld [vmem:[#allocation72_spill] sm:$0xff]  ;;  %v3761_v46 = vmul.f32 %v6661_v20, %v6705_v22  ;;  %v6706_v45 = vld [vmem:[#allocation77_spill] sm:$0xff]  ;;  %v748_v22 = vrot.slane %v3605_v2, 2 }
  0x72   : > { %v3745_v14 = vmul.f32 %v6661_v20, %v6701_v4  ;;  %v3753_v51 = vmul.f32 %v6661_v20, %v6703_v30  ;;  %v6704_v59 = vld [vmem:[#allocation76_spill] sm:$0xff]  ;;  %v3765_v4 = vmul.f32 %v6661_v20, %v6706_v45  ;;  %v6707_v39 = vld [vmem:[#allocation81_spill] sm:$0xff]  ;;  %v6708_v27 = vld [vmem:[#allocation87_spill] sm:$0xff]  ;;  %v750_v45 = vrot.slane %v3609_v11, 2 }
  0x73   : > { %v3757_v60 = vmul.f32 %v6661_v20, %v6704_v59  ;;  %v3769_v19 = vmul.f32 %v6661_v20, %v6707_v39  ;;  %v3773_v30 = vmul.f32 %v6661_v20, %v6708_v27  ;;  %v746_v59 = vrot.slane %v3601_v29, 2 }
  0x74   : > { %v3784_v39 = vsel %vm739_vm1, %v741_v42, %v743_v1  ;;  %v755_v20 = vrot.slane %v3621_v3, 2  ;;  %v758_v29 = vrot.slane %v3629_v58, 2  ;;  %v761_v27 = vrot.slane %v3637_v33, 2 }
  0x75   : > { %v763_v2 = vrot.slane %v3641_v23, 2  ;;  %v765_v11 = vrot.slane %v3645_v25, 2  ;;  %v768_v42 = vrot.slane %v3653_v12, 2  ;;  %v770_v1 = vrot.slane %v3657_v54, 2 }
  0x76   : > { %v773_v3 = vrot.slane %v3665_v24, 2  ;;  %v776_v58 = vrot.slane %v3673_v40, 2  ;;  %v747_v38 = vsel %vm739_vm1, %v745_v62, %v746_v59  ;;  %v778_v33 = vrot.slane %v3677_v34, 2 }
  0x77   : > { %v780_v23 = vrot.slane %v3681_v48, 2  ;;  %v781_v25 = vrot.slane %v3685_v10, 2  ;;  %v749_v12 = vsel %vm739_vm1, %v746_v59, %v748_v22  ;;  %v752_v54 = vsel %vm739_vm1, %v750_v45, %v751_v21 }
  0x78   : > { %v757_v24 = vsel %vm739_vm1, %v755_v20, %v756_v28  ;;  %v759_v55 = vsel %vm739_vm1, %v756_v28, %v758_v29  ;;  %v762_v40 = vsel %vm739_vm1, %v760_v43, %v761_v27  ;;  %v764_v62 = vsel %vm739_vm1, %v761_v27, %v763_v2 }
  0x79   : > { %v767_v34 = vsel %vm739_vm1, %v765_v11, %v766_v44  ;;  %v769_v48 = vsel %vm739_vm1, %v766_v44, %v768_v42  ;;  %v772_v10 = vsel %vm739_vm1, %v770_v1, %v771_v18  ;;  %v774_v59 = vsel %vm739_vm1, %v771_v18, %v773_v3 }
  0x7a   : > { %v777_v45 = vsel %vm739_vm1, %v775_v35, %v776_v58  ;;  %v779_v15 = vsel %vm739_vm1, %v776_v58, %v778_v33  ;;  %v782_v21 = vsel %vm739_vm1, %v780_v23, %v781_v25  ;;  %v785_v22 = vrot.slane %v3693_v53, 2 }
  0x7b   : > { %v786_v27 = vrot.slane %v3697_v52, 2  ;;  %v788_v20 = vrot.slane %v3701_v50, 2  ;;  %v790_v28 = vrot.slane %v3705_v49, 2  ;;  %v791_v29 = vrot.slane %v3709_v9, 2 }
  0x7c   : > { %v793_v43 = vrot.slane %v3713_v41, 2  ;;  %v795_v2 = vrot.slane %v3717_v61, 2  ;;  %v796_v11 = vrot.slane %v3721_v13, 2  ;;  %v798_v44 = vrot.slane %v3725_v26, 2 }
  0x7d   : > { %v800_v63 = vrot.slane %v3729_v31, 2  ;;  %v801_v53 = vrot.slane %v3733_v5, 2  ;;  %v803_v52 = vrot.slane %v3737_v17, 2  ;;  %v805_v50 = vrot.slane %v3741_v37, 2 }
  0x7e   : > { %v806_v49 = vrot.slane %v3745_v14, 2  ;;  %v808_v9 = vrot.slane %v3749_v36, 2  ;;  %v810_v41 = vrot.slane %v3753_v51, 2  ;;  %v811_v61 = vrot.slane %v3757_v60, 2 }
  0x7f   : > { %v784_v13 = vsel %vm739_vm1, %v781_v25, %v783_v47  ;;  %v813_v26 = vrot.slane %v3761_v46, 2  ;;  %v815_v31 = vrot.slane %v3765_v4, 2  ;;  %v816_v5 = vrot.slane %v3769_v19, 2 }
  0x80   : > { %v787_v17 = vsel %vm739_vm1, %v785_v22, %v786_v27  ;;  %v789_v37 = vsel %vm739_vm1, %v786_v27, %v788_v20  ;;  %v792_v14 = vsel %vm739_vm1, %v790_v28, %v791_v29  ;;  %v818_v36 = vrot.slane %v3773_v30, 2  ;;  %v6710_v27 = vld [vmem:[#allocation30_spill] sm:$0xff] }
  0x81   : > { %v794_v51 = vsel %vm739_vm1, %v791_v29, %v793_v43  ;;  %v797_v60 = vsel %vm739_vm1, %v795_v2, %v796_v11  ;;  %v799_v42 = vsel %vm739_vm1, %v796_v11, %v798_v44  ;;  %v802_v46 = vsel %vm739_vm1, %v800_v63, %v801_v53 }
  0x82   : > { %v804_v4 = vsel %vm739_vm1, %v801_v53, %v803_v52  ;;  %v807_v19 = vsel %vm739_vm1, %v805_v50, %v806_v49  ;;  %v809_v1 = vsel %vm739_vm1, %v806_v49, %v808_v9  ;;  %v812_v18 = vsel %vm739_vm1, %v810_v41, %v811_v61  ;;  %v6727_v9 = vld [vmem:[#allocation69_spill] sm:$0xff] }
  0x83   : > { %v814_v3 = vsel %vm739_vm1, %v811_v61, %v813_v26  ;;  %v817_v30 = vsel %vm739_vm1, %v815_v31, %v816_v5  ;;  %v3857_v35 = vadd.f32 %v3778_v8, %v3492_v56  ;;  %v3861_v58 = vadd.f32 %v3784_v39, %v3496_v57  ;;  %v6709_v56 = vld [vmem:[#allocation27_spill] sm:$0xff]  ;;  %v6729_v61 = vld [vmem:[#allocation73_spill] sm:$0xff]  ;;  %v6731_v26 = vld [vmem:[#allocation74_spill] sm:$0xff] }
  0x84   : > { %v819_v33 = vsel %vm739_vm1, %v816_v5, %v818_v36  ;;  %v3865_v23 = vadd.f32 %v747_v38, %v3500_v6  ;;  %v3868_v25 = vadd.f32 %v749_v12, %v3503_v32  ;;  %v3871_v47 = vadd.f32 %v752_v54, %v3506_v0  ;;  %v6711_v39 = vld [vmem:[#allocation31_spill] sm:$0xff]  ;;  %v6713_v32 = vld [vmem:[#allocation36_spill] sm:$0xff]  ;;  %v6733_v5 = vld [vmem:[#allocation78_spill] sm:$0xff] }
  0x85   : > { %v3874_v22 = vadd.f32 %v754_v16, %v3509_v7  ;;  %v3877_v8 = vadd.f32 %v757_v24, %v6709_v56  ;;  %v3880_v57 = vadd.f32 %v759_v55, %v6710_v27  ;;  %v3883_v20 = vadd.f32 %v762_v40, %v6711_v39  ;;  %v6712_v6 = vld [vmem:[#allocation35_spill] sm:$0xff]  ;;  %v6714_v0 = vld [vmem:[#allocation40_spill] sm:$0xff]  ;;  %v6715_v7 = vld [vmem:[#allocation41_spill] sm:$0xff] }
  0x86   : > { %v3886_v38 = vadd.f32 %v764_v62, %v6712_v6  ;;  %v3889_v12 = vadd.f32 %v767_v34, %v6713_v32  ;;  %v3892_v54 = vadd.f32 %v769_v48, %v6714_v0  ;;  %v3895_v16 = vadd.f32 %v772_v10, %v6715_v7  ;;  %v6716_v24 = vld [vmem:[#allocation44_spill] sm:$0xff]  ;;  %v6717_v55 = vld [vmem:[#allocation45_spill] sm:$0xff]  ;;  %v6719_v62 = vld [vmem:[#allocation50_spill] sm:$0xff] }
  0x87   : > { %v3898_v28 = vadd.f32 %v774_v59, %v6716_v24  ;;  %v3901_v29 = vadd.f32 %v777_v45, %v6717_v55  ;;  %v6718_v40 = vld [vmem:[#allocation49_spill] sm:$0xff]  ;;  %v3907_v2 = vadd.f32 %v782_v21, %v6719_v62  ;;  %v6720_v34 = vld [vmem:[#allocation54_spill] sm:$0xff]  ;;  %v6721_v48 = vld [vmem:[#allocation55_spill] sm:$0xff]  ;;  %v3931_v41 = vadd.f32 %v802_v46, %v6727_v9 }
  0x88   : > { %v3904_v43 = vadd.f32 %v779_v15, %v6718_v40  ;;  %v3910_v11 = vadd.f32 %v784_v13, %v6720_v34  ;;  %v3913_v44 = vadd.f32 %v787_v17, %v6721_v48  ;;  %v6722_v10 = vld [vmem:[#allocation58_spill] sm:$0xff]  ;;  %v6723_v59 = vld [vmem:[#allocation59_spill] sm:$0xff]  ;;  %v6725_v15 = vld [vmem:[#allocation64_spill] sm:$0xff]  ;;  %v3934_v13 = vadd.f32 %v804_v4, %v6729_v61 }
  0x89   : > { %v3916_v63 = vadd.f32 %v789_v37, %v6722_v10  ;;  %v3919_v53 = vadd.f32 %v792_v14, %v6723_v59  ;;  %v6724_v45 = vld [vmem:[#allocation63_spill] sm:$0xff]  ;;  %v3925_v50 = vadd.f32 %v797_v60, %v6725_v15  ;;  %v6726_v21 = vld [vmem:[#allocation68_spill] sm:$0xff]  ;;  %6728 = vst [vmem:[#allocation11_spill] sm:$0xff] %v3931_v41  ;;  %v3937_v31 = vadd.f32 %v807_v19, %v6731_v26  ;;  %v6737_v36 = vld [vmem:[#allocation82_spill] sm:$0xff] }
  0x8a   : > { %v3922_v52 = vadd.f32 %v794_v51, %v6724_v45  ;;  %v3928_v49 = vadd.f32 %v799_v42, %v6726_v21  ;;  %6730 = vst [vmem:[#allocation17_spill] sm:$0xff] %v3934_v13  ;;  %v3940_v17 = vadd.f32 %v809_v1, %v6733_v5  ;;  %v6735_v37 = vld [vmem:[#allocation79_spill] sm:$0xff]  ;;  %v3946_v51 = vadd.f32 %v814_v3, %v6737_v36  ;;  %v6741_v46 = vld [vmem:[#allocation85_spill] sm:$0xff]  ;;  %v6743_v4 = vld [vmem:[#allocation14_spill] sm:$0xff] }
  0x8b   : > { %6732 = vst [vmem:[#allocation12_spill] sm:$0xff] %v3937_v31  ;;  %v3943_v14 = vadd.f32 %v812_v18, %v6735_v37  ;;  %v6739_v60 = vld [vmem:[#allocation83_spill] sm:$0xff]  ;;  %v3952_v56 = vadd.f32 %v819_v33, %v6741_v46  ;;  %v6744_v27 = vld [vmem:[#allocation18_spill] sm:$0xff]  ;;  %v6746_v1 = vld [vmem:[#allocation20_spill] sm:$0xff] }
  0x8c   : > { %6734 = vst [vmem:[#allocation13_spill] sm:$0xff] %v3940_v17  ;;  %6738 = vst [vmem:[#allocation30_spill] sm:$0xff] %v3946_v51  ;;  %v3949_v42 = vadd.f32 %v817_v30, %v6739_v60  ;;  %v888_v39 = vmul.f32 %v6744_v27, %v6743_v4  ;;  %v6745_v19 = vld [vmem:[#allocation15_spill] sm:$0xff]  ;;  %v890_v18 = vmul.f32 %v6744_v27, %v6746_v1  ;;  %v6747_v32 = vld [vmem:[#allocation21_spill] sm:$0xff] }
  0x8d   : > { %6736 = vst [vmem:[#allocation27_spill] sm:$0xff] %v3943_v14  ;;  %6742 = vst [vmem:[#allocation35_spill] sm:$0xff] %v3952_v56  ;;  %v889_v6 = vmul.f32 %v6744_v27, %v6745_v19  ;;  %v891_v3 = vmul.f32 %v6744_v27, %v6747_v32  ;;  %v6748_v0 = vld [vmem:[#allocation23_spill] sm:$0xff]  ;;  %v6749_v7 = vld [vmem:[#allocation24_spill] sm:$0xff] }
  0x8e   : > { %6740 = vst [vmem:[#allocation31_spill] sm:$0xff] %v3949_v42  ;;  %v892_v30 = vmul.f32 %v6744_v27, %v6748_v0  ;;  %v893_v33 = vmul.f32 %v6744_v27, %v6749_v7  ;;  %v6750_v24 = vld [vmem:[#allocation26_spill] sm:$0xff]  ;;  %v6751_v40 = vld [vmem:[#allocation28_spill] sm:$0xff]  ;;  %v6752_v34 = vld [vmem:[#allocation29_spill] sm:$0xff] }
  0x8f   : > { %v894_v55 = vmul.f32 %v6744_v27, %v6750_v24  ;;  %v895_v62 = vmul.f32 %v6744_v27, %v6751_v40  ;;  %v896_v48 = vmul.f32 %v6744_v27, %v6752_v34  ;;  %v6753_v10 = vld [vmem:[#allocation33_spill] sm:$0xff]  ;;  %v6754_v45 = vld [vmem:[#allocation34_spill] sm:$0xff]  ;;  %v6756_v61 = vld [vmem:[#allocation39_spill] sm:$0xff] }
  0x90   : > { %v897_v59 = vmul.f32 %v6744_v27, %v6753_v10  ;;  %v898_v15 = vmul.f32 %v6744_v27, %v6754_v45  ;;  %v6755_v21 = vld [vmem:[#allocation38_spill] sm:$0xff]  ;;  %v900_v26 = vmul.f32 %v6744_v27, %v6756_v61  ;;  %v6758_v36 = vld [vmem:[#allocation43_spill] sm:$0xff]  ;;  %v6760_v10 = vld [vmem:[#allocation48_spill] sm:$0xff] }
  0x91   : > { %v899_v9 = vmul.f32 %v6744_v27, %v6755_v21  ;;  %v6757_v5 = vld [vmem:[#allocation42_spill] sm:$0xff]  ;;  %v902_v60 = vmul.f32 %v6744_v27, %v6758_v36  ;;  %v6759_v46 = vld [vmem:[#allocation47_spill] sm:$0xff]  ;;  %v904_v40 = vmul.f32 %v6744_v27, %v6760_v10  ;;  %v6762_v24 = vld [vmem:[#allocation52_spill] sm:$0xff] }
  0x92   : > { %v901_v37 = vmul.f32 %v6744_v27, %v6757_v5  ;;  %v903_v34 = vmul.f32 %v6744_v27, %v6759_v46  ;;  %v3989_v45 = vld [vmem:[%s2921_s9 + $0x180] sm:$0xff]  ;;  %v905_v21 = vmul.f32 %v6744_v27, %v6762_v24  ;;  %v6763_v7 = vld [vmem:[#allocation53_spill] sm:$0xff]  ;;  %v6767_v19 = vld [vmem:[#allocation62_spill] sm:$0xff] }
  0x93   : > { %6761 = vst [vmem:[#allocation36_spill] sm:$0xff] %v3989_v45  ;;  %v906_v61 = vmul.f32 %v6744_v27, %v6763_v7  ;;  %v6764_v0 = vld [vmem:[#allocation56_spill] sm:$0xff]  ;;  %v6765_v32 = vld [vmem:[#allocation57_spill] sm:$0xff]  ;;  %v910_v10 = vmul.f32 %v6744_v27, %v6767_v19  ;;  %v6768_v4 = vld [vmem:[#allocation66_spill] sm:$0xff] }
  0x94   : > { %v907_v5 = vmul.f32 %v6744_v27, %v6764_v0  ;;  %v908_v36 = vmul.f32 %v6744_v27, %v6765_v32  ;;  %v6766_v1 = vld [vmem:[#allocation61_spill] sm:$0xff]  ;;  %v911_v56 = vmul.f32 %v6744_v27, %v6768_v4  ;;  %v6769_v42 = vld [vmem:[#allocation67_spill] sm:$0xff]  ;;  %v6772_v14 = vld [vmem:[#allocation72_spill] sm:$0xff] }
  0x95   : > { %v909_v46 = vmul.f32 %v6744_v27, %v6766_v1  ;;  %v912_v24 = vmul.f32 %v6744_v27, %v6769_v42  ;;  %v4008_v51 = vld [vmem:[%s2921_s9 + $0x188] sm:$0xff]  ;;  %v6771_v7 = vld [vmem:[#allocation71_spill] sm:$0xff]  ;;  %v914_v32 = vmul.f32 %v6744_v27, %v6772_v14  ;;  %v918_v42 = vmul.f32 %v6744_v27, %v3989_v45 }
  0x96   : > { %6770 = vst [vmem:[#allocation40_spill] sm:$0xff] %v4008_v51  ;;  %v913_v0 = vmul.f32 %v6744_v27, %v6771_v7  ;;  %v6773_v17 = vld [vmem:[#allocation76_spill] sm:$0xff]  ;;  %v6774_v31 = vld [vmem:[#allocation77_spill] sm:$0xff]  ;;  %v919_v41 = vmul.f32 %v6744_v27, %v4008_v51  ;;  %v4025_v7 = vadd.f32 %v888_v39, %v3857_v35  ;;  %v4028_v14 = vadd.f32 %v889_v6, %v3861_v58 }
  0x97   : > { %v915_v1 = vmul.f32 %v6744_v27, %v6773_v17  ;;  %v916_v19 = vmul.f32 %v6744_v27, %v6774_v31  ;;  %v6775_v13 = vld [vmem:[#allocation81_spill] sm:$0xff]  ;;  %v4031_v17 = vadd.f32 %v890_v18, %v3865_v23  ;;  %v4034_v31 = vadd.f32 %v891_v3, %v3868_v25 }
  0x98   : > { %v917_v4 = vmul.f32 %v6744_v27, %v6775_v13  ;;  %v4037_v13 = vadd.f32 %v892_v30, %v3871_v47  ;;  %v4040_v45 = vadd.f32 %v893_v33, %v3874_v22  ;;  %v4043_v27 = vadd.f32 %v894_v55, %v3877_v8 }
  0x99   : > { %v4046_v35 = vadd.f32 %v895_v62, %v3880_v57  ;;  %v4049_v58 = vadd.f32 %v896_v48, %v3883_v20  ;;  %v4052_v23 = vadd.f32 %v897_v59, %v3886_v38  ;;  %v4055_v25 = vadd.f32 %v898_v15, %v3889_v12  ;;  %v6816_v59 = vld [vmem:[#allocation22_spill] sm:$0xff]  ;;  %v6817_v15 = vld [vmem:[#allocation23_spill] sm:$0xff] }
  0x9a   : > { %6776 = vst [vmem:[#allocation41_spill] sm:$0xff] %v4043_v27  ;;  %v4058_v47 = vadd.f32 %v899_v9, %v3892_v54  ;;  %v4061_v22 = vadd.f32 %v900_v26, %v3895_v16  ;;  %v4064_v8 = vadd.f32 %v901_v37, %v3898_v28  ;;  %v4067_v57 = vadd.f32 %v902_v60, %v3901_v29  ;;  %v6818_v9 = vld [vmem:[#allocation24_spill] sm:$0xff]  ;;  %v6819_v26 = vld [vmem:[#allocation25_spill] sm:$0xff]  ;;  %v6820_v37 = vld [vmem:[#allocation26_spill] sm:$0xff] }
  0x9b   : > { %6777 = vst [vmem:[#allocation44_spill] sm:$0xff] %v4046_v35  ;;  %6778 = vst [vmem:[#allocation45_spill] sm:$0xff] %v4049_v58  ;;  %v4070_v20 = vadd.f32 %v903_v34, %v3904_v43  ;;  %v4073_v38 = vadd.f32 %v904_v40, %v3907_v2  ;;  %v4076_v12 = vadd.f32 %v905_v21, %v3910_v11  ;;  %v6794_v11 = vld [vmem:[#allocation11_spill] sm:$0xff]  ;;  %v6821_v60 = vld [vmem:[#allocation28_spill] sm:$0xff] }
  0x9c   : > { %6779 = vst [vmem:[#allocation49_spill] sm:$0xff] %v4052_v23  ;;  %6780 = vst [vmem:[#allocation50_spill] sm:$0xff] %v4055_v25  ;;  %v4079_v54 = vadd.f32 %v906_v61, %v3913_v44  ;;  %v4082_v16 = vadd.f32 %v907_v5, %v3916_v63  ;;  %v4085_v28 = vadd.f32 %v908_v36, %v3919_v53  ;;  %v6796_v44 = vld [vmem:[#allocation17_spill] sm:$0xff]  ;;  %v6798_v63 = vld [vmem:[#allocation12_spill] sm:$0xff] }
  0x9d   : > { %6781 = vst [vmem:[#allocation54_spill] sm:$0xff] %v4058_v47  ;;  %6782 = vst [vmem:[#allocation55_spill] sm:$0xff] %v4061_v22  ;;  %v4088_v29 = vadd.f32 %v909_v46, %v3922_v52  ;;  %v4091_v43 = vadd.f32 %v910_v10, %v3925_v50  ;;  %v4094_v2 = vadd.f32 %v911_v56, %v3928_v49  ;;  %v6800_v53 = vld [vmem:[#allocation13_spill] sm:$0xff]  ;;  %v6802_v52 = vld [vmem:[#allocation27_spill] sm:$0xff] }
  0x9e   : > { %6783 = vst [vmem:[#allocation58_spill] sm:$0xff] %v4064_v8  ;;  %6784 = vst [vmem:[#allocation59_spill] sm:$0xff] %v4067_v57  ;;  %v4097_v39 = vadd.f32 %v912_v24, %v6794_v11  ;;  %v4100_v6 = vadd.f32 %v913_v0, %v6796_v44  ;;  %v4103_v18 = vadd.f32 %v914_v32, %v6798_v63  ;;  %v6804_v50 = vld [vmem:[#allocation30_spill] sm:$0xff]  ;;  %v6806_v49 = vld [vmem:[#allocation31_spill] sm:$0xff] }
  0x9f   : > { %6785 = vst [vmem:[#allocation63_spill] sm:$0xff] %v4070_v20  ;;  %6786 = vst [vmem:[#allocation64_spill] sm:$0xff] %v4073_v38  ;;  %v4106_v3 = vadd.f32 %v915_v1, %v6800_v53  ;;  %v4109_v30 = vadd.f32 %v916_v19, %v6802_v52  ;;  %v4112_v33 = vadd.f32 %v917_v4, %v6804_v50  ;;  %v6808_v24 = vld [vmem:[#allocation35_spill] sm:$0xff]  ;;  %v6810_v0 = vld [vmem:[#allocation14_spill] sm:$0xff] }
  0xa0   : > { %6787 = vst [vmem:[#allocation68_spill] sm:$0xff] %v4076_v12  ;;  %6788 = vst [vmem:[#allocation69_spill] sm:$0xff] %v4079_v54  ;;  %v4115_v56 = vadd.f32 %v918_v42, %v6806_v49  ;;  %v4118_v55 = vadd.f32 %v919_v41, %v6808_v24  ;;  %v6811_v40 = vld [vmem:[#allocation19_spill] sm:$0xff]  ;;  %v6813_v1 = vld [vmem:[#allocation16_spill] sm:$0xff] }
  0xa1   : > { %6789 = vst [vmem:[#allocation73_spill] sm:$0xff] %v4082_v16  ;;  %6790 = vst [vmem:[#allocation74_spill] sm:$0xff] %v4085_v28  ;;  %v956_v62 = vmul.f32 %v6811_v40, %v6810_v0  ;;  %v6812_v32 = vld [vmem:[#allocation15_spill] sm:$0xff]  ;;  %v958_v48 = vmul.f32 %v6811_v40, %v6813_v1  ;;  %v6814_v19 = vld [vmem:[#allocation20_spill] sm:$0xff]  ;;  %v4136_v41 = vmul.f32 %v6811_v40, %v6816_v59 }
  0xa2   : > { %6791 = vst [vmem:[#allocation78_spill] sm:$0xff] %v4088_v29  ;;  %6792 = vst [vmem:[#allocation79_spill] sm:$0xff] %v4091_v43  ;;  %v957_v34 = vmul.f32 %v6811_v40, %v6812_v32  ;;  %v4128_v10 = vmul.f32 %v6811_v40, %v6814_v19  ;;  %v6815_v4 = vld [vmem:[#allocation21_spill] sm:$0xff]  ;;  %v4140_v21 = vmul.f32 %v6811_v40, %v6817_v15  ;;  %v6822_v11 = vld [vmem:[#allocation32_spill] sm:$0xff] }
  0xa3   : > { %6793 = vst [vmem:[#allocation82_spill] sm:$0xff] %v4094_v2  ;;  %6795 = vst [vmem:[#allocation83_spill] sm:$0xff] %v4097_v39  ;;  %v4132_v42 = vmul.f32 %v6811_v40, %v6815_v4  ;;  %v4144_v61 = vmul.f32 %v6811_v40, %v6818_v9  ;;  %v4148_v5 = vmul.f32 %v6811_v40, %v6819_v26  ;;  %v6823_v63 = vld [vmem:[#allocation29_spill] sm:$0xff]  ;;  %v6826_v0 = vld [vmem:[#allocation34_spill] sm:$0xff] }
  0xa4   : > { %6797 = vst [vmem:[#allocation85_spill] sm:$0xff] %v4100_v6  ;;  %6799 = vst [vmem:[#allocation18_spill] sm:$0xff] %v4103_v18  ;;  %v4152_v36 = vmul.f32 %v6811_v40, %v6820_v37  ;;  %v4156_v46 = vmul.f32 %v6811_v40, %v6821_v60  ;;  %v4160_v44 = vmul.f32 %v6811_v40, %v6822_v11  ;;  %v6824_v52 = vld [vmem:[#allocation33_spill] sm:$0xff]  ;;  %v6827_v1 = vld [vmem:[#allocation38_spill] sm:$0xff]  ;;  %v1053_v38 = vrot.slane %v957_v34, 1 }
  0xa5   : > { %6801 = vst [vmem:[#allocation11_spill] sm:$0xff] %v4106_v3  ;;  %6803 = vst [vmem:[#allocation17_spill] sm:$0xff] %v4109_v30  ;;  %v4164_v53 = vmul.f32 %v6811_v40, %v6823_v63  ;;  %v4168_v50 = vmul.f32 %v6811_v40, %v6824_v52  ;;  %v6825_v49 = vld [vmem:[#allocation37_spill] sm:$0xff]  ;;  %v4176_v32 = vmul.f32 %v6811_v40, %v6826_v0  ;;  %v6828_v4 = vld [vmem:[#allocation46_spill] sm:$0xff]  ;;  %v1063_v35 = vrot.slane %v4144_v61, 1 }
  0xa6   : > { %6805 = vst [vmem:[#allocation12_spill] sm:$0xff] %v4112_v33  ;;  %6807 = vst [vmem:[#allocation13_spill] sm:$0xff] %v4115_v56  ;;  %v4172_v24 = vmul.f32 %v6811_v40, %v6825_v49  ;;  %v4180_v19 = vmul.f32 %v6811_v40, %v6827_v1  ;;  %v4184_v59 = vmul.f32 %v6811_v40, %v6828_v4  ;;  %v6829_v15 = vld [vmem:[#allocation39_spill] sm:$0xff]  ;;  %v6830_v26 = vld [vmem:[#allocation42_spill] sm:$0xff]  ;;  %v1065_v27 = vrot.slane %v4148_v5, 1 }
  0xa7   : > { %6809 = vst [vmem:[#allocation27_spill] sm:$0xff] %v4118_v55  ;;  %v4188_v9 = vmul.f32 %v6811_v40, %v6829_v15  ;;  %v4192_v37 = vmul.f32 %v6811_v40, %v6830_v26  ;;  %v6831_v60 = vld [vmem:[#allocation51_spill] sm:$0xff]  ;;  %v6834_v1 = vld [vmem:[#allocation60_spill] sm:$0xff]  ;;  %v6837_v56 = vld [vmem:[#allocation65_spill] sm:$0xff] }
  0xa8   : > { %v4196_v11 = vmul.f32 %v6811_v40, %v6831_v60  ;;  %v6832_v63 = vld [vmem:[#allocation43_spill] sm:$0xff]  ;;  %v4208_v4 = vmul.f32 %v6811_v40, %v6834_v1  ;;  %v6835_v15 = vld [vmem:[#allocation48_spill] sm:$0xff]  ;;  %v6838_v33 = vld [vmem:[#allocation53_spill] sm:$0xff]  ;;  %v1078_v61 = vrot.slane %v4180_v19, 1 }
  0xa9   : > { %v4200_v52 = vmul.f32 %v6811_v40, %v6832_v63  ;;  %v6833_v49 = vld [vmem:[#allocation47_spill] sm:$0xff]  ;;  %v4212_v26 = vmul.f32 %v6811_v40, %v6835_v15  ;;  %v6836_v55 = vld [vmem:[#allocation52_spill] sm:$0xff]  ;;  %v4220_v63 = vmul.f32 %v6811_v40, %v6837_v56  ;;  %v6840_v3 = vld [vmem:[#allocation70_spill] sm:$0xff]  ;;  %v1082_v5 = vrot.slane %v4188_v9, 1 }
  0xaa   : > { %v4204_v0 = vmul.f32 %v6811_v40, %v6833_v49  ;;  %v4216_v60 = vmul.f32 %v6811_v40, %v6836_v55  ;;  %v4224_v49 = vmul.f32 %v6811_v40, %v6838_v33  ;;  %v6839_v30 = vld [vmem:[#allocation56_spill] sm:$0xff]  ;;  %v4232_v15 = vmul.f32 %v6811_v40, %v6840_v3  ;;  %v6841_v18 = vld [vmem:[#allocation57_spill] sm:$0xff]  ;;  %v6843_v39 = vld [vmem:[#allocation75_spill] sm:$0xff] }
  0xab   : > { %v4228_v1 = vmul.f32 %v6811_v40, %v6839_v30  ;;  %v4236_v55 = vmul.f32 %v6811_v40, %v6841_v18  ;;  %v6842_v6 = vld [vmem:[#allocation61_spill] sm:$0xff]  ;;  %v4244_v33 = vmul.f32 %v6811_v40, %v6843_v39  ;;  %v6844_v2 = vld [vmem:[#allocation62_spill] sm:$0xff]  ;;  %v6846_v29 = vld [vmem:[#allocation80_spill] sm:$0xff] }
  0xac   : > { %v4240_v56 = vmul.f32 %v6811_v40, %v6842_v6  ;;  %v4248_v30 = vmul.f32 %v6811_v40, %v6844_v2  ;;  %v6845_v43 = vld [vmem:[#allocation66_spill] sm:$0xff]  ;;  %v4256_v18 = vmul.f32 %v6811_v40, %v6846_v29  ;;  %v6847_v28 = vld [vmem:[#allocation67_spill] sm:$0xff]  ;;  %v4263_v16 = vld [vmem:[%s2921_s9 + $0x190] sm:$0x3]  ;;  %v1093_v19 = vrot.slane %v4216_v60, 1 }
  0xad   : > { %v4252_v3 = vmul.f32 %v6811_v40, %v6845_v43  ;;  %v4260_v6 = vmul.f32 %v6811_v40, %v6847_v28  ;;  %6848 = vst [vmem:[#allocation30_spill] sm:$0xff] %v4263_v16  ;;  %v6849_v39 = vld [vmem:[#allocation71_spill] sm:$0xff]  ;;  %v6850_v2 = vld [vmem:[#allocation84_spill] sm:$0xff]  ;;  %v1052_v43 = vrot.slane %v956_v62, 1  ;;  %v6853_v8 = vld [vmem:[#allocation86_spill] sm:$0xff] }
  0xae   : > { %v4267_v54 = vmul.f32 %v6811_v40, %v6849_v39  ;;  %v4271_v12 = vmul.f32 %v6811_v40, %v6850_v2  ;;  %v6851_v20 = vld [vmem:[#allocation72_spill] sm:$0xff]  ;;  %v4283_v22 = vmul.f32 %v6811_v40, %v6853_v8  ;;  %v1055_v39 = vrot.slane %v958_v48, 1  ;;  %v6854_v47 = vld [vmem:[#allocation77_spill] sm:$0xff]  ;;  %v6856_v34 = vld [vmem:[#allocation87_spill] sm:$0xff] }
  0xaf   : > { %v4275_v29 = vmul.f32 %v6811_v40, %v6851_v20  ;;  %v6852_v57 = vld [vmem:[#allocation76_spill] sm:$0xff]  ;;  %v4287_v25 = vmul.f32 %v6811_v40, %v6854_v47  ;;  %v6855_v2 = vld [vmem:[#allocation81_spill] sm:$0xff]  ;;  %v4295_v20 = vmul.f32 %v6811_v40, %v6856_v34  ;;  %v4303_v8 = vmul.f32 %v6811_v40, %v4008_v51 }
  0xb0   : > { %v4279_v28 = vmul.f32 %v6811_v40, %v6852_v57  ;;  %v4291_v62 = vmul.f32 %v6811_v40, %v6855_v2  ;;  %v6857_v23 = vld [vmem:[#allocation36_spill] sm:$0xff]  ;;  %v4307_v47 = vmul.f32 %v6811_v40, %v4263_v16  ;;  %v1057_v48 = vrot.slane %v4128_v10, 1 }
  0xb1   : > { %v4299_v57 = vmul.f32 %v6811_v40, %v6857_v23  ;;  %v1058_v2 = vrot.slane %v4132_v42, 1  ;;  %v4312_v58 = vsel %vm494_vm0, %v1052_v43, %v1053_v38  ;;  %v1060_v34 = vrot.slane %v4136_v41, 1 }
  0xb2   : > { %v1062_v23 = vrot.slane %v4140_v21, 1  ;;  %v4318_v51 = vsel %vm494_vm0, %v1053_v38, %v1055_v39  ;;  %v1067_v40 = vrot.slane %v4152_v36, 1  ;;  %v1068_v10 = vrot.slane %v4156_v46, 1 }
  0xb3   : > { %v1070_v42 = vrot.slane %v4160_v44, 1  ;;  %v1072_v43 = vrot.slane %v4164_v53, 1  ;;  %v1073_v16 = vrot.slane %v4168_v50, 1  ;;  %v1075_v41 = vrot.slane %v4172_v24, 1 }
  0xb4   : > { %v1077_v21 = vrot.slane %v4176_v32, 1  ;;  %v1080_v38 = vrot.slane %v4184_v59, 1  ;;  %v1083_v36 = vrot.slane %v4192_v37, 1  ;;  %v1085_v46 = vrot.slane %v4196_v11, 1 }
  0xb5   : > { %v1087_v44 = vrot.slane %v4200_v52, 1  ;;  %v1088_v53 = vrot.slane %v4204_v0, 1  ;;  %v1059_v50 = vsel %vm494_vm0, %v1057_v48, %v1058_v2  ;;  %v1090_v24 = vrot.slane %v4208_v4, 1 }
  0xb6   : > { %v1092_v32 = vrot.slane %v4212_v26, 1  ;;  %v1061_v59 = vsel %vm494_vm0, %v1058_v2, %v1060_v34  ;;  %v1064_v9 = vsel %vm494_vm0, %v1062_v23, %v1063_v35  ;;  %v1066_v37 = vsel %vm494_vm0, %v1063_v35, %v1065_v27 }
  0xb7   : > { %v1069_v11 = vsel %vm494_vm0, %v1067_v40, %v1068_v10  ;;  %v1071_v52 = vsel %vm494_vm0, %v1068_v10, %v1070_v42  ;;  %v1074_v0 = vsel %vm494_vm0, %v1072_v43, %v1073_v16  ;;  %v1076_v39 = vsel %vm494_vm0, %v1073_v16, %v1075_v41 }
  0xb8   : > { %v1079_v4 = vsel %vm494_vm0, %v1077_v21, %v1078_v61  ;;  %v1081_v26 = vsel %vm494_vm0, %v1078_v61, %v1080_v38  ;;  %v1084_v60 = vsel %vm494_vm0, %v1082_v5, %v1083_v36  ;;  %v1086_v48 = vsel %vm494_vm0, %v1083_v36, %v1085_v46 }
  0xb9   : > { %v1089_v23 = vsel %vm494_vm0, %v1087_v44, %v1088_v53  ;;  %v1091_v27 = vsel %vm494_vm0, %v1088_v53, %v1090_v24  ;;  %v1094_v35 = vsel %vm494_vm0, %v1092_v32, %v1093_v19  ;;  %v1095_v2 = vrot.slane %v4220_v63, 1 }
  0xba   : > { %v1097_v34 = vrot.slane %v4224_v49, 1  ;;  %v1098_v16 = vrot.slane %v4228_v1, 1  ;;  %v1100_v40 = vrot.slane %v4232_v15, 1  ;;  %v1102_v10 = vrot.slane %v4236_v55, 1 }
  0xbb   : > { %v1103_v42 = vrot.slane %v4240_v56, 1  ;;  %v1105_v43 = vrot.slane %v4244_v33, 1  ;;  %v1107_v41 = vrot.slane %v4248_v30, 1  ;;  %v1108_v21 = vrot.slane %v4252_v3, 1 }
  0xbc   : > { %v1110_v61 = vrot.slane %v4256_v18, 1  ;;  %v1112_v63 = vrot.slane %v4260_v6, 1  ;;  %v1113_v49 = vrot.slane %v4267_v54, 1  ;;  %v1115_v1 = vrot.slane %v4271_v12, 1 }
  0xbd   : > { %v1117_v15 = vrot.slane %v4275_v29, 1  ;;  %v1118_v55 = vrot.slane %v4279_v28, 1  ;;  %v1120_v56 = vrot.slane %v4283_v22, 1  ;;  %v1122_v33 = vrot.slane %v4287_v25, 1 }
  0xbe   : > { %v1123_v30 = vrot.slane %v4291_v62, 1  ;;  %v1096_v3 = vsel %vm494_vm0, %v1093_v19, %v1095_v2  ;;  %v1125_v18 = vrot.slane %v4295_v20, 1  ;;  %v1127_v6 = vrot.slane %v4299_v57, 1 }
  0xbf   : > { %v1128_v54 = vrot.slane %v4303_v8, 1  ;;  %v1099_v12 = vsel %vm494_vm0, %v1097_v34, %v1098_v16  ;;  %v1101_v29 = vsel %vm494_vm0, %v1098_v16, %v1100_v40  ;;  %v1104_v28 = vsel %vm494_vm0, %v1102_v10, %v1103_v42  ;;  %v6860_v16 = vld [vmem:[#allocation44_spill] sm:$0xff] }
  0xc0   : > { %v1130_v22 = vrot.slane %v4307_v47, 1  ;;  %v1106_v25 = vsel %vm494_vm0, %v1103_v42, %v1105_v43  ;;  %v1109_v62 = vsel %vm494_vm0, %v1107_v41, %v1108_v21  ;;  %v1111_v38 = vsel %vm494_vm0, %v1108_v21, %v1110_v61 }
  0xc1   : > { %v1114_v20 = vsel %vm494_vm0, %v1112_v63, %v1113_v49  ;;  %v1116_v57 = vsel %vm494_vm0, %v1113_v49, %v1115_v1  ;;  %v1119_v8 = vsel %vm494_vm0, %v1117_v15, %v1118_v55  ;;  %v1121_v5 = vsel %vm494_vm0, %v1118_v55, %v1120_v56  ;;  %v6887_v49 = vld [vmem:[#allocation74_spill] sm:$0xff]  ;;  %v6891_v56 = vld [vmem:[#allocation79_spill] sm:$0xff] }
  0xc2   : > { %v1124_v36 = vsel %vm494_vm0, %v1122_v33, %v1123_v30  ;;  %v1126_v46 = vsel %vm494_vm0, %v1123_v30, %v1125_v18  ;;  %v1129_v47 = vsel %vm494_vm0, %v1127_v6, %v1128_v54  ;;  %v4391_v44 = vadd.f32 %v4312_v58, %v4025_v7  ;;  %v6858_v7 = vld [vmem:[#allocation41_spill] sm:$0xff]  ;;  %v6889_v15 = vld [vmem:[#allocation78_spill] sm:$0xff]  ;;  %v6895_v18 = vld [vmem:[#allocation83_spill] sm:$0xff] }
  0xc3   : > { %v4395_v53 = vadd.f32 %v4318_v51, %v4028_v14  ;;  %v1131_v24 = vsel %vm494_vm0, %v1128_v54, %v1130_v22  ;;  %v4399_v32 = vadd.f32 %v1059_v50, %v4031_v17  ;;  %v4402_v19 = vadd.f32 %v1061_v59, %v4034_v31  ;;  %v6862_v51 = vld [vmem:[#allocation45_spill] sm:$0xff]  ;;  %v6866_v31 = vld [vmem:[#allocation50_spill] sm:$0xff]  ;;  %v6901_v22 = vld [vmem:[#allocation11_spill] sm:$0xff] }
  0xc4   : > { %v4405_v2 = vadd.f32 %v1064_v9, %v4037_v13  ;;  %v4408_v34 = vadd.f32 %v1066_v37, %v4040_v45  ;;  %v4411_v58 = vadd.f32 %v1069_v11, %v6858_v7  ;;  %v4414_v14 = vadd.f32 %v1071_v52, %v6860_v16  ;;  %v6864_v17 = vld [vmem:[#allocation49_spill] sm:$0xff]  ;;  %v6868_v13 = vld [vmem:[#allocation54_spill] sm:$0xff]  ;;  %v6870_v45 = vld [vmem:[#allocation55_spill] sm:$0xff] }
  0xc5   : > { %v4417_v40 = vadd.f32 %v1074_v0, %v6862_v51  ;;  %v4420_v50 = vadd.f32 %v1076_v39, %v6864_v17  ;;  %v4423_v59 = vadd.f32 %v1079_v4, %v6866_v31  ;;  %v4426_v9 = vadd.f32 %v1081_v26, %v6868_v13  ;;  %v6872_v11 = vld [vmem:[#allocation58_spill] sm:$0xff]  ;;  %v6874_v52 = vld [vmem:[#allocation59_spill] sm:$0xff]  ;;  %v6878_v39 = vld [vmem:[#allocation64_spill] sm:$0xff] }
  0xc6   : > { %6859 = vst [vmem:[#allocation31_spill] sm:$0xff] %v4411_v58  ;;  %6861 = vst [vmem:[#allocation35_spill] sm:$0xff] %v4414_v14  ;;  %v4429_v37 = vadd.f32 %v1084_v60, %v6870_v45  ;;  %v4432_v10 = vadd.f32 %v1086_v48, %v6872_v11  ;;  %v4435_v42 = vadd.f32 %v1089_v23, %v6874_v52  ;;  %v6876_v0 = vld [vmem:[#allocation63_spill] sm:$0xff]  ;;  %v6880_v4 = vld [vmem:[#allocation68_spill] sm:$0xff] }
  0xc7   : > { %6863 = vst [vmem:[#allocation14_spill] sm:$0xff] %v4417_v40  ;;  %6865 = vst [vmem:[#allocation19_spill] sm:$0xff] %v4420_v50  ;;  %v4438_v43 = vadd.f32 %v1091_v27, %v6876_v0  ;;  %v4441_v41 = vadd.f32 %v1094_v35, %v6878_v39  ;;  %v4444_v21 = vadd.f32 %v1096_v3, %v6880_v4  ;;  %v6882_v26 = vld [vmem:[#allocation69_spill] sm:$0xff]  ;;  %v2663_v48 = vld [vmem:[%s6325_s1 + $0x4] sm:$0x7] }
  0xc8   : > { %6867 = vst [vmem:[#allocation15_spill] sm:$0xff] %v4423_v59  ;;  %6869 = vst [vmem:[#allocation16_spill] sm:$0xff] %v4426_v9  ;;  %v4447_v61 = vadd.f32 %v1099_v12, %v6882_v26  ;;  %v6884_v60 = vld [vmem:[#allocation73_spill] sm:$0xff]  ;;  %v6886_v23 = vld [vmem:[#allocation10_spill] sm:$0xff]  ;;  %v4462_v1 = vadd.f32 %v1104_v28, %v6887_v49  ;;  %v4465_v55 = vadd.f32 %v1106_v25, %v6889_v15 }
  0xc9   : > { %6871 = vst [vmem:[#allocation20_spill] sm:$0xff] %v4429_v37  ;;  %6873 = vst [vmem:[#allocation21_spill] sm:$0xff] %v4432_v10  ;;  %v4450_v63 = vadd.f32 %v1101_v29, %v6884_v60  ;;  %v4456_v27 = vrot.slane %v2663_v48, %v6886_v23  ;;  %v325_v35 = vld [vmem:[%s6325_s1 + $0x8] sm:$0x7]  ;;  %v4468_v33 = vadd.f32 %v1109_v62, %v6891_v56  ;;  %v6893_v30 = vld [vmem:[#allocation82_spill] sm:$0xff] }
  0xca   : > { %6875 = vst [vmem:[#allocation22_spill] sm:$0xff] %v4435_v42  ;;  %6877 = vst [vmem:[#allocation23_spill] sm:$0xff] %v4438_v43  ;;  %v4471_v3 = vadd.f32 %v1111_v38, %v6893_v30  ;;  %v4474_v6 = vadd.f32 %v1114_v20, %v6895_v18  ;;  %v6897_v54 = vld [vmem:[#allocation85_spill] sm:$0xff]  ;;  %v6899_v29 = vld [vmem:[#allocation18_spill] sm:$0xff]  ;;  %v4483_v25 = vadd.f32 %v1121_v5, %v6901_v22 }
  0xcb   : > { %6879 = vst [vmem:[#allocation24_spill] sm:$0xff] %v4441_v41  ;;  %6881 = vst [vmem:[#allocation25_spill] sm:$0xff] %v4444_v21  ;;  %v4477_v12 = vadd.f32 %v1116_v57, %v6897_v54  ;;  %v4480_v28 = vadd.f32 %v1119_v8, %v6899_v29  ;;  %v6903_v7 = vld [vmem:[#allocation17_spill] sm:$0xff]  ;;  %v6905_v38 = vld [vmem:[#allocation12_spill] sm:$0xff] }
  0xcc   : > { %6883 = vst [vmem:[#allocation26_spill] sm:$0xff] %v4447_v61  ;;  %6885 = vst [vmem:[#allocation28_spill] sm:$0xff] %v4450_v63  ;;  %v4486_v62 = vadd.f32 %v1124_v36, %v6903_v7  ;;  %v4489_v16 = vadd.f32 %v1126_v46, %v6905_v38  ;;  %v6907_v51 = vld [vmem:[#allocation13_spill] sm:$0xff]  ;;  %v6909_v57 = vld [vmem:[#allocation27_spill] sm:$0xff]  ;;  %v4508_v46 = vrot.slane %v325_v35, %v6886_v23 }
  0xcd   : > { %6888 = vst [vmem:[#allocation32_spill] sm:$0xff] %v4462_v1  ;;  %6890 = vst [vmem:[#allocation29_spill] sm:$0xff] %v4465_v55  ;;  %v4492_v20 = vadd.f32 %v1129_v47, %v6907_v51  ;;  %v4495_v17 = vadd.f32 %v1131_v24, %v6909_v57  ;;  %v2664_v8 = vld [vmem:[%s2921_s9 + $0x18] sm:$0xff]  ;;  %v6911_v5 = vld [vmem:[#allocation8_spill] sm:$0xff] }
  0xce   : > { %6892 = vst [vmem:[#allocation33_spill] sm:$0xff] %v4468_v33  ;;  %6894 = vst [vmem:[#allocation37_spill] sm:$0xff] %v4471_v3  ;;  %v4499_v31 = vmul.f32 %v2664_v8, %v4456_v27  ;;  %v4502_v13 = vrot.slane %v325_v35, %v6911_v5  ;;  %v6913_v36 = vld [vmem:[#allocation9_spill] sm:$0xff]  ;;  %v2665_v47 = vld [vmem:[%s2921_s9 + $0x20] sm:$0xff] }
  0xcf   : > { %6896 = vst [vmem:[#allocation34_spill] sm:$0xff] %v4474_v6  ;;  %6898 = vst [vmem:[#allocation38_spill] sm:$0xff] %v4477_v12  ;;  %v4505_v45 = vrot.slane %v325_v35, %v6913_v36  ;;  %v4512_v24 = vmul.f32 %v2665_v47, %v4456_v27  ;;  %v2666_v11 = vld [vmem:[%s2921_s9 + $0x28] sm:$0x3]  ;;  %v4519_v0 = vld [vmem:[%s2921_s9 + $0x30] sm:$0xff] }
  0xd0   : > { %6900 = vst [vmem:[#allocation46_spill] sm:$0xff] %v4480_v28  ;;  %6902 = vst [vmem:[#allocation39_spill] sm:$0xff] %v4483_v25  ;;  %v4516_v52 = vmul.f32 %v2666_v11, %v4456_v27  ;;  %v4523_v39 = vmul.f32 %v4519_v0, %v4456_v27  ;;  %v4526_v4 = vld [vmem:[%s2921_s9 + $0x38] sm:$0xff]  ;;  %v4533_v60 = vld [vmem:[%s2921_s9 + $0x40] sm:$0x3]  ;;  %v1296_v1 = vrot.slane %v4499_v31, 2 }
  0xd1   : > { %6904 = vst [vmem:[#allocation42_spill] sm:$0xff] %v4486_v62  ;;  %6906 = vst [vmem:[#allocation51_spill] sm:$0xff] %v4489_v16  ;;  %v4530_v26 = vmul.f32 %v4526_v4, %v4456_v27  ;;  %v4537_v48 = vmul.f32 %v4533_v60, %v4456_v27  ;;  %v4540_v23 = vld [vmem:[%s2921_s9 + $0x48] sm:$0xff]  ;;  %v4547_v49 = vld [vmem:[%s2921_s9 + $0x50] sm:$0xff]  ;;  %v1297_v63 = vrot.slane %v4512_v24, 2 }
  0xd2   : > { %6908 = vst [vmem:[#allocation43_spill] sm:$0xff] %v4492_v20  ;;  %6910 = vst [vmem:[#allocation47_spill] sm:$0xff] %v4495_v17  ;;  %v4544_v35 = vmul.f32 %v4540_v23, %v4456_v27  ;;  %v4551_v15 = vmul.f32 %v4547_v49, %v4456_v27  ;;  %v4554_v56 = vld [vmem:[%s2921_s9 + $0x58] sm:$0x3]  ;;  %v4561_v18 = vld [vmem:[%s2921_s9 + $0x60] sm:$0xff]  ;;  %v1299_v31 = vrot.slane %v4516_v52, 2 }
  0xd3   : > { %6912 = vst [vmem:[#allocation60_spill] sm:$0xff] %v4502_v13  ;;  %6914 = vst [vmem:[#allocation48_spill] sm:$0xff] %v4505_v45  ;;  %v4558_v30 = vmul.f32 %v4554_v56, %v4456_v27  ;;  %v4565_v54 = vmul.f32 %v4561_v18, %v4456_v27  ;;  %v4568_v29 = vld [vmem:[%s2921_s9 + $0x68] sm:$0xff]  ;;  %v4575_v7 = vld [vmem:[%s2921_s9 + $0x70] sm:$0x3]  ;;  %v1302_v50 = vrot.slane %v4530_v26, 2  ;;  %v4830_v40 = vsel %vm739_vm1, %v1296_v1, %v1297_v63 }
  0xd4   : > { %6915 = vst [vmem:[#allocation52_spill] sm:$0xff] %v4508_v46  ;;  %6916 = vst [vmem:[#allocation65_spill] sm:$0xff] %v4519_v0  ;;  %v4572_v22 = vmul.f32 %v4568_v29, %v4456_v27  ;;  %v4579_v38 = vmul.f32 %v4575_v7, %v4456_v27  ;;  %v4582_v51 = vld [vmem:[%s2921_s9 + $0x78] sm:$0xff]  ;;  %v4589_v8 = vld [vmem:[%s2921_s9 + $0x80] sm:$0xff]  ;;  %v1307_v14 = vrot.slane %v4551_v15, 2 }
  0xd5   : > { %6917 = vst [vmem:[#allocation53_spill] sm:$0xff] %v4526_v4  ;;  %6918 = vst [vmem:[#allocation56_spill] sm:$0xff] %v4533_v60  ;;  %v4586_v57 = vmul.f32 %v4582_v51, %v4456_v27  ;;  %v4593_v5 = vmul.f32 %v4589_v8, %v4456_v27  ;;  %v4596_v36 = vld [vmem:[%s2921_s9 + $0x88] sm:$0x3]  ;;  %v4603_v11 = vld [vmem:[%s2921_s9 + $0x90] sm:$0xff]  ;;  %v1309_v58 = vrot.slane %v4558_v30, 2 }
  0xd6   : > { %6919 = vst [vmem:[#allocation70_spill] sm:$0xff] %v4540_v23  ;;  %6920 = vst [vmem:[#allocation57_spill] sm:$0xff] %v4547_v49  ;;  %v4600_v47 = vmul.f32 %v4596_v36, %v4456_v27  ;;  %v4607_v46 = vmul.f32 %v4603_v11, %v4456_v27  ;;  %v4617_v60 = vld [vmem:[%s2921_s9 + $0xa0] sm:$0x3]  ;;  %v4624_v45 = vld [vmem:[%s2921_s9 + $0xa8] sm:$0xff]  ;;  %v1314_v26 = vrot.slane %v4579_v38, 2 }
  0xd7   : > { %6921 = vst [vmem:[#allocation61_spill] sm:$0xff] %v4554_v56  ;;  %6922 = vst [vmem:[#allocation75_spill] sm:$0xff] %v4561_v18  ;;  %v4652_v18 = vld [vmem:[%s2921_s9 + $0xc8] sm:$0xff]  ;;  %v4659_v49 = vld [vmem:[%s2921_s9 + $0xd0] sm:$0x3]  ;;  %v1316_v1 = vrot.slane %v4586_v57, 2 }
  0xd8   : > { %6923 = vst [vmem:[#allocation62_spill] sm:$0xff] %v4568_v29  ;;  %6924 = vst [vmem:[#allocation66_spill] sm:$0xff] %v4575_v7  ;;  %v4610_v7 = vld [vmem:[%s2921_s9 + $0x98] sm:$0xff]  ;;  %v4645_v29 = vld [vmem:[%s2921_s9 + $0xc0] sm:$0xff] }
  0xd9   : > { %6925 = vst [vmem:[#allocation80_spill] sm:$0xff] %v4582_v51  ;;  %6926 = vst [vmem:[#allocation67_spill] sm:$0xff] %v4589_v8  ;;  %v4614_v56 = vmul.f32 %v4610_v7, %v4456_v27  ;;  %v4631_v8 = vld [vmem:[%s2921_s9 + $0xb0] sm:$0xff]  ;;  %v4638_v51 = vld [vmem:[%s2921_s9 + $0xb8] sm:$0x3] }
  0xda   : > { %6927 = vst [vmem:[#allocation71_spill] sm:$0xff] %v4596_v36  ;;  %6928 = vst [vmem:[#allocation84_spill] sm:$0xff] %v4603_v11  ;;  %v4621_v36 = vmul.f32 %v4617_v60, %v4456_v27  ;;  %v4628_v11 = vmul.f32 %v4624_v45, %v4456_v27  ;;  %v4666_v23 = vld [vmem:[%s2921_s9 + $0xd8] sm:$0xff]  ;;  %v4673_v4 = vld [vmem:[%s2921_s9 + $0xe0] sm:$0xff] }
  0xdb   : > { %6929 = vst [vmem:[#allocation72_spill] sm:$0xff] %v4610_v7  ;;  %6930 = vst [vmem:[#allocation76_spill] sm:$0xff] %v4617_v60  ;;  %v4635_v7 = vmul.f32 %v4631_v8, %v4456_v27  ;;  %v4642_v60 = vmul.f32 %v4638_v51, %v4456_v27  ;;  %v4680_v0 = vld [vmem:[%s2921_s9 + $0xe8] sm:$0x3]  ;;  %v4687_v13 = vld [vmem:[%s2921_s9 + $0xf0] sm:$0xff]  ;;  %v1322_v15 = vrot.slane %v4614_v56, 2 }
  0xdc   : > { %6931 = vst [vmem:[#allocation86_spill] sm:$0xff] %v4624_v45  ;;  %6932 = vst [vmem:[#allocation77_spill] sm:$0xff] %v4631_v8  ;;  %v4649_v45 = vmul.f32 %v4645_v29, %v4456_v27  ;;  %v4656_v8 = vmul.f32 %v4652_v18, %v4456_v27  ;;  %v4694_v17 = vld [vmem:[%s2921_s9 + $0xf8] sm:$0xff]  ;;  %v4701_v20 = vld [vmem:[%s2921_s9 + $0x100] sm:$0x3]  ;;  %v1326_v30 = vrot.slane %v4628_v11, 2 }
  0xdd   : > { %6933 = vst [vmem:[#allocation81_spill] sm:$0xff] %v4638_v51  ;;  %6934 = vst [vmem:[#allocation87_spill] sm:$0xff] %v4645_v29  ;;  %v4663_v51 = vmul.f32 %v4659_v49, %v4456_v27  ;;  %v4670_v29 = vmul.f32 %v4666_v23, %v4456_v27  ;;  %v4708_v16 = vld [vmem:[%s2921_s9 + $0x108] sm:$0xff]  ;;  %v4715_v62 = vld [vmem:[%s2921_s9 + $0x110] sm:$0xff] }
  0xde   : > { %6935 = vst [vmem:[#allocation41_spill] sm:$0xff] %v4652_v18  ;;  %6936 = vst [vmem:[#allocation44_spill] sm:$0xff] %v4659_v49  ;;  %v4677_v18 = vmul.f32 %v4673_v4, %v4456_v27  ;;  %v4684_v49 = vmul.f32 %v4680_v0, %v4456_v27  ;;  %v4722_v25 = vld [vmem:[%s2921_s9 + $0x118] sm:$0x3]  ;;  %v4729_v28 = vld [vmem:[%s2921_s9 + $0x120] sm:$0xff]  ;;  %v1331_v38 = vrot.slane %v4649_v45, 2 }
  0xdf   : > { %6937 = vst [vmem:[#allocation45_spill] sm:$0xff] %v4666_v23  ;;  %6938 = vst [vmem:[#allocation49_spill] sm:$0xff] %v4673_v4  ;;  %v4691_v23 = vmul.f32 %v4687_v13, %v4456_v27  ;;  %v4698_v4 = vmul.f32 %v4694_v17, %v4456_v27  ;;  %v4736_v12 = vld [vmem:[%s2921_s9 + $0x128] sm:$0xff]  ;;  %v4743_v6 = vld [vmem:[%s2921_s9 + $0x130] sm:$0x3]  ;;  %v1332_v57 = vrot.slane %v4656_v8, 2 }
  0xe0   : > { %6939 = vst [vmem:[#allocation50_spill] sm:$0xff] %v4680_v0  ;;  %6940 = vst [vmem:[#allocation54_spill] sm:$0xff] %v4687_v13  ;;  %v4705_v0 = vmul.f32 %v4701_v20, %v4456_v27  ;;  %v4712_v13 = vmul.f32 %v4708_v16, %v4456_v27  ;;  %v4750_v3 = vld [vmem:[%s2921_s9 + $0x138] sm:$0xff]  ;;  %v4757_v33 = vld [vmem:[%s2921_s9 + $0x140] sm:$0xff]  ;;  %v1337_v56 = vrot.slane %v4677_v18, 2 }
  0xe1   : > { %6941 = vst [vmem:[#allocation55_spill] sm:$0xff] %v4694_v17  ;;  %6942 = vst [vmem:[#allocation58_spill] sm:$0xff] %v4701_v20  ;;  %v4719_v17 = vmul.f32 %v4715_v62, %v4456_v27  ;;  %v4726_v20 = vmul.f32 %v4722_v25, %v4456_v27  ;;  %v4764_v55 = vld [vmem:[%s2921_s9 + $0x148] sm:$0x3]  ;;  %v4780_v21 = vld [vmem:[%s2921_s9 + $0x158] sm:$0xff] }
  0xe2   : > { %6943 = vst [vmem:[#allocation59_spill] sm:$0xff] %v4708_v16  ;;  %6944 = vst [vmem:[#allocation63_spill] sm:$0xff] %v4715_v62  ;;  %v4733_v16 = vmul.f32 %v4729_v28, %v4456_v27  ;;  %v4740_v62 = vmul.f32 %v4736_v12, %v4456_v27  ;;  %v4787_v41 = vld [vmem:[%s2921_s9 + $0x160] sm:$0x3]  ;;  %v4795_v24 = vld [vmem:[%s2921_s9 + $0x168] sm:$0xff] }
  0xe3   : > { %6945 = vst [vmem:[#allocation64_spill] sm:$0xff] %v4722_v25  ;;  %6946 = vst [vmem:[#allocation68_spill] sm:$0xff] %v4729_v28  ;;  %v4747_v25 = vmul.f32 %v4743_v6, %v4456_v27  ;;  %v4754_v28 = vmul.f32 %v4750_v3, %v4456_v27  ;;  %v4802_v43 = vld [vmem:[%s2921_s9 + $0x170] sm:$0xff]  ;;  %v4809_v42 = vld [vmem:[%s2921_s9 + $0x178] sm:$0x3] }
  0xe4   : > { %6947 = vst [vmem:[#allocation69_spill] sm:$0xff] %v4736_v12  ;;  %6948 = vst [vmem:[#allocation73_spill] sm:$0xff] %v4743_v6  ;;  %v4761_v12 = vmul.f32 %v4757_v33, %v4456_v27  ;;  %v4768_v6 = vmul.f32 %v4764_v55, %v4456_v27  ;;  %v6958_v10 = vld [vmem:[#allocation36_spill] sm:$0xff]  ;;  %v6960_v9 = vld [vmem:[#allocation30_spill] sm:$0xff] }
  0xe5   : > { %6949 = vst [vmem:[#allocation10_spill] sm:$0xff] %v4750_v3  ;;  %6950 = vst [vmem:[#allocation74_spill] sm:$0xff] %v4757_v33  ;;  %v4773_v3 = vld [vmem:[%s2921_s9 + $0x150] sm:$0xff]  ;;  %v4784_v33 = vmul.f32 %v4780_v21, %v4456_v27  ;;  %v4817_v52 = vmul.f32 %v4456_v27, %v6958_v10  ;;  %v6959_v37 = vld [vmem:[#allocation40_spill] sm:$0xff]  ;;  %v4825_v59 = vmul.f32 %v4456_v27, %v6960_v9  ;;  %v1306_v10 = vrot.slane %v4544_v35, 2 }
  0xe6   : > { %6951 = vst [vmem:[#allocation78_spill] sm:$0xff] %v4764_v55  ;;  %6952 = vst [vmem:[#allocation79_spill] sm:$0xff] %v4773_v3  ;;  %v4777_v61 = vmul.f32 %v4773_v3, %v4456_v27  ;;  %v4791_v55 = vmul.f32 %v4787_v41, %v4456_v27  ;;  %v4799_v3 = vmul.f32 %v4795_v24, %v4456_v27  ;;  %v1317_v9 = vrot.slane %v4593_v5, 2 }
  0xe7   : > { %6953 = vst [vmem:[#allocation82_spill] sm:$0xff] %v4780_v21  ;;  %6954 = vst [vmem:[#allocation83_spill] sm:$0xff] %v4787_v41  ;;  %v4806_v21 = vmul.f32 %v4802_v43, %v4456_v27  ;;  %v4813_v41 = vmul.f32 %v4809_v42, %v4456_v27  ;;  %v1321_v35 = vrot.slane %v4607_v46, 2  ;;  %v1336_v46 = vrot.slane %v4670_v29, 2 }
  0xe8   : > { %6955 = vst [vmem:[#allocation85_spill] sm:$0xff] %v4795_v24  ;;  %6956 = vst [vmem:[#allocation18_spill] sm:$0xff] %v4802_v43  ;;  %v4821_v24 = vmul.f32 %v4456_v27, %v6959_v37  ;;  %v1301_v43 = vrot.slane %v4523_v39, 2  ;;  %v4836_v37 = vsel %vm739_vm1, %v1297_v63, %v1299_v31  ;;  %v1311_v27 = vrot.slane %v4565_v54, 2 }
  0xe9   : > { %6957 = vst [vmem:[#allocation11_spill] sm:$0xff] %v4809_v42  ;;  %v1304_v42 = vrot.slane %v4537_v48, 2  ;;  %v1312_v39 = vrot.slane %v4572_v22, 2  ;;  %v1319_v48 = vrot.slane %v4600_v47, 2  ;;  %v1324_v63 = vrot.slane %v4621_v36, 2 }
  0xea   : > { %v1327_v54 = vrot.slane %v4635_v7, 2  ;;  %v1329_v22 = vrot.slane %v4642_v60, 2  ;;  %v1303_v5 = vsel %vm739_vm1, %v1301_v43, %v1302_v50  ;;  %v1334_v47 = vrot.slane %v4663_v51, 2 }
  0xeb   : > { %v1305_v36 = vsel %vm739_vm1, %v1302_v50, %v1304_v42  ;;  %v1308_v11 = vsel %vm739_vm1, %v1306_v10, %v1307_v14  ;;  %v1310_v7 = vsel %vm739_vm1, %v1307_v14, %v1309_v58  ;;  %v1313_v60 = vsel %vm739_vm1, %v1311_v27, %v1312_v39 }
  0xec   : > { %v1315_v45 = vsel %vm739_vm1, %v1312_v39, %v1314_v26  ;;  %v1318_v8 = vsel %vm739_vm1, %v1316_v1, %v1317_v9  ;;  %v1320_v43 = vsel %vm739_vm1, %v1317_v9, %v1319_v48  ;;  %v1323_v51 = vsel %vm739_vm1, %v1321_v35, %v1322_v15 }
  0xed   : > { %v1325_v29 = vsel %vm739_vm1, %v1322_v15, %v1324_v63  ;;  %v1328_v18 = vsel %vm739_vm1, %v1326_v30, %v1327_v54  ;;  %v1330_v50 = vsel %vm739_vm1, %v1327_v54, %v1329_v22  ;;  %v1333_v10 = vsel %vm739_vm1, %v1331_v38, %v1332_v57 }
  0xee   : > { %v1335_v58 = vsel %vm739_vm1, %v1332_v57, %v1334_v47  ;;  %v1338_v14 = vsel %vm739_vm1, %v1336_v46, %v1337_v56  ;;  %v1339_v42 = vrot.slane %v4684_v49, 2  ;;  %v1341_v31 = vrot.slane %v4691_v23, 2 }
  0xef   : > { %v1342_v9 = vrot.slane %v4698_v4, 2  ;;  %v1344_v27 = vrot.slane %v4705_v0, 2  ;;  %v1346_v39 = vrot.slane %v4712_v13, 2  ;;  %v1347_v26 = vrot.slane %v4719_v17, 2 }
  0xf0   : > { %v1349_v1 = vrot.slane %v4726_v20, 2  ;;  %v1351_v48 = vrot.slane %v4733_v16, 2  ;;  %v1352_v35 = vrot.slane %v4740_v62, 2  ;;  %v1354_v15 = vrot.slane %v4747_v25, 2 }
  0xf1   : > { %v1356_v49 = vrot.slane %v4754_v28, 2  ;;  %v1357_v23 = vrot.slane %v4761_v12, 2  ;;  %v1359_v4 = vrot.slane %v4768_v6, 2  ;;  %v1361_v0 = vrot.slane %v4777_v61, 2 }
  0xf2   : > { %v1362_v13 = vrot.slane %v4784_v33, 2  ;;  %v1364_v17 = vrot.slane %v4791_v55, 2  ;;  %v1366_v20 = vrot.slane %v4799_v3, 2  ;;  %v1367_v16 = vrot.slane %v4806_v21, 2 }
  0xf3   : > { %v1340_v62 = vsel %vm739_vm1, %v1337_v56, %v1339_v42  ;;  %v1369_v25 = vrot.slane %v4813_v41, 2  ;;  %v1371_v28 = vrot.slane %v4817_v52, 2  ;;  %v1372_v12 = vrot.slane %v4821_v24, 2 }
  0xf4   : > { %v1343_v6 = vsel %vm739_vm1, %v1341_v31, %v1342_v9  ;;  %v1345_v61 = vsel %vm739_vm1, %v1342_v9, %v1344_v27  ;;  %v1348_v33 = vsel %vm739_vm1, %v1346_v39, %v1347_v26  ;;  %v1374_v55 = vrot.slane %v4825_v59, 2  ;;  %v6962_v9 = vld [vmem:[#allocation35_spill] sm:$0xff] }
  0xf5   : > { %v1350_v3 = vsel %vm739_vm1, %v1347_v26, %v1349_v1  ;;  %v1353_v21 = vsel %vm739_vm1, %v1351_v48, %v1352_v35  ;;  %v1355_v63 = vsel %vm739_vm1, %v1352_v35, %v1354_v15  ;;  %v1358_v41 = vsel %vm739_vm1, %v1356_v49, %v1357_v23 }
  0xf6   : > { %v1360_v52 = vsel %vm739_vm1, %v1357_v23, %v1359_v4  ;;  %v1363_v24 = vsel %vm739_vm1, %v1361_v0, %v1362_v13  ;;  %v1365_v30 = vsel %vm739_vm1, %v1362_v13, %v1364_v17  ;;  %v1368_v54 = vsel %vm739_vm1, %v1366_v20, %v1367_v16  ;;  %v6979_v17 = vld [vmem:[#allocation34_spill] sm:$0xff] }
  0xf7   : > { %v1370_v22 = vsel %vm739_vm1, %v1367_v16, %v1369_v25  ;;  %v1373_v59 = vsel %vm739_vm1, %v1371_v28, %v1372_v12  ;;  %v4909_v38 = vadd.f32 %v4830_v40, %v4391_v44  ;;  %v4913_v57 = vadd.f32 %v4836_v37, %v4395_v53  ;;  %v6961_v44 = vld [vmem:[#allocation31_spill] sm:$0xff]  ;;  %v6963_v37 = vld [vmem:[#allocation14_spill] sm:$0xff] }
  0xf8   : > { %v1375_v47 = vsel %vm739_vm1, %v1372_v12, %v1374_v55  ;;  %v4917_v46 = vadd.f32 %v1303_v5, %v4399_v32  ;;  %v4920_v56 = vadd.f32 %v1305_v36, %v4402_v19  ;;  %v4923_v42 = vadd.f32 %v1308_v11, %v4405_v2  ;;  %v6964_v32 = vld [vmem:[#allocation19_spill] sm:$0xff]  ;;  %v6966_v2 = vld [vmem:[#allocation16_spill] sm:$0xff]  ;;  %v6981_v16 = vld [vmem:[#allocation38_spill] sm:$0xff] }
  0xf9   : > { %v4926_v31 = vadd.f32 %v1310_v7, %v4408_v34  ;;  %v4929_v40 = vadd.f32 %v1313_v60, %v6961_v44  ;;  %v4932_v53 = vadd.f32 %v1315_v45, %v6962_v9  ;;  %v4935_v27 = vadd.f32 %v1318_v8, %v6963_v37  ;;  %v6965_v19 = vld [vmem:[#allocation15_spill] sm:$0xff]  ;;  %v6967_v34 = vld [vmem:[#allocation20_spill] sm:$0xff]  ;;  %v6968_v60 = vld [vmem:[#allocation21_spill] sm:$0xff] }
  0xfa   : > { %v4938_v5 = vadd.f32 %v1320_v43, %v6964_v32  ;;  %v4941_v36 = vadd.f32 %v1323_v51, %v6965_v19  ;;  %v4944_v11 = vadd.f32 %v1325_v29, %v6966_v2  ;;  %v4947_v7 = vadd.f32 %v1328_v18, %v6967_v34  ;;  %v6969_v45 = vld [vmem:[#allocation22_spill] sm:$0xff]  ;;  %v6970_v8 = vld [vmem:[#allocation23_spill] sm:$0xff]  ;;  %v6971_v43 = vld [vmem:[#allocation24_spill] sm:$0xff] }
  0xfb   : > { %v4950_v39 = vadd.f32 %v1330_v50, %v6968_v60  ;;  %v4953_v26 = vadd.f32 %v1333_v10, %v6969_v45  ;;  %v4956_v1 = vadd.f32 %v1335_v58, %v6970_v8  ;;  %v4959_v48 = vadd.f32 %v1338_v14, %v6971_v43  ;;  %v6972_v51 = vld [vmem:[#allocation25_spill] sm:$0xff]  ;;  %v6973_v29 = vld [vmem:[#allocation26_spill] sm:$0xff]  ;;  %v6974_v18 = vld [vmem:[#allocation28_spill] sm:$0xff] }
  0xfc   : > { %v4962_v35 = vadd.f32 %v1340_v62, %v6972_v51  ;;  %v4965_v15 = vadd.f32 %v1343_v6, %v6973_v29  ;;  %v4968_v49 = vadd.f32 %v1345_v61, %v6974_v18  ;;  %v6975_v50 = vld [vmem:[#allocation32_spill] sm:$0xff]  ;;  %v6976_v10 = vld [vmem:[#allocation29_spill] sm:$0xff]  ;;  %v4983_v20 = vadd.f32 %v1358_v41, %v6979_v17  ;;  %v6983_v25 = vld [vmem:[#allocation46_spill] sm:$0xff] }
  0xfd   : > { %v4971_v23 = vadd.f32 %v1348_v33, %v6975_v50  ;;  %v4974_v4 = vadd.f32 %v1350_v3, %v6976_v10  ;;  %v6977_v58 = vld [vmem:[#allocation33_spill] sm:$0xff]  ;;  %v4986_v62 = vadd.f32 %v1360_v52, %v6981_v16  ;;  %v4989_v28 = vadd.f32 %v1363_v24, %v6983_v25  ;;  %v6985_v12 = vld [vmem:[#allocation39_spill] sm:$0xff]  ;;  %v6987_v61 = vld [vmem:[#allocation42_spill] sm:$0xff] }
  0xfe   : > { %v4977_v0 = vadd.f32 %v1353_v21, %v6977_v58  ;;  %v6978_v14 = vld [vmem:[#allocation37_spill] sm:$0xff]  ;;  %6980 = vst [vmem:[#allocation17_spill] sm:$0xff] %v4983_v20  ;;  %v4992_v6 = vadd.f32 %v1365_v30, %v6985_v12  ;;  %v4995_v33 = vadd.f32 %v1368_v54, %v6987_v61  ;;  %v6989_v55 = vld [vmem:[#allocation51_spill] sm:$0xff]  ;;  %v6995_v52 = vld [vmem:[#allocation60_spill] sm:$0xff] }
  0xff   : > { %v4980_v13 = vadd.f32 %v1355_v63, %v6978_v14  ;;  %6982 = vst [vmem:[#allocation12_spill] sm:$0xff] %v4986_v62  ;;  %6984 = vst [vmem:[#allocation13_spill] sm:$0xff] %v4989_v28  ;;  %v4998_v3 = vadd.f32 %v1370_v22, %v6989_v55  ;;  %v6991_v21 = vld [vmem:[#allocation43_spill] sm:$0xff]  ;;  %v6996_v9 = vld [vmem:[#allocation65_spill] sm:$0xff] }
 0x100   : > { %6986 = vst [vmem:[#allocation27_spill] sm:$0xff] %v4992_v6  ;;  %6988 = vst [vmem:[#allocation8_spill] sm:$0xff] %v4995_v33  ;;  %v5001_v63 = vadd.f32 %v1373_v59, %v6991_v21  ;;  %v6993_v41 = vld [vmem:[#allocation47_spill] sm:$0xff]  ;;  %v1444_v37 = vmul.f32 %v6996_v9, %v6995_v52  ;;  %v6997_v24 = vld [vmem:[#allocation53_spill] sm:$0xff] }
 0x101   : > { %6990 = vst [vmem:[#allocation9_spill] sm:$0xff] %v4998_v3  ;;  %v5004_v44 = vadd.f32 %v1375_v47, %v6993_v41  ;;  %v1445_v32 = vmul.f32 %v6997_v24, %v6995_v52  ;;  %v6998_v30 = vld [vmem:[#allocation70_spill] sm:$0xff]  ;;  %v6999_v19 = vld [vmem:[#allocation57_spill] sm:$0xff]  ;;  %v7000_v2 = vld [vmem:[#allocation75_spill] sm:$0xff] }
 0x102   : > { %6992 = vst [vmem:[#allocation31_spill] sm:$0xff] %v5001_v63  ;;  %v1446_v54 = vmul.f32 %v6998_v30, %v6995_v52  ;;  %v1447_v22 = vmul.f32 %v6999_v19, %v6995_v52  ;;  %v1448_v59 = vmul.f32 %v7000_v2, %v6995_v52  ;;  %v7001_v34 = vld [vmem:[#allocation62_spill] sm:$0xff]  ;;  %v7002_v60 = vld [vmem:[#allocation80_spill] sm:$0xff]  ;;  %v7003_v8 = vld [vmem:[#allocation67_spill] sm:$0xff] }
 0x103   : > { %6994 = vst [vmem:[#allocation35_spill] sm:$0xff] %v5004_v44  ;;  %v1449_v47 = vmul.f32 %v7001_v34, %v6995_v52  ;;  %v1450_v45 = vmul.f32 %v7002_v60, %v6995_v52  ;;  %v1451_v43 = vmul.f32 %v7003_v8, %v6995_v52  ;;  %v7004_v51 = vld [vmem:[#allocation84_spill] sm:$0xff]  ;;  %v7006_v10 = vld [vmem:[#allocation86_spill] sm:$0xff]  ;;  %v7007_v14 = vld [vmem:[#allocation77_spill] sm:$0xff] }
 0x104   : > { %v1452_v29 = vmul.f32 %v7004_v51, %v6995_v52  ;;  %v7005_v18 = vld [vmem:[#allocation72_spill] sm:$0xff]  ;;  %v1454_v58 = vmul.f32 %v7006_v10, %v6995_v52  ;;  %v1455_v17 = vmul.f32 %v7007_v14, %v6995_v52  ;;  %v7008_v16 = vld [vmem:[#allocation87_spill] sm:$0xff]  ;;  %v7009_v12 = vld [vmem:[#allocation41_spill] sm:$0xff] }
 0x105   : > { %v1453_v50 = vmul.f32 %v7005_v18, %v6995_v52  ;;  %v1456_v25 = vmul.f32 %v7008_v16, %v6995_v52  ;;  %v1457_v61 = vmul.f32 %v7009_v12, %v6995_v52  ;;  %v7010_v55 = vld [vmem:[#allocation45_spill] sm:$0xff]  ;;  %v7012_v18 = vld [vmem:[#allocation54_spill] sm:$0xff]  ;;  %v7014_v60 = vld [vmem:[#allocation55_spill] sm:$0xff] }
 0x106   : > { %v1458_v21 = vmul.f32 %v7010_v55, %v6995_v52  ;;  %v7011_v41 = vld [vmem:[#allocation49_spill] sm:$0xff]  ;;  %v1460_v8 = vmul.f32 %v7012_v18, %v6995_v52  ;;  %v5041_v10 = vld [vmem:[%s2921_s9 + $0x198] sm:$0xff]  ;;  %v1461_v14 = vmul.f32 %v7014_v60, %v6995_v52  ;;  %v7017_v19 = vld [vmem:[#allocation68_spill] sm:$0xff] }
 0x107   : > { %v1459_v51 = vmul.f32 %v7011_v41, %v6995_v52  ;;  %7013 = vst [vmem:[#allocation14_spill] sm:$0xff] %v5041_v10  ;;  %v7015_v34 = vld [vmem:[#allocation59_spill] sm:$0xff]  ;;  %v1464_v55 = vmul.f32 %v7017_v19, %v6995_v52  ;;  %v7018_v30 = vld [vmem:[#allocation69_spill] sm:$0xff]  ;;  %v7019_v24 = vld [vmem:[#allocation10_spill] sm:$0xff] }
 0x108   : > { %v1462_v16 = vmul.f32 %v7015_v34, %v6995_v52  ;;  %v7016_v2 = vld [vmem:[#allocation63_spill] sm:$0xff]  ;;  %v1465_v41 = vmul.f32 %v7018_v30, %v6995_v52  ;;  %v1466_v18 = vmul.f32 %v7019_v24, %v6995_v52  ;;  %v7020_v9 = vld [vmem:[#allocation74_spill] sm:$0xff]  ;;  %v7024_v33 = vld [vmem:[#allocation85_spill] sm:$0xff] }
 0x109   : > { %v1463_v12 = vmul.f32 %v7016_v2, %v6995_v52  ;;  %v1467_v44 = vmul.f32 %v7020_v9, %v6995_v52  ;;  %v7021_v60 = vld [vmem:[#allocation79_spill] sm:$0xff]  ;;  %v7023_v34 = vld [vmem:[#allocation82_spill] sm:$0xff]  ;;  %v1470_v19 = vmul.f32 %v7024_v33, %v6995_v52  ;;  %v7026_v28 = vld [vmem:[#allocation36_spill] sm:$0xff]  ;;  %v5080_v33 = vadd.f32 %v1445_v32, %v4913_v57 }
 0x10a   : > { %v1468_v63 = vmul.f32 %v7021_v60, %v6995_v52  ;;  %v5060_v3 = vld [vmem:[%s2921_s9 + $0x1a0] sm:$0xff]  ;;  %v1469_v2 = vmul.f32 %v7023_v34, %v6995_v52  ;;  %v7025_v6 = vld [vmem:[#allocation18_spill] sm:$0xff]  ;;  %v1472_v24 = vmul.f32 %v6995_v52, %v7026_v28  ;;  %v1474_v60 = vmul.f32 %v6995_v52, %v5041_v10 }
 0x10b   : > { %7022 = vst [vmem:[#allocation19_spill] sm:$0xff] %v5060_v3  ;;  %v1471_v30 = vmul.f32 %v7025_v6, %v6995_v52  ;;  %v7027_v62 = vld [vmem:[#allocation40_spill] sm:$0xff]  ;;  %v1475_v20 = vmul.f32 %v6995_v52, %v5060_v3  ;;  %v5077_v34 = vadd.f32 %v1444_v37, %v4909_v38  ;;  %v5083_v6 = vadd.f32 %v1446_v54, %v4917_v46 }
 0x10c   : > { %v1473_v9 = vmul.f32 %v6995_v52, %v7027_v62  ;;  %v5086_v28 = vadd.f32 %v1447_v22, %v4920_v56  ;;  %v5089_v62 = vadd.f32 %v1448_v59, %v4923_v42  ;;  %v5092_v10 = vadd.f32 %v1449_v47, %v4926_v31 }
 0x10d   : > { %v5095_v52 = vadd.f32 %v1450_v45, %v4929_v40  ;;  %v5098_v38 = vadd.f32 %v1451_v43, %v4932_v53  ;;  %v5101_v57 = vadd.f32 %v1452_v29, %v4935_v27  ;;  %v5104_v46 = vadd.f32 %v1453_v50, %v4938_v5 }
 0x10e   : > { %v5107_v56 = vadd.f32 %v1454_v58, %v4941_v36  ;;  %v5110_v42 = vadd.f32 %v1455_v17, %v4944_v11  ;;  %v5113_v31 = vadd.f32 %v1456_v25, %v4947_v7  ;;  %v5116_v40 = vadd.f32 %v1457_v61, %v4950_v39  ;;  %v7069_v58 = vld [vmem:[#allocation75_spill] sm:$0xff]  ;;  %v7070_v17 = vld [vmem:[#allocation62_spill] sm:$0xff]  ;;  %v7072_v61 = vld [vmem:[#allocation80_spill] sm:$0xff] }
 0x10f   : > { %7028 = vst [vmem:[#allocation15_spill] sm:$0xff] %v5095_v52  ;;  %7029 = vst [vmem:[#allocation16_spill] sm:$0xff] %v5098_v38  ;;  %v5119_v53 = vadd.f32 %v1458_v21, %v4953_v26  ;;  %v5122_v27 = vadd.f32 %v1459_v51, %v4956_v1  ;;  %v5125_v5 = vadd.f32 %v1460_v8, %v4959_v48  ;;  %v7063_v8 = vld [vmem:[#allocation65_spill] sm:$0xff]  ;;  %v7071_v25 = vld [vmem:[#allocation66_spill] sm:$0xff] }
 0x110   : > { %7030 = vst [vmem:[#allocation20_spill] sm:$0xff] %v5101_v57  ;;  %7031 = vst [vmem:[#allocation21_spill] sm:$0xff] %v5104_v46  ;;  %v5128_v36 = vadd.f32 %v1461_v14, %v4962_v35  ;;  %v5131_v11 = vadd.f32 %v1462_v16, %v4965_v15  ;;  %v5134_v7 = vadd.f32 %v1463_v12, %v4968_v49  ;;  %v7046_v35 = vld [vmem:[#allocation17_spill] sm:$0xff]  ;;  %v7048_v15 = vld [vmem:[#allocation12_spill] sm:$0xff] }
 0x111   : > { %7032 = vst [vmem:[#allocation22_spill] sm:$0xff] %v5107_v56  ;;  %7033 = vst [vmem:[#allocation23_spill] sm:$0xff] %v5110_v42  ;;  %v5137_v39 = vadd.f32 %v1464_v55, %v4971_v23  ;;  %v5140_v26 = vadd.f32 %v1465_v41, %v4974_v4  ;;  %v5143_v1 = vadd.f32 %v1466_v18, %v4977_v0  ;;  %v7050_v49 = vld [vmem:[#allocation13_spill] sm:$0xff]  ;;  %v7052_v23 = vld [vmem:[#allocation27_spill] sm:$0xff] }
 0x112   : > { %7034 = vst [vmem:[#allocation24_spill] sm:$0xff] %v5113_v31  ;;  %7035 = vst [vmem:[#allocation25_spill] sm:$0xff] %v5116_v40  ;;  %v5146_v48 = vadd.f32 %v1467_v44, %v4980_v13  ;;  %v5149_v37 = vadd.f32 %v1468_v63, %v7046_v35  ;;  %v5152_v32 = vadd.f32 %v1469_v2, %v7048_v15  ;;  %v7054_v4 = vld [vmem:[#allocation8_spill] sm:$0xff]  ;;  %v7056_v0 = vld [vmem:[#allocation9_spill] sm:$0xff] }
 0x113   : > { %7036 = vst [vmem:[#allocation26_spill] sm:$0xff] %v5119_v53  ;;  %7037 = vst [vmem:[#allocation28_spill] sm:$0xff] %v5122_v27  ;;  %v5155_v54 = vadd.f32 %v1470_v19, %v7050_v49  ;;  %v5158_v22 = vadd.f32 %v1471_v30, %v7052_v23  ;;  %v5161_v59 = vadd.f32 %v1472_v24, %v7054_v4  ;;  %v7058_v13 = vld [vmem:[#allocation31_spill] sm:$0xff]  ;;  %v7062_v2 = vld [vmem:[#allocation48_spill] sm:$0xff] }
 0x114   : > { %7038 = vst [vmem:[#allocation32_spill] sm:$0xff] %v5125_v5  ;;  %7039 = vst [vmem:[#allocation29_spill] sm:$0xff] %v5128_v36  ;;  %v5164_v47 = vadd.f32 %v1473_v9, %v7056_v0  ;;  %v5167_v44 = vadd.f32 %v1474_v60, %v7058_v13  ;;  %v7060_v63 = vld [vmem:[#allocation35_spill] sm:$0xff]  ;;  %v1512_v43 = vmul.f32 %v7063_v8, %v7062_v2  ;;  %v7064_v19 = vld [vmem:[#allocation53_spill] sm:$0xff] }
 0x115   : > { %7040 = vst [vmem:[#allocation33_spill] sm:$0xff] %v5131_v11  ;;  %7041 = vst [vmem:[#allocation37_spill] sm:$0xff] %v5134_v7  ;;  %v5170_v45 = vadd.f32 %v1475_v20, %v7060_v63  ;;  %v1513_v51 = vmul.f32 %v7064_v19, %v7062_v2  ;;  %v7065_v30 = vld [vmem:[#allocation56_spill] sm:$0xff]  ;;  %v7066_v24 = vld [vmem:[#allocation70_spill] sm:$0xff]  ;;  %v5192_v14 = vmul.f32 %v7069_v58, %v7062_v2 }
 0x116   : > { %7042 = vst [vmem:[#allocation34_spill] sm:$0xff] %v5137_v39  ;;  %7043 = vst [vmem:[#allocation38_spill] sm:$0xff] %v5140_v26  ;;  %v1514_v29 = vmul.f32 %v7065_v30, %v7062_v2  ;;  %v5180_v18 = vmul.f32 %v7066_v24, %v7062_v2  ;;  %v7067_v9 = vld [vmem:[#allocation57_spill] sm:$0xff]  ;;  %v5196_v16 = vmul.f32 %v7070_v17, %v7062_v2  ;;  %v7073_v21 = vld [vmem:[#allocation67_spill] sm:$0xff] }
 0x117   : > { %7044 = vst [vmem:[#allocation46_spill] sm:$0xff] %v5143_v1  ;;  %7045 = vst [vmem:[#allocation39_spill] sm:$0xff] %v5146_v48  ;;  %v5184_v60 = vmul.f32 %v7067_v9, %v7062_v2  ;;  %v7068_v20 = vld [vmem:[#allocation61_spill] sm:$0xff]  ;;  %v5200_v12 = vmul.f32 %v7071_v25, %v7062_v2  ;;  %v5204_v55 = vmul.f32 %v7072_v61, %v7062_v2  ;;  %v7074_v35 = vld [vmem:[#allocation71_spill] sm:$0xff]  ;;  %v1609_v5 = vrot.slane %v1513_v51, 1 }
 0x118   : > { %7047 = vst [vmem:[#allocation42_spill] sm:$0xff] %v5149_v37  ;;  %7049 = vst [vmem:[#allocation51_spill] sm:$0xff] %v5152_v32  ;;  %v5188_v50 = vmul.f32 %v7068_v20, %v7062_v2  ;;  %v5208_v41 = vmul.f32 %v7073_v21, %v7062_v2  ;;  %v5212_v15 = vmul.f32 %v7074_v35, %v7062_v2  ;;  %v7075_v49 = vld [vmem:[#allocation84_spill] sm:$0xff]  ;;  %v7078_v61 = vld [vmem:[#allocation86_spill] sm:$0xff]  ;;  %v1619_v38 = vrot.slane %v5196_v16, 1 }
 0x119   : > { %7051 = vst [vmem:[#allocation43_spill] sm:$0xff] %v5155_v54  ;;  %7053 = vst [vmem:[#allocation47_spill] sm:$0xff] %v5158_v22  ;;  %v5216_v23 = vmul.f32 %v7075_v49, %v7062_v2  ;;  %v7076_v4 = vld [vmem:[#allocation72_spill] sm:$0xff]  ;;  %v5228_v21 = vmul.f32 %v7078_v61, %v7062_v2  ;;  %v7079_v25 = vld [vmem:[#allocation77_spill] sm:$0xff]  ;;  %v1621_v52 = vrot.slane %v5200_v12, 1 }
 0x11a   : > { %7055 = vst [vmem:[#allocation60_spill] sm:$0xff] %v5161_v59  ;;  %7057 = vst [vmem:[#allocation17_spill] sm:$0xff] %v5164_v47  ;;  %v5220_v0 = vmul.f32 %v7076_v4, %v7062_v2  ;;  %v7077_v13 = vld [vmem:[#allocation76_spill] sm:$0xff]  ;;  %v5232_v35 = vmul.f32 %v7079_v25, %v7062_v2  ;;  %v7080_v17 = vld [vmem:[#allocation81_spill] sm:$0xff] }
 0x11b   : > { %7059 = vst [vmem:[#allocation12_spill] sm:$0xff] %v5167_v44  ;;  %7061 = vst [vmem:[#allocation13_spill] sm:$0xff] %v5170_v45  ;;  %v5224_v63 = vmul.f32 %v7077_v13, %v7062_v2  ;;  %v5236_v49 = vmul.f32 %v7080_v17, %v7062_v2  ;;  %v7081_v58 = vld [vmem:[#allocation87_spill] sm:$0xff]  ;;  %v7082_v20 = vld [vmem:[#allocation41_spill] sm:$0xff] }
 0x11c   : > { %v5240_v4 = vmul.f32 %v7081_v58, %v7062_v2  ;;  %v5244_v13 = vmul.f32 %v7082_v20, %v7062_v2  ;;  %v7083_v9 = vld [vmem:[#allocation44_spill] sm:$0xff]  ;;  %v7084_v24 = vld [vmem:[#allocation45_spill] sm:$0xff]  ;;  %v7086_v58 = vld [vmem:[#allocation50_spill] sm:$0xff]  ;;  %v1634_v16 = vrot.slane %v5232_v35, 1 }
 0x11d   : > { %v5248_v61 = vmul.f32 %v7083_v9, %v7062_v2  ;;  %v5252_v25 = vmul.f32 %v7084_v24, %v7062_v2  ;;  %v7085_v30 = vld [vmem:[#allocation49_spill] sm:$0xff]  ;;  %v5260_v19 = vmul.f32 %v7086_v58, %v7062_v2  ;;  %v7087_v20 = vld [vmem:[#allocation54_spill] sm:$0xff]  ;;  %v7088_v9 = vld [vmem:[#allocation55_spill] sm:$0xff] }
 0x11e   : > { %v5256_v17 = vmul.f32 %v7085_v30, %v7062_v2  ;;  %v5264_v8 = vmul.f32 %v7087_v20, %v7062_v2  ;;  %v5268_v45 = vmul.f32 %v7088_v9, %v7062_v2  ;;  %v7089_v24 = vld [vmem:[#allocation58_spill] sm:$0xff]  ;;  %v7090_v47 = vld [vmem:[#allocation59_spill] sm:$0xff]  ;;  %v7092_v22 = vld [vmem:[#allocation64_spill] sm:$0xff]  ;;  %v1639_v12 = vrot.slane %v5244_v13, 1 }
 0x11f   : > { %v5272_v44 = vmul.f32 %v7089_v24, %v7062_v2  ;;  %v5276_v30 = vmul.f32 %v7090_v47, %v7062_v2  ;;  %v7091_v59 = vld [vmem:[#allocation63_spill] sm:$0xff]  ;;  %v5284_v20 = vmul.f32 %v7092_v22, %v7062_v2  ;;  %v7093_v54 = vld [vmem:[#allocation68_spill] sm:$0xff]  ;;  %v7094_v32 = vld [vmem:[#allocation69_spill] sm:$0xff]  ;;  %v1622_v13 = vsel %vm494_vm0, %v1619_v38, %v1621_v52 }
 0x120   : > { %v5280_v58 = vmul.f32 %v7091_v59, %v7062_v2  ;;  %v5288_v9 = vmul.f32 %v7093_v54, %v7062_v2  ;;  %v5292_v24 = vmul.f32 %v7094_v32, %v7062_v2  ;;  %v7095_v37 = vld [vmem:[#allocation73_spill] sm:$0xff]  ;;  %v7096_v48 = vld [vmem:[#allocation10_spill] sm:$0xff]  ;;  %v7099_v39 = vld [vmem:[#allocation79_spill] sm:$0xff]  ;;  %v1649_v35 = vrot.slane %v5268_v45, 1 }
 0x121   : > { %v5296_v47 = vmul.f32 %v7095_v37, %v7062_v2  ;;  %v5300_v59 = vmul.f32 %v7096_v48, %v7062_v2  ;;  %v7097_v1 = vld [vmem:[#allocation74_spill] sm:$0xff]  ;;  %v5312_v32 = vmul.f32 %v7099_v39, %v7062_v2  ;;  %v5315_v7 = vld [vmem:[%s2921_s9 + $0x1a8] sm:$0x3]  ;;  %v7102_v48 = vld [vmem:[#allocation83_spill] sm:$0xff] }
 0x122   : > { %v5304_v22 = vmul.f32 %v7097_v1, %v7062_v2  ;;  %v7098_v26 = vld [vmem:[#allocation78_spill] sm:$0xff]  ;;  %7100 = vst [vmem:[#allocation27_spill] sm:$0xff] %v5315_v7  ;;  %v5323_v36 = vmul.f32 %v7102_v48, %v7062_v2  ;;  %v1608_v1 = vrot.slane %v1512_v43, 1  ;;  %v7103_v27 = vld [vmem:[#allocation85_spill] sm:$0xff]  ;;  %v7105_v40 = vld [vmem:[#allocation11_spill] sm:$0xff] }
 0x123   : > { %v5308_v54 = vmul.f32 %v7098_v26, %v7062_v2  ;;  %v7101_v37 = vld [vmem:[#allocation82_spill] sm:$0xff]  ;;  %v5327_v26 = vmul.f32 %v7103_v27, %v7062_v2  ;;  %v5335_v31 = vmul.f32 %v7105_v40, %v7062_v2  ;;  %v7106_v42 = vld [vmem:[#allocation36_spill] sm:$0xff]  ;;  %v5355_v40 = vmul.f32 %v7062_v2, %v5060_v3 }
 0x124   : > { %v5319_v11 = vmul.f32 %v7101_v37, %v7062_v2  ;;  %v7104_v53 = vld [vmem:[#allocation18_spill] sm:$0xff]  ;;  %v1611_v37 = vrot.slane %v1514_v29, 1  ;;  %v5339_v56 = vmul.f32 %v7062_v2, %v7106_v42  ;;  %v7107_v48 = vld [vmem:[#allocation40_spill] sm:$0xff]  ;;  %v5359_v42 = vmul.f32 %v7062_v2, %v5315_v7 }
 0x125   : > { %v5331_v39 = vmul.f32 %v7104_v53, %v7062_v2  ;;  %v5343_v43 = vmul.f32 %v7062_v2, %v7107_v48  ;;  %v7108_v51 = vld [vmem:[#allocation30_spill] sm:$0xff]  ;;  %v1613_v29 = vrot.slane %v5180_v18, 1  ;;  %v1614_v48 = vrot.slane %v5184_v60, 1 }
 0x126   : > { %v5347_v27 = vmul.f32 %v7062_v2, %v7108_v51  ;;  %v7109_v46 = vld [vmem:[#allocation14_spill] sm:$0xff]  ;;  %v5364_v57 = vsel %vm494_vm0, %v1608_v1, %v1609_v5  ;;  %v1616_v51 = vrot.slane %v5188_v50, 1  ;;  %v5370_v3 = vsel %vm494_vm0, %v1609_v5, %v1611_v37 }
 0x127   : > { %v5351_v53 = vmul.f32 %v7062_v2, %v7109_v46  ;;  %v1618_v46 = vrot.slane %v5192_v14, 1  ;;  %v1623_v2 = vrot.slane %v5204_v55, 1  ;;  %v1624_v18 = vrot.slane %v5208_v41, 1 }
 0x128   : > { %v1626_v60 = vrot.slane %v5212_v15, 1  ;;  %v1628_v1 = vrot.slane %v5216_v23, 1  ;;  %v1629_v7 = vrot.slane %v5220_v0, 1  ;;  %v1631_v50 = vrot.slane %v5224_v63, 1 }
 0x129   : > { %v1633_v14 = vrot.slane %v5228_v21, 1  ;;  %v1636_v5 = vrot.slane %v5236_v49, 1  ;;  %v1638_v37 = vrot.slane %v5240_v4, 1  ;;  %v1641_v55 = vrot.slane %v5248_v61, 1 }
 0x12a   : > { %v1643_v41 = vrot.slane %v5252_v25, 1  ;;  %v1644_v15 = vrot.slane %v5256_v17, 1  ;;  %v1615_v23 = vsel %vm494_vm0, %v1613_v29, %v1614_v48  ;;  %v1646_v0 = vrot.slane %v5260_v19, 1 }
 0x12b   : > { %v1648_v21 = vrot.slane %v5264_v8, 1  ;;  %v1617_v49 = vsel %vm494_vm0, %v1614_v48, %v1616_v51  ;;  %v1620_v4 = vsel %vm494_vm0, %v1618_v46, %v1619_v38  ;;  %v1625_v61 = vsel %vm494_vm0, %v1623_v2, %v1624_v18 }
 0x12c   : > { %v1627_v25 = vsel %vm494_vm0, %v1624_v18, %v1626_v60  ;;  %v1630_v17 = vsel %vm494_vm0, %v1628_v1, %v1629_v7  ;;  %v1632_v63 = vsel %vm494_vm0, %v1629_v7, %v1631_v50  ;;  %v1635_v19 = vsel %vm494_vm0, %v1633_v14, %v1634_v16 }
 0x12d   : > { %v1637_v8 = vsel %vm494_vm0, %v1634_v16, %v1636_v5  ;;  %v1640_v45 = vsel %vm494_vm0, %v1638_v37, %v1639_v12  ;;  %v1642_v29 = vsel %vm494_vm0, %v1639_v12, %v1641_v55  ;;  %v1645_v46 = vsel %vm494_vm0, %v1643_v41, %v1644_v15 }
 0x12e   : > { %v1647_v52 = vsel %vm494_vm0, %v1644_v15, %v1646_v0  ;;  %v1650_v38 = vsel %vm494_vm0, %v1648_v21, %v1649_v35  ;;  %v1651_v48 = vrot.slane %v5272_v44, 1  ;;  %v1653_v51 = vrot.slane %v5276_v30, 1 }
 0x12f   : > { %v1654_v7 = vrot.slane %v5280_v58, 1  ;;  %v1656_v2 = vrot.slane %v5284_v20, 1  ;;  %v1658_v18 = vrot.slane %v5288_v9, 1  ;;  %v1659_v60 = vrot.slane %v5292_v24, 1 }
 0x130   : > { %v1661_v1 = vrot.slane %v5296_v47, 1  ;;  %v1663_v50 = vrot.slane %v5300_v59, 1  ;;  %v1664_v14 = vrot.slane %v5304_v22, 1  ;;  %v1666_v16 = vrot.slane %v5308_v54, 1 }
 0x131   : > { %v1668_v44 = vrot.slane %v5312_v32, 1  ;;  %v1669_v30 = vrot.slane %v5319_v11, 1  ;;  %v1671_v58 = vrot.slane %v5323_v36, 1  ;;  %v1673_v20 = vrot.slane %v5327_v26, 1 }
 0x132   : > { %v1674_v9 = vrot.slane %v5331_v39, 1  ;;  %v1676_v24 = vrot.slane %v5335_v31, 1  ;;  %v1678_v47 = vrot.slane %v5339_v56, 1  ;;  %v1679_v59 = vrot.slane %v5343_v43, 1 }
 0x133   : > { %v1652_v22 = vsel %vm494_vm0, %v1649_v35, %v1651_v48  ;;  %v1681_v54 = vrot.slane %v5347_v27, 1  ;;  %v1683_v32 = vrot.slane %v5351_v53, 1  ;;  %v1684_v11 = vrot.slane %v5355_v40, 1 }
 0x134   : > { %v1655_v36 = vsel %vm494_vm0, %v1653_v51, %v1654_v7  ;;  %v1657_v26 = vsel %vm494_vm0, %v1654_v7, %v1656_v2  ;;  %v1660_v39 = vsel %vm494_vm0, %v1658_v18, %v1659_v60  ;;  %v1686_v31 = vrot.slane %v5359_v42, 1  ;;  %v7111_v7 = vld [vmem:[#allocation16_spill] sm:$0xff] }
 0x135   : > { %v1662_v56 = vsel %vm494_vm0, %v1659_v60, %v1661_v1  ;;  %v1665_v43 = vsel %vm494_vm0, %v1663_v50, %v1664_v14  ;;  %v1667_v5 = vsel %vm494_vm0, %v1664_v14, %v1666_v16  ;;  %v1670_v27 = vsel %vm494_vm0, %v1668_v44, %v1669_v30 }
 0x136   : > { %v1672_v53 = vsel %vm494_vm0, %v1669_v30, %v1671_v58  ;;  %v1675_v40 = vsel %vm494_vm0, %v1673_v20, %v1674_v9  ;;  %v1677_v37 = vsel %vm494_vm0, %v1674_v9, %v1676_v24  ;;  %v1680_v12 = vsel %vm494_vm0, %v1678_v47, %v1679_v59  ;;  %v7145_v24 = vld [vmem:[#allocation42_spill] sm:$0xff] }
 0x137   : > { %v1682_v55 = vsel %vm494_vm0, %v1679_v59, %v1681_v54  ;;  %v1685_v42 = vsel %vm494_vm0, %v1683_v32, %v1684_v11  ;;  %v5443_v41 = vadd.f32 %v5364_v57, %v5077_v34  ;;  %v5447_v15 = vadd.f32 %v5370_v3, %v5080_v33  ;;  %v7110_v34 = vld [vmem:[#allocation15_spill] sm:$0xff]  ;;  %v7113_v3 = vld [vmem:[#allocation20_spill] sm:$0xff] }
 0x138   : > { %v1687_v0 = vsel %vm494_vm0, %v1684_v11, %v1686_v31  ;;  %v5451_v21 = vadd.f32 %v1615_v23, %v5083_v6  ;;  %v5454_v35 = vadd.f32 %v1617_v49, %v5086_v28  ;;  %v5457_v48 = vadd.f32 %v1620_v4, %v5089_v62  ;;  %v7115_v6 = vld [vmem:[#allocation21_spill] sm:$0xff]  ;;  %v7117_v28 = vld [vmem:[#allocation22_spill] sm:$0xff]  ;;  %v7119_v62 = vld [vmem:[#allocation23_spill] sm:$0xff] }
 0x139   : > { %v5460_v51 = vadd.f32 %v1622_v13, %v5092_v10  ;;  %v5463_v57 = vadd.f32 %v1625_v61, %v7110_v34  ;;  %v5466_v33 = vadd.f32 %v1627_v25, %v7111_v7  ;;  %v5469_v2 = vadd.f32 %v1630_v17, %v7113_v3  ;;  %v7121_v10 = vld [vmem:[#allocation24_spill] sm:$0xff]  ;;  %v7123_v61 = vld [vmem:[#allocation25_spill] sm:$0xff]  ;;  %v7125_v25 = vld [vmem:[#allocation26_spill] sm:$0xff] }
 0x13a   : > { %v5472_v23 = vadd.f32 %v1632_v63, %v7115_v6  ;;  %v5475_v49 = vadd.f32 %v1635_v19, %v7117_v28  ;;  %v5478_v4 = vadd.f32 %v1637_v8, %v7119_v62  ;;  %v5481_v13 = vadd.f32 %v1640_v45, %v7121_v10  ;;  %v7127_v17 = vld [vmem:[#allocation28_spill] sm:$0xff]  ;;  %v7131_v19 = vld [vmem:[#allocation29_spill] sm:$0xff]  ;;  %v7147_v59 = vld [vmem:[#allocation51_spill] sm:$0xff] }
 0x13b   : > { %7112 = vst [vmem:[#allocation8_spill] sm:$0xff] %v5466_v33  ;;  %7114 = vst [vmem:[#allocation9_spill] sm:$0xff] %v5469_v2  ;;  %v5484_v18 = vadd.f32 %v1642_v29, %v7123_v61  ;;  %v5487_v60 = vadd.f32 %v1645_v46, %v7125_v25  ;;  %v5490_v1 = vadd.f32 %v1647_v52, %v7127_v17  ;;  %v7129_v63 = vld [vmem:[#allocation32_spill] sm:$0xff]  ;;  %v7133_v8 = vld [vmem:[#allocation33_spill] sm:$0xff] }
 0x13c   : > { %7116 = vst [vmem:[#allocation31_spill] sm:$0xff] %v5472_v23  ;;  %7118 = vst [vmem:[#allocation35_spill] sm:$0xff] %v5475_v49  ;;  %v5493_v50 = vadd.f32 %v1650_v38, %v7129_v63  ;;  %v5496_v14 = vadd.f32 %v1652_v22, %v7131_v19  ;;  %v5499_v16 = vadd.f32 %v1655_v36, %v7133_v8  ;;  %v7135_v45 = vld [vmem:[#allocation37_spill] sm:$0xff]  ;;  %v7137_v29 = vld [vmem:[#allocation34_spill] sm:$0xff] }
 0x13d   : > { %7120 = vst [vmem:[#allocation48_spill] sm:$0xff] %v5478_v4  ;;  %7122 = vst [vmem:[#allocation36_spill] sm:$0xff] %v5481_v13  ;;  %v5502_v44 = vadd.f32 %v1657_v26, %v7135_v45  ;;  %v5505_v30 = vadd.f32 %v1660_v39, %v7137_v29  ;;  %v7139_v46 = vld [vmem:[#allocation38_spill] sm:$0xff]  ;;  %v7143_v38 = vld [vmem:[#allocation39_spill] sm:$0xff]  ;;  %v5517_v47 = vadd.f32 %v1670_v27, %v7145_v24 }
 0x13e   : > { %7124 = vst [vmem:[#allocation40_spill] sm:$0xff] %v5484_v18  ;;  %7126 = vst [vmem:[#allocation30_spill] sm:$0xff] %v5487_v60  ;;  %v5508_v58 = vadd.f32 %v1662_v56, %v7139_v46  ;;  %v7141_v52 = vld [vmem:[#allocation46_spill] sm:$0xff]  ;;  %v5514_v9 = vadd.f32 %v1667_v5, %v7143_v38  ;;  %v5520_v22 = vadd.f32 %v1672_v53, %v7147_v59  ;;  %v7149_v54 = vld [vmem:[#allocation43_spill] sm:$0xff] }
 0x13f   : > { %7128 = vst [vmem:[#allocation15_spill] sm:$0xff] %v5490_v1  ;;  %7130 = vst [vmem:[#allocation16_spill] sm:$0xff] %v5493_v50  ;;  %v5511_v20 = vadd.f32 %v1665_v43, %v7141_v52  ;;  %v5523_v32 = vadd.f32 %v1675_v40, %v7149_v54  ;;  %v7151_v11 = vld [vmem:[#allocation47_spill] sm:$0xff]  ;;  %v7153_v26 = vld [vmem:[#allocation60_spill] sm:$0xff] }
 0x140   : > { %7132 = vst [vmem:[#allocation20_spill] sm:$0xff] %v5496_v14  ;;  %7134 = vst [vmem:[#allocation21_spill] sm:$0xff] %v5499_v16  ;;  %v5526_v36 = vadd.f32 %v1677_v37, %v7151_v11  ;;  %v5529_v39 = vadd.f32 %v1680_v12, %v7153_v26  ;;  %v7155_v31 = vld [vmem:[#allocation17_spill] sm:$0xff]  ;;  %v7157_v43 = vld [vmem:[#allocation12_spill] sm:$0xff] }
 0x141   : > { %7136 = vst [vmem:[#allocation22_spill] sm:$0xff] %v5502_v44  ;;  %7138 = vst [vmem:[#allocation23_spill] sm:$0xff] %v5505_v30  ;;  %v5532_v56 = vadd.f32 %v1682_v55, %v7155_v31  ;;  %v5535_v5 = vadd.f32 %v1685_v42, %v7157_v43  ;;  %v7159_v27 = vld [vmem:[#allocation13_spill] sm:$0xff]  ;;  %v7161_v53 = vld [vmem:[#allocation52_spill] sm:$0xff] }
 0x142   : > { %7140 = vst [vmem:[#allocation24_spill] sm:$0xff] %v5508_v58  ;;  %7142 = vst [vmem:[#allocation25_spill] sm:$0xff] %v5511_v20  ;;  %v5538_v34 = vadd.f32 %v1687_v0, %v7159_v27  ;;  %v7162_v7 = vld [vmem:[#allocation65_spill] sm:$0xff]  ;;  %v7164_v12 = vld [vmem:[#allocation56_spill] sm:$0xff] }
 0x143   : > { %7144 = vst [vmem:[#allocation26_spill] sm:$0xff] %v5514_v9  ;;  %7146 = vst [vmem:[#allocation28_spill] sm:$0xff] %v5517_v47  ;;  %v5542_v3 = vmul.f32 %v7162_v7, %v7161_v53  ;;  %v7163_v40 = vld [vmem:[#allocation53_spill] sm:$0xff]  ;;  %v5550_v6 = vmul.f32 %v7164_v12, %v7161_v53  ;;  %v7165_v55 = vld [vmem:[#allocation70_spill] sm:$0xff] }
 0x144   : > { %7148 = vst [vmem:[#allocation32_spill] sm:$0xff] %v5520_v22  ;;  %7150 = vst [vmem:[#allocation29_spill] sm:$0xff] %v5523_v32  ;;  %v5546_v37 = vmul.f32 %v7163_v40, %v7161_v53  ;;  %v5554_v28 = vmul.f32 %v7165_v55, %v7161_v53  ;;  %v7166_v42 = vld [vmem:[#allocation57_spill] sm:$0xff]  ;;  %v7168_v61 = vld [vmem:[#allocation75_spill] sm:$0xff] }
 0x145   : > { %7152 = vst [vmem:[#allocation33_spill] sm:$0xff] %v5526_v36  ;;  %7154 = vst [vmem:[#allocation37_spill] sm:$0xff] %v5529_v39  ;;  %v5558_v0 = vmul.f32 %v7166_v42, %v7161_v53  ;;  %v7167_v62 = vld [vmem:[#allocation61_spill] sm:$0xff]  ;;  %v5566_v25 = vmul.f32 %v7168_v61, %v7161_v53  ;;  %v7169_v17 = vld [vmem:[#allocation62_spill] sm:$0xff]  ;;  %v1855_v50 = vrot.slane %v5550_v6, 2 }
 0x146   : > { %7156 = vst [vmem:[#allocation34_spill] sm:$0xff] %v5532_v56  ;;  %7158 = vst [vmem:[#allocation38_spill] sm:$0xff] %v5535_v5  ;;  %v5562_v10 = vmul.f32 %v7167_v62, %v7161_v53  ;;  %v5570_v63 = vmul.f32 %v7169_v17, %v7161_v53  ;;  %v7170_v19 = vld [vmem:[#allocation66_spill] sm:$0xff]  ;;  %v7171_v45 = vld [vmem:[#allocation80_spill] sm:$0xff]  ;;  %v1857_v1 = vrot.slane %v5554_v28, 2 }
 0x147   : > { %7160 = vst [vmem:[#allocation46_spill] sm:$0xff] %v5538_v34  ;;  %v1764_v8 = vmul.f32 %v7170_v19, %v7161_v53  ;;  %v1765_v29 = vmul.f32 %v7171_v45, %v7161_v53  ;;  %v7172_v46 = vld [vmem:[#allocation67_spill] sm:$0xff]  ;;  %v7174_v59 = vld [vmem:[#allocation84_spill] sm:$0xff]  ;;  %v7177_v27 = vld [vmem:[#allocation86_spill] sm:$0xff] }
 0x148   : > { %v5578_v52 = vmul.f32 %v7172_v46, %v7161_v53  ;;  %v7173_v38 = vld [vmem:[#allocation71_spill] sm:$0xff]  ;;  %v5586_v54 = vmul.f32 %v7174_v59, %v7161_v53  ;;  %v7175_v11 = vld [vmem:[#allocation72_spill] sm:$0xff]  ;;  %v5598_v7 = vmul.f32 %v7177_v27, %v7161_v53  ;;  %v7178_v40 = vld [vmem:[#allocation77_spill] sm:$0xff]  ;;  %v1860_v60 = vrot.slane %v5562_v10, 2 }
 0x149   : > { %v5582_v24 = vmul.f32 %v7173_v38, %v7161_v53  ;;  %v5590_v26 = vmul.f32 %v7175_v11, %v7161_v53  ;;  %v7176_v31 = vld [vmem:[#allocation76_spill] sm:$0xff]  ;;  %v5602_v12 = vmul.f32 %v7178_v40, %v7161_v53  ;;  %v7179_v55 = vld [vmem:[#allocation81_spill] sm:$0xff]  ;;  %v7180_v62 = vld [vmem:[#allocation87_spill] sm:$0xff]  ;;  %v1863_v18 = vrot.slane %v5570_v63, 2 }
 0x14a   : > { %v5594_v43 = vmul.f32 %v7176_v31, %v7161_v53  ;;  %v5606_v42 = vmul.f32 %v7179_v55, %v7161_v53  ;;  %v5610_v61 = vmul.f32 %v7180_v62, %v7161_v53  ;;  %v7181_v17 = vld [vmem:[#allocation41_spill] sm:$0xff]  ;;  %v7182_v45 = vld [vmem:[#allocation44_spill] sm:$0xff]  ;;  %v7185_v27 = vld [vmem:[#allocation50_spill] sm:$0xff]  ;;  %v1867_v4 = vrot.slane %v1765_v29, 2 }
 0x14b   : > { %v5614_v19 = vmul.f32 %v7181_v17, %v7161_v53  ;;  %v5618_v46 = vmul.f32 %v7182_v45, %v7161_v53  ;;  %v7183_v38 = vld [vmem:[#allocation45_spill] sm:$0xff]  ;;  %v5630_v40 = vmul.f32 %v7185_v27, %v7161_v53  ;;  %v7186_v55 = vld [vmem:[#allocation54_spill] sm:$0xff]  ;;  %v7187_v17 = vld [vmem:[#allocation55_spill] sm:$0xff]  ;;  %v1870_v63 = vrot.slane %v5582_v24, 2 }
 0x14c   : > { %v5622_v59 = vmul.f32 %v7183_v38, %v7161_v53  ;;  %v7184_v11 = vld [vmem:[#allocation49_spill] sm:$0xff]  ;;  %v5634_v62 = vmul.f32 %v7186_v55, %v7161_v53  ;;  %v5638_v45 = vmul.f32 %v7187_v17, %v7161_v53  ;;  %v7188_v34 = vld [vmem:[#allocation58_spill] sm:$0xff]  ;;  %v7189_v5 = vld [vmem:[#allocation59_spill] sm:$0xff] }
 0x14d   : > { %v5626_v31 = vmul.f32 %v7184_v11, %v7161_v53  ;;  %v5642_v38 = vmul.f32 %v7188_v34, %v7161_v53  ;;  %v5646_v11 = vmul.f32 %v7189_v5, %v7161_v53  ;;  %v7190_v56 = vld [vmem:[#allocation63_spill] sm:$0xff]  ;;  %v7191_v39 = vld [vmem:[#allocation64_spill] sm:$0xff]  ;;  %v7193_v32 = vld [vmem:[#allocation69_spill] sm:$0xff] }
 0x14e   : > { %v5650_v27 = vmul.f32 %v7190_v56, %v7161_v53  ;;  %v5654_v55 = vmul.f32 %v7191_v39, %v7161_v53  ;;  %v7192_v36 = vld [vmem:[#allocation68_spill] sm:$0xff]  ;;  %v5662_v34 = vmul.f32 %v7193_v32, %v7161_v53  ;;  %v7194_v22 = vld [vmem:[#allocation73_spill] sm:$0xff]  ;;  %v7195_v47 = vld [vmem:[#allocation10_spill] sm:$0xff] }
 0x14f   : > { %v5658_v17 = vmul.f32 %v7192_v36, %v7161_v53  ;;  %v5666_v5 = vmul.f32 %v7194_v22, %v7161_v53  ;;  %v5670_v56 = vmul.f32 %v7195_v47, %v7161_v53  ;;  %v7196_v9 = vld [vmem:[#allocation74_spill] sm:$0xff]  ;;  %v7198_v58 = vld [vmem:[#allocation79_spill] sm:$0xff]  ;;  %v2710_v28 = vld [vmem:[%s2921_s9 + $0x188] sm:$0xff] }
 0x150   : > { %v5674_v39 = vmul.f32 %v7196_v9, %v7161_v53  ;;  %v7197_v20 = vld [vmem:[#allocation78_spill] sm:$0xff]  ;;  %v5682_v32 = vmul.f32 %v7198_v58, %v7161_v53  ;;  %v7200_v44 = vld [vmem:[#allocation83_spill] sm:$0xff]  ;;  %v7201_v9 = vld [vmem:[#allocation85_spill] sm:$0xff]  ;;  %v1852_v58 = vrot.slane %v5542_v3, 2  ;;  %v1865_v3 = vrot.slane %v1764_v8, 2 }
 0x151   : > { %v5678_v36 = vmul.f32 %v7197_v20, %v7161_v53  ;;  %v7199_v30 = vld [vmem:[#allocation82_spill] sm:$0xff]  ;;  %v5690_v47 = vmul.f32 %v7200_v44, %v7161_v53  ;;  %v5694_v16 = vmul.f32 %v7201_v9, %v7161_v53  ;;  %v1858_v44 = vrot.slane %v5558_v0, 2  ;;  %v2709_v49 = vld [vmem:[%s2921_s9 + $0x180] sm:$0xff]  ;;  %v2711_v10 = vld [vmem:[%s2921_s9 + $0x190] sm:$0x3] }
 0x152   : > { %v5686_v22 = vmul.f32 %v7199_v30, %v7161_v53  ;;  %v7202_v20 = vld [vmem:[#allocation18_spill] sm:$0xff]  ;;  %v1853_v30 = vrot.slane %v5546_v37, 2  ;;  %v1862_v9 = vrot.slane %v5566_v25, 2  ;;  %v1868_v37 = vrot.slane %v5578_v52, 2  ;;  %v7205_v29 = vld [vmem:[#allocation19_spill] sm:$0xff] }
 0x153   : > { %v5698_v14 = vmul.f32 %v7202_v20, %v7161_v53  ;;  %v7203_v20 = vld [vmem:[#allocation11_spill] sm:$0xff]  ;;  %v5715_v6 = vmul.f32 %v2709_v49, %v7161_v53  ;;  %v5719_v0 = vmul.f32 %v2710_v28, %v7161_v53  ;;  %v5723_v25 = vmul.f32 %v2711_v10, %v7161_v53 }
 0x154   : > { %v5710_v13 = vmul.f32 %v7203_v20, %v7161_v53  ;;  %v7204_v20 = vld [vmem:[#allocation14_spill] sm:$0xff]  ;;  %v5732_v52 = vmul.f32 %v7161_v53, %v7205_v29  ;;  %v7206_v49 = vld [vmem:[#allocation27_spill] sm:$0xff]  ;;  %v1854_v28 = vsel %vm739_vm1, %v1852_v58, %v1853_v30  ;;  %v1856_v2 = vsel %vm739_vm1, %v1853_v30, %v1855_v50 }
 0x155   : > { %v5728_v8 = vmul.f32 %v7161_v53, %v7204_v20  ;;  %v5736_v23 = vmul.f32 %v7161_v53, %v7206_v49  ;;  %v1859_v10 = vsel %vm739_vm1, %v1857_v1, %v1858_v44  ;;  %v1861_v24 = vsel %vm739_vm1, %v1858_v44, %v1860_v60 }
 0x156   : > { %v5743_v33 = vsel %vm739_vm1, %v1862_v9, %v1863_v18  ;;  %v5746_v20 = vsel %vm739_vm1, %v1863_v18, %v1865_v3  ;;  %v5749_v29 = vsel %vm739_vm1, %v1867_v4, %v1868_v37  ;;  %v1872_v53 = vrot.slane %v5586_v54, 2 }
 0x157   : > { %v1873_v49 = vrot.slane %v5590_v26, 2  ;;  %v5754_v58 = vsel %vm739_vm1, %v1868_v37, %v1870_v63  ;;  %v1875_v1 = vrot.slane %v5594_v43, 2  ;;  %v1877_v60 = vrot.slane %v5598_v7, 2 }
 0x158   : > { %v1878_v50 = vrot.slane %v5602_v12, 2  ;;  %v1880_v30 = vrot.slane %v5606_v42, 2  ;;  %v1882_v18 = vrot.slane %v5610_v61, 2  ;;  %v1883_v4 = vrot.slane %v5614_v19, 2 }
 0x159   : > { %v1885_v44 = vrot.slane %v5618_v46, 2  ;;  %v1887_v54 = vrot.slane %v5622_v59, 2  ;;  %v1888_v26 = vrot.slane %v5626_v31, 2  ;;  %v1890_v9 = vrot.slane %v5630_v40, 2 }
 0x15a   : > { %v1892_v43 = vrot.slane %v5634_v62, 2  ;;  %v1893_v7 = vrot.slane %v5638_v45, 2  ;;  %v1895_v12 = vrot.slane %v5642_v38, 2  ;;  %v1897_v42 = vrot.slane %v5646_v11, 2 }
 0x15b   : > { %v1898_v61 = vrot.slane %v5650_v27, 2  ;;  %v1874_v19 = vsel %vm739_vm1, %v1872_v53, %v1873_v49  ;;  %v1900_v46 = vrot.slane %v5654_v55, 2  ;;  %v1902_v59 = vrot.slane %v5658_v17, 2 }
 0x15c   : > { %v1903_v31 = vrot.slane %v5662_v34, 2  ;;  %v1876_v40 = vsel %vm739_vm1, %v1873_v49, %v1875_v1  ;;  %v1879_v62 = vsel %vm739_vm1, %v1877_v60, %v1878_v50  ;;  %v1881_v45 = vsel %vm739_vm1, %v1878_v50, %v1880_v30 }
 0x15d   : > { %v1905_v38 = vrot.slane %v5666_v5, 2  ;;  %v1884_v11 = vsel %vm739_vm1, %v1882_v18, %v1883_v4  ;;  %v1886_v27 = vsel %vm739_vm1, %v1883_v4, %v1885_v44  ;;  %v1889_v3 = vsel %vm739_vm1, %v1887_v54, %v1888_v26 }
 0x15e   : > { %v1891_v55 = vsel %vm739_vm1, %v1888_v26, %v1890_v9  ;;  %v1894_v17 = vsel %vm739_vm1, %v1892_v43, %v1893_v7  ;;  %v1896_v34 = vsel %vm739_vm1, %v1893_v7, %v1895_v12  ;;  %v1899_v37 = vsel %vm739_vm1, %v1897_v42, %v1898_v61 }
 0x15f   : > { %v1907_v63 = vrot.slane %v5670_v56, 2  ;;  %v1901_v53 = vsel %vm739_vm1, %v1898_v61, %v1900_v46  ;;  %v1904_v5 = vsel %vm739_vm1, %v1902_v59, %v1903_v31  ;;  %v1908_v49 = vrot.slane %v5674_v39, 2  ;;  %v7208_v46 = vld [vmem:[#allocation9_spill] sm:$0xff] }
 0x160   : > { %v1910_v1 = vrot.slane %v5678_v36, 2  ;;  %v1906_v60 = vsel %vm739_vm1, %v1903_v31, %v1905_v38  ;;  %v1912_v50 = vrot.slane %v5682_v32, 2  ;;  %v1913_v30 = vrot.slane %v5686_v22, 2  ;;  %v7209_v31 = vld [vmem:[#allocation31_spill] sm:$0xff] }
 0x161   : > { %v1915_v18 = vrot.slane %v5690_v47, 2  ;;  %v1917_v4 = vrot.slane %v5694_v16, 2  ;;  %v5797_v56 = vadd.f32 %v1854_v28, %v5443_v41  ;;  %v5800_v44 = vadd.f32 %v1856_v2, %v5447_v15 }
 0x162   : > { %v5803_v39 = vadd.f32 %v1859_v10, %v5451_v21  ;;  %v1918_v36 = vrot.slane %v5698_v14, 2  ;;  %v1920_v54 = vrot.slane %v5710_v13, 2  ;;  %v1922_v32 = vrot.slane %v5715_v6, 2 }
 0x163   : > { %v5809_v22 = vadd.f32 %v1861_v24, %v5454_v35  ;;  %v1997_v41 = vsel %vm1996_vm2, %v5797_v56, 0.0  ;;  %v1998_v15 = vsel %vm1996_vm2, %v5800_v44, 0.0  ;;  %v1923_v2 = vrot.slane %v5719_v0, 2 }
 0x164   : > { %v2000_v21 = vsel %vm1996_vm2, %v5803_v39, 0.0  ;;  %v1925_v14 = vrot.slane %v5723_v25, 2  ;;  %v1927_v13 = vrot.slane %v5728_v8, 2  ;;  %v1999_v16 = vadd.f32 %v1998_v15, %v1997_v41 }
 0x165   : > { %v1928_v47 = vrot.slane %v5732_v52, 2  ;;  %v1930_v35 = vrot.slane %v5736_v23, 2  ;;  %v5824_v6 = vadd.f32 %v5743_v33, %v5457_v48  ;;  %v2002_v28 = vsel %vm1996_vm2, %v5809_v22, 0.0 }
 0x166   : > { %v1909_v10 = vsel %vm739_vm1, %v1907_v63, %v1908_v49  ;;  %v1911_v0 = vsel %vm739_vm1, %v1908_v49, %v1910_v1  ;;  %v1914_v25 = vsel %vm739_vm1, %v1912_v50, %v1913_v30  ;;  %v2001_v24 = vadd.f32 %v2000_v21, %v1999_v16  ;;  %v7210_v49 = vld [vmem:[#allocation35_spill] sm:$0xff]  ;;  %v7211_v50 = vld [vmem:[#allocation48_spill] sm:$0xff] }
 0x167   : > { %v1916_v8 = vsel %vm739_vm1, %v1913_v30, %v1915_v18  ;;  %v1919_v52 = vsel %vm739_vm1, %v1917_v4, %v1918_v36  ;;  %v5835_v23 = vadd.f32 %v5746_v20, %v5460_v51  ;;  %v2004_v48 = vsel %vm1996_vm2, %v5824_v6, 0.0  ;;  %v7207_v20 = vld [vmem:[#allocation8_spill] sm:$0xff] }
 0x168   : > { %v1921_v33 = vsel %vm739_vm1, %v1918_v36, %v1920_v54  ;;  %v1924_v26 = vsel %vm739_vm1, %v1922_v32, %v1923_v2  ;;  %v1926_v9 = vsel %vm739_vm1, %v1923_v2, %v1925_v14  ;;  %v2003_v43 = vadd.f32 %v2002_v28, %v2001_v24  ;;  %v7213_v18 = vld [vmem:[#allocation40_spill] sm:$0xff]  ;;  %v7219_v2 = vld [vmem:[#allocation22_spill] sm:$0xff] }
 0x169   : > { %v1929_v7 = vsel %vm739_vm1, %v1927_v13, %v1928_v47  ;;  %v1931_v12 = vsel %vm739_vm1, %v1928_v47, %v1930_v35  ;;  %v5846_v42 = vadd.f32 %v5749_v29, %v5463_v57  ;;  %v2006_v51 = vsel %vm1996_vm2, %v5835_v23, 0.0  ;;  %v7212_v29 = vld [vmem:[#allocation36_spill] sm:$0xff]  ;;  %v7222_v47 = vld [vmem:[#allocation25_spill] sm:$0xff] }
 0x16a   : > { %v5852_v61 = vadd.f32 %v5754_v58, %v7207_v20  ;;  %v5855_v59 = vadd.f32 %v1874_v19, %v7208_v46  ;;  %v5858_v38 = vadd.f32 %v1876_v40, %v7209_v31  ;;  %v2005_v63 = vadd.f32 %v2004_v48, %v2003_v43  ;;  %v7214_v19 = vld [vmem:[#allocation30_spill] sm:$0xff]  ;;  %v7215_v40 = vld [vmem:[#allocation15_spill] sm:$0xff]  ;;  %v7216_v32 = vld [vmem:[#allocation16_spill] sm:$0xff] }
 0x16b   : > { %v5861_v1 = vadd.f32 %v1879_v62, %v7210_v49  ;;  %v5864_v57 = vadd.f32 %v1881_v45, %v7211_v50  ;;  %v5867_v30 = vadd.f32 %v1884_v11, %v7212_v29  ;;  %v2008_v58 = vsel %vm1996_vm2, %v5846_v42, 0.0  ;;  %v7217_v45 = vld [vmem:[#allocation20_spill] sm:$0xff]  ;;  %v7218_v11 = vld [vmem:[#allocation21_spill] sm:$0xff]  ;;  %v7230_v50 = vld [vmem:[#allocation38_spill] sm:$0xff] }
 0x16c   : > { %v5872_v4 = vadd.f32 %v1886_v27, %v7213_v18  ;;  %v5875_v36 = vadd.f32 %v1889_v3, %v7214_v19  ;;  %v5878_v54 = vadd.f32 %v1891_v55, %v7215_v40  ;;  %v2007_v62 = vadd.f32 %v2006_v51, %v2005_v63  ;;  %v7220_v3 = vld [vmem:[#allocation23_spill] sm:$0xff]  ;;  %v7221_v55 = vld [vmem:[#allocation24_spill] sm:$0xff]  ;;  %v7227_v20 = vld [vmem:[#allocation33_spill] sm:$0xff] }
 0x16d   : > { %v5881_v41 = vadd.f32 %v1894_v17, %v7216_v32  ;;  %v5884_v15 = vadd.f32 %v1896_v34, %v7217_v45  ;;  %v5887_v21 = vadd.f32 %v1899_v37, %v7218_v11  ;;  %v2010_v27 = vsel %vm1996_vm2, %v5852_v61, 0.0  ;;  %v7223_v34 = vld [vmem:[#allocation26_spill] sm:$0xff]  ;;  %v7224_v37 = vld [vmem:[#allocation28_spill] sm:$0xff]  ;;  %v7228_v31 = vld [vmem:[#allocation37_spill] sm:$0xff] }
 0x16e   : > { %v5892_v14 = vadd.f32 %v1901_v53, %v7219_v2  ;;  %v5895_v13 = vadd.f32 %v1904_v5, %v7220_v3  ;;  %v5898_v16 = vadd.f32 %v1906_v60, %v7221_v55  ;;  %v2009_v17 = vadd.f32 %v2008_v58, %v2007_v62  ;;  %v7225_v48 = vld [vmem:[#allocation32_spill] sm:$0xff]  ;;  %v7226_v5 = vld [vmem:[#allocation29_spill] sm:$0xff]  ;;  %v7231_v58 = vld [vmem:[#allocation46_spill] sm:$0xff] }
 0x16f   : > { %v5901_v35 = vadd.f32 %v1909_v10, %v7222_v47  ;;  %v5904_v28 = vadd.f32 %v1911_v0, %v7223_v34  ;;  %v5907_v24 = vadd.f32 %v1914_v25, %v7224_v37  ;;  %v2012_v53 = vsel %vm1996_vm2, %v5855_v59, 0.0 }
 0x170   : > { %v5912_v43 = vadd.f32 %v1916_v8, %v7225_v48  ;;  %v5915_v51 = vadd.f32 %v1919_v52, %v7226_v5  ;;  %v2011_v60 = vadd.f32 %v2010_v27, %v2009_v17  ;;  %v2068_v10 = vmul.f32 %v5797_v56, %v5797_v56  ;;  %v7229_v52 = vld [vmem:[#allocation34_spill] sm:$0xff] }
 0x171   : > { %v5920_v46 = vadd.f32 %v1921_v33, %v7227_v20  ;;  %v2014_v0 = vsel %vm1996_vm2, %v5858_v38, 0.0  ;;  %v2069_v25 = vmul.f32 %v5800_v44, %v5800_v44  ;;  %v2070_v8 = vmul.f32 %v5803_v39, %v5803_v39 }
 0x172   : > { %v5929_v63 = vadd.f32 %v1924_v26, %v7228_v31  ;;  %v5932_v49 = vadd.f32 %v1926_v9, %v7229_v52  ;;  %v5935_v29 = vadd.f32 %v1929_v7, %v7230_v50  ;;  %v2013_v33 = vadd.f32 %v2012_v53, %v2011_v60 }
 0x173   : > { %v5938_v18 = vadd.f32 %v1931_v12, %v7231_v58  ;;  %v2016_v19 = vsel %vm1996_vm2, %v5861_v1, 0.0  ;;  %v2018_v40 = vsel %vm1996_vm2, %v5864_v57, 0.0  ;;  %v2071_v26 = vmul.f32 %v5809_v22, %v5809_v22 }
 0x174   : > { %v2015_v62 = vadd.f32 %v2014_v0, %v2013_v33  ;;  %v2020_v9 = vsel %vm1996_vm2, %v5867_v30, 0.0  ;;  %v2022_v7 = vsel %vm1996_vm2, %v5872_v4, 0.0  ;;  %v2100_v32 = vsel %vm1996_vm2, %v2068_v10, 0.0 }
 0x175   : > { %v2024_v12 = vsel %vm1996_vm2, %v5875_v36, 0.0  ;;  %v2072_v45 = vmul.f32 %v5824_v6, %v5824_v6  ;;  %v2101_v11 = vsel %vm1996_vm2, %v2069_v25, 0.0  ;;  %v2103_v27 = vsel %vm1996_vm2, %v2070_v8, 0.0 }
 0x176   : > { %v2017_v2 = vadd.f32 %v2016_v19, %v2015_v62  ;;  %v2026_v3 = vsel %vm1996_vm2, %v5878_v54, 0.0  ;;  %v2028_v55 = vsel %vm1996_vm2, %v5881_v41, 0.0  ;;  %v2102_v17 = vadd.f32 %v2101_v11, %v2100_v32 }
 0x177   : > { %v2030_v47 = vsel %vm1996_vm2, %v5884_v15, 0.0  ;;  %v5965_v34 = vsel %vm1996_vm2, %v5887_v21, 0.0  ;;  %v2073_v37 = vmul.f32 %v5835_v23, %v5835_v23  ;;  %v2105_v53 = vsel %vm1996_vm2, %v2071_v26, 0.0 }
 0x178   : > { %v2019_v48 = vadd.f32 %v2018_v40, %v2017_v2  ;;  %v5972_v5 = vsel %vm1996_vm2, %v5892_v14, 0.0  ;;  %v2074_v60 = vmul.f32 %v5846_v42, %v5846_v42  ;;  %v2104_v10 = vadd.f32 %v2103_v27, %v2102_v17 }
 0x179   : > { %v2075_v20 = vmul.f32 %v5852_v61, %v5852_v61  ;;  %v2076_v0 = vmul.f32 %v5855_v59, %v5855_v59  ;;  %v2077_v25 = vmul.f32 %v5858_v38, %v5858_v38  ;;  %v2107_v8 = vsel %vm1996_vm2, %v2072_v45, 0.0 }
 0x17a   : > { %v2021_v31 = vadd.f32 %v2020_v9, %v2019_v48  ;;  %v2078_v52 = vmul.f32 %v5861_v1, %v5861_v1  ;;  %v2079_v50 = vmul.f32 %v5864_v57, %v5864_v57  ;;  %v2106_v33 = vadd.f32 %v2105_v53, %v2104_v10 }
 0x17b   : > { %v5989_v58 = vsel %vm1996_vm2, %v5895_v13, 0.0  ;;  %v5993_v19 = vsel %vm1996_vm2, %v5898_v16, 0.0  ;;  %v2080_v40 = vmul.f32 %v5867_v30, %v5867_v30  ;;  %v2109_v26 = vsel %vm1996_vm2, %v2073_v37, 0.0 }
 0x17c   : > { %v2023_v62 = vadd.f32 %v2022_v7, %v2021_v31  ;;  %v6001_v9 = vmul.f32 %v5872_v4, %v5872_v4  ;;  %v6005_v32 = vmul.f32 %v5875_v36, %v5875_v36  ;;  %v2108_v45 = vadd.f32 %v2107_v8, %v2106_v33 }
 0x17d   : > { %v2111_v11 = vsel %vm1996_vm2, %v2074_v60, 0.0  ;;  %v2113_v27 = vsel %vm1996_vm2, %v2075_v20, 0.0  ;;  %v2115_v2 = vsel %vm1996_vm2, %v2076_v0, 0.0  ;;  %v2117_v17 = vsel %vm1996_vm2, %v2077_v25, 0.0 }
 0x17e   : > { %v2025_v37 = vadd.f32 %v2024_v12, %v2023_v62  ;;  %v2110_v53 = vadd.f32 %v2109_v26, %v2108_v45  ;;  %v2119_v7 = vsel %vm1996_vm2, %v2078_v52, 0.0  ;;  %v6013_v48 = vsel %vm1996_vm2, %v2079_v50, 0.0 }
 0x17f   : > { %v6021_v60 = vsel %vm1996_vm2, %v2080_v40, 0.0  ;;  %v2570_v12 = vpack.c.bf16 %v5797_v56, %v5797_v56  ;;  %v2571_v10 = vpack.c.bf16 %v5800_v44, %v5800_v44  ;;  %v2572_v25 = vpack.c.bf16 %v5803_v39, %v5803_v39 }
 0x180   : > { %v2027_v20 = vadd.f32 %v2026_v3, %v2025_v37  ;;  %v2112_v0 = vadd.f32 %v2111_v11, %v2110_v53  ;;  %v2573_v8 = vpack.c.bf16 %v5809_v22, %v5809_v22  ;;  %v2574_v56 = vpack.c.bf16 %v5824_v6, %v5824_v6 }
 0x181   : > { %2299 = vst.msk [vmem:[%s6018_s29] sm:$0xf] %vm2298_vm3, %v2570_v12  ;;  %2300 = vst.msk [vmem:[%s6018_s29 + $0x4] sm:$0xf] %vm2298_vm3, %v2571_v10  ;;  %v2575_v44 = vpack.c.bf16 %v5835_v23, %v5835_v23  ;;  %v2576_v3 = vpack.c.bf16 %v5846_v42, %v5846_v42  ;;  %v2577_v39 = vpack.c.bf16 %v5852_v61, %v5852_v61 }
 0x182   : > { %v2029_v31 = vadd.f32 %v2028_v55, %v2027_v20  ;;  %v2114_v22 = vadd.f32 %v2113_v27, %v2112_v0  ;;  %2301 = vst.msk [vmem:[%s6018_s29 + $0x8] sm:$0xf] %vm2298_vm3, %v2572_v25  ;;  %2302 = vst.msk [vmem:[%s6018_s29 + $0xc] sm:$0xf] %vm2298_vm3, %v2573_v8  ;;  %v2578_v6 = vpack.c.bf16 %v5855_v59, %v5855_v59  ;;  %v2040_v0 = vsel %vm1996_vm2, %v5901_v35, 0.0 }
 0x183   : > { %v2579_v23 = vpack.c.bf16 %v5858_v38, %v5858_v38  ;;  %2303 = vst.msk [vmem:[%s6018_s29 + $0x10] sm:$0xf] %vm2298_vm3, %v2574_v56  ;;  %2304 = vst.msk [vmem:[%s6018_s29 + $0x14] sm:$0xf] %vm2298_vm3, %v2575_v44  ;;  %v2580_v42 = vpack.c.bf16 %v5861_v1, %v5861_v1  ;;  %v2581_v61 = vpack.c.bf16 %v5864_v57, %v5864_v57  ;;  %v2125_v8 = vsel %vm1996_vm2, %v6001_v9, 0.0 }
 0x184   : > { %2305 = vst.msk [vmem:[%s6018_s29 + $0x18] sm:$0xf] %vm2298_vm3, %v2576_v3  ;;  %2306 = vst.msk [vmem:[%s6018_s29 + $0x1c] sm:$0xf] %vm2298_vm3, %v2577_v39  ;;  %v2582_v59 = vpack.c.bf16 %v5867_v30, %v5867_v30  ;;  %v2583_v38 = vpack.c.bf16 %v5872_v4, %v5872_v4  ;;  %v2031_v55 = vadd.f32 %v2030_v47, %v2029_v31  ;;  %v2042_v56 = vsel %vm1996_vm2, %v5904_v28, 0.0 }
 0x185   : > { %v2116_v52 = vadd.f32 %v2115_v2, %v2114_v22  ;;  %2307 = vst.msk [vmem:[%s6018_s29 + $0x20] sm:$0xf] %vm2298_vm3, %v2578_v6  ;;  %2308 = vst.msk [vmem:[%s6018_s29 + $0x24] sm:$0xf] %vm2298_vm3, %v2579_v23  ;;  %v2584_v1 = vpack.c.bf16 %v5875_v36, %v5875_v36  ;;  %v2585_v57 = vpack.c.bf16 %v5878_v54, %v5878_v54  ;;  %v2127_v9 = vsel %vm1996_vm2, %v6005_v32, 0.0 }
 0x186   : > { %2309 = vst.msk [vmem:[%s6018_s29 + $0x28] sm:$0xf] %vm2298_vm3, %v2580_v42  ;;  %2310 = vst.msk [vmem:[%s6018_s29 + $0x2c] sm:$0xf] %vm2298_vm3, %v2581_v61  ;;  %v2586_v30 = vpack.c.bf16 %v5881_v41, %v5881_v41  ;;  %v2587_v4 = vpack.c.bf16 %v5884_v15, %v5884_v15  ;;  %v2588_v36 = vpack.c.bf16 %v5887_v21, %v5887_v21  ;;  %v2044_v39 = vsel %vm1996_vm2, %v5907_v24, 0.0 }
 0x187   : > { %2311 = vst.msk [vmem:[%s6018_s29 + $0x30] sm:$0xf] %vm2298_vm3, %v2582_v59  ;;  %2312 = vst.msk [vmem:[%s6018_s29 + $0x34] sm:$0xf] %vm2298_vm3, %v2583_v38  ;;  %v2589_v47 = vpack.c.bf16 %v5892_v14, %v5892_v14  ;;  %v2033_v50 = vadd.f32 %v5965_v34, %v2031_v55  ;;  %v2118_v33 = vadd.f32 %v2117_v17, %v2116_v52  ;;  %v2046_v6 = vsel %vm1996_vm2, %v5912_v43, 0.0 }
 0x188   : > { %2313 = vst.msk [vmem:[%s6018_s29 + $0x38] sm:$0xf] %vm2298_vm3, %v2584_v1  ;;  %2314 = vst.msk [vmem:[%s6018_s29 + $0x3c] sm:$0xf] %vm2298_vm3, %v2585_v57  ;;  %v2590_v40 = vpack.c.bf16 %v5895_v13, %v5895_v13  ;;  %v2591_v26 = vpack.c.bf16 %v5898_v16, %v5898_v16  ;;  %v2592_v34 = vpack.c.bf16 %v5901_v35, %v5901_v35  ;;  %v2048_v61 = vsel %vm1996_vm2, %v5915_v51, 0.0 }
 0x189   : > { %2315 = vst.msk [vmem:[%s6018_s29 + $0x40] sm:$0xf] %vm2298_vm3, %v2586_v30  ;;  %2316 = vst.msk [vmem:[%s6018_s29 + $0x44] sm:$0xf] %vm2298_vm3, %v2587_v4  ;;  %v2593_v62 = vpack.c.bf16 %v5904_v28, %v5904_v28  ;;  %v2594_v45 = vpack.c.bf16 %v5907_v24, %v5907_v24  ;;  %v2595_v11 = vpack.c.bf16 %v5912_v43, %v5912_v43  ;;  %v2050_v52 = vsel %vm1996_vm2, %v5920_v46, 0.0 }
 0x18a   : > { %2317 = vst.msk [vmem:[%s6018_s29 + $0x48] sm:$0xf] %vm2298_vm3, %v2588_v36  ;;  %2318 = vst.msk [vmem:[%s6018_s29 + $0x4c] sm:$0xf] %vm2298_vm3, %v2589_v47  ;;  %v2035_v27 = vadd.f32 %v5972_v5, %v2033_v50  ;;  %v2120_v2 = vadd.f32 %v2119_v7, %v2118_v33  ;;  %v2596_v17 = vpack.c.bf16 %v5915_v51, %v5915_v51  ;;  %v2052_v4 = vsel %vm1996_vm2, %v5929_v63, 0.0 }
 0x18b   : > { %2319 = vst.msk [vmem:[%s6018_s29 + $0x50] sm:$0xf] %vm2298_vm3, %v2590_v40  ;;  %2320 = vst.msk [vmem:[%s6018_s29 + $0x54] sm:$0xf] %vm2298_vm3, %v2591_v26  ;;  %v2597_v37 = vpack.c.bf16 %v5920_v46, %v5920_v46  ;;  %v2598_v5 = vpack.c.bf16 %v5929_v63, %v5929_v63  ;;  %v2599_v53 = vpack.c.bf16 %v5932_v49, %v5932_v49  ;;  %v2054_v33 = vsel %vm1996_vm2, %v5932_v49, 0.0 }
 0x18c   : > { %2321 = vst.msk [vmem:[%s6018_s29 + $0x58] sm:$0xf] %vm2298_vm3, %v2592_v34  ;;  %2322 = vst.msk [vmem:[%s6018_s29 + $0x5c] sm:$0xf] %vm2298_vm3, %v2593_v62  ;;  %v2600_v7 = vpack.c.bf16 %v5935_v29, %v5935_v29  ;;  %v2601_v12 = vpack.c.bf16 %v5938_v18, %v5938_v18  ;;  %v2037_v10 = vadd.f32 %v5989_v58, %v2035_v27  ;;  %v2056_v62 = vsel %vm1996_vm2, %v5935_v29, 0.0 }
 0x18d   : > { %2323 = vst.msk [vmem:[%s6018_s29 + $0x60] sm:$0xf] %vm2298_vm3, %v2594_v45  ;;  %2324 = vst.msk [vmem:[%s6018_s29 + $0x64] sm:$0xf] %vm2298_vm3, %v2595_v11  ;;  %v2122_v20 = vadd.f32 %v6013_v48, %v2120_v2  ;;  %v2083_v25 = vmul.f32 %v5878_v54, %v5878_v54  ;;  %v2084_v54 = vmul.f32 %v5881_v41, %v5881_v41  ;;  %v2058_v2 = vsel %vm1996_vm2, %v5938_v18, 0.0 }
 0x18e   : > { %2325 = vst.msk [vmem:[%s6018_s29 + $0x68] sm:$0xf] %vm2298_vm3, %v2596_v17  ;;  %2326 = vst.msk [vmem:[%s6018_s29 + $0x6c] sm:$0xf] %vm2298_vm3, %v2597_v37  ;;  %v2039_v58 = vadd.f32 %v5993_v19, %v2037_v10  ;;  %v2085_v31 = vmul.f32 %v5884_v15, %v5884_v15  ;;  %v2086_v41 = vmul.f32 %v5887_v21, %v5887_v21 }
 0x18f   : > { %2327 = vst.msk [vmem:[%s6018_s29 + $0x70] sm:$0xf] %vm2298_vm3, %v2598_v5  ;;  %2328 = vst.msk [vmem:[%s6018_s29 + $0x74] sm:$0xf] %vm2298_vm3, %v2599_v53  ;;  %v2124_v48 = vadd.f32 %v6021_v60, %v2122_v20  ;;  %v2129_v19 = vsel %vm1996_vm2, %v2083_v25, 0.0  ;;  %v2131_v32 = vsel %vm1996_vm2, %v2084_v54, 0.0  ;;  %v2087_v15 = vmul.f32 %v5892_v14, %v5892_v14 }
 0x190   : > { %2329 = vst.msk [vmem:[%s6018_s29 + $0x78] sm:$0xf] %vm2298_vm3, %v2600_v7  ;;  %2330 = vst.msk [vmem:[%s6018_s29 + $0x7c] sm:$0xf] %vm2298_vm3, %v2601_v12  ;;  %v2041_v44 = vadd.f32 %v2040_v0, %v2039_v58  ;;  %v2133_v59 = vsel %vm1996_vm2, %v2085_v31, 0.0  ;;  %v2088_v21 = vmul.f32 %v5895_v13, %v5895_v13  ;;  %v2135_v1 = vsel %vm1996_vm2, %v2086_v41, 0.0 }
 0x191   : > { %v2126_v3 = vadd.f32 %v2125_v8, %v2124_v48  ;;  %v2089_v14 = vmul.f32 %v5898_v16, %v5898_v16  ;;  %v2137_v36 = vsel %vm1996_vm2, %v2087_v15, 0.0  ;;  %v2090_v13 = vmul.f32 %v5901_v35, %v5901_v35 }
 0x192   : > { %v2043_v60 = vadd.f32 %v2042_v56, %v2041_v44  ;;  %v2139_v40 = vsel %vm1996_vm2, %v2088_v21, 0.0  ;;  %v2091_v16 = vmul.f32 %v5904_v28, %v5904_v28  ;;  %v2092_v35 = vmul.f32 %v5907_v24, %v5907_v24 }
 0x193   : > { %v2128_v22 = vadd.f32 %v2127_v9, %v2126_v3  ;;  %v2141_v45 = vsel %vm1996_vm2, %v2089_v14, 0.0  ;;  %v2143_v17 = vsel %vm1996_vm2, %v2090_v13, 0.0  ;;  %v2093_v53 = vmul.f32 %v5912_v43, %v5912_v43 }
 0x194   : > { %v2045_v23 = vadd.f32 %v2044_v39, %v2043_v60  ;;  %v2145_v7 = vsel %vm1996_vm2, %v2091_v16, 0.0  ;;  %v2094_v10 = vmul.f32 %v5915_v51, %v5915_v51  ;;  %v2147_v20 = vsel %vm1996_vm2, %v2092_v35, 0.0 }
 0x195   : > { %v2130_v42 = vadd.f32 %v2129_v19, %v2128_v22  ;;  %v2095_v25 = vmul.f32 %v5920_v46, %v5920_v46  ;;  %v2149_v43 = vsel %vm1996_vm2, %v2093_v53, 0.0  ;;  %v2096_v48 = vmul.f32 %v5929_v63, %v5929_v63 }
 0x196   : > { %v2047_v38 = vadd.f32 %v2046_v6, %v2045_v23  ;;  %v2151_v51 = vsel %vm1996_vm2, %v2094_v10, 0.0  ;;  %v2097_v9 = vmul.f32 %v5932_v49, %v5932_v49  ;;  %v2098_v39 = vmul.f32 %v5935_v29, %v5935_v29 }
 0x197   : > { %v2132_v55 = vadd.f32 %v2131_v32, %v2130_v42  ;;  %v2153_v44 = vsel %vm1996_vm2, %v2095_v25, 0.0  ;;  %v2155_v63 = vsel %vm1996_vm2, %v2096_v48, 0.0  ;;  %v2099_v49 = vmul.f32 %v5938_v18, %v5938_v18 }
 0x198   : > { %v2049_v57 = vadd.f32 %v2048_v61, %v2047_v38  ;;  %v2157_v60 = vsel %vm1996_vm2, %v2097_v9, 0.0  ;;  %v2159_v6 = vsel %vm1996_vm2, %v2098_v39, 0.0 }
 0x199   : > { %v2134_v30 = vadd.f32 %v2133_v59, %v2132_v55  ;;  %v2161_v32 = vsel %vm1996_vm2, %v2099_v49, 0.0 }
 0x19a   : > { %v2051_v47 = vadd.f32 %v2050_v52, %v2049_v57 }
 0x19b   : > { %v2136_v50 = vadd.f32 %v2135_v1, %v2134_v30 }
 0x19c   : > { %v2053_v26 = vadd.f32 %v2052_v4, %v2051_v47 }
 0x19d   : > { %v2138_v34 = vadd.f32 %v2137_v36, %v2136_v50 }
 0x19e   : > { %v2055_v11 = vadd.f32 %v2054_v33, %v2053_v26 }
 0x19f   : > { %v2140_v27 = vadd.f32 %v2139_v40, %v2138_v34 }
 0x1a0   : > { %v2057_v37 = vadd.f32 %v2056_v62, %v2055_v11 }
 0x1a1   : > { %v2142_v5 = vadd.f32 %v2141_v45, %v2140_v27 }
 0x1a2   : > { %v2059_v28 = vadd.f32 %v2058_v2, %v2057_v37 }
 0x1a3   : > { %v2144_v12 = vadd.f32 %v2143_v17, %v2142_v5 }
 0x1a4   : > { %v2060_v24 = vrot.slane %v2059_v28, 4 }
 0x1a5   : > { %v2146_v0 = vadd.f32 %v2145_v7, %v2144_v12 }
 0x1a6   : > { %v2061_v8 = vadd.f32 %v2060_v24, %v2059_v28 }
 0x1a7   : > { %v2148_v58 = vadd.f32 %v2147_v20, %v2146_v0 }
 0x1a8   : > { %v2062_v56 = vrot.slane %v2061_v8, 2 }
 0x1a9   : > { %v2150_v54 = vadd.f32 %v2149_v43, %v2148_v58 }
 0x1aa   : > { %v2063_v3 = vadd.f32 %v2062_v56, %v2061_v8 }
 0x1ab   : > { %v2152_v46 = vadd.f32 %v2151_v51, %v2150_v54 }
 0x1ac   : > { %v2064_v31 = vrot.slane %v2063_v3, 1 }
 0x1ad   : > { %v2154_v19 = vadd.f32 %v2153_v44, %v2152_v46 }
 0x1ae   : > { %v2065_v22 = vadd.f32 %v2064_v31, %v2063_v3 }
 0x1af   : > { %v2156_v29 = vadd.f32 %v2155_v63, %v2154_v19 }
 0x1b0   : > { %2067 = vst.msk [vmem:[%s242_s5] sm:$0x1] %vm2066_vm4, %v2065_v22 }
 0x1b1   : > { %v2158_v41 = vadd.f32 %v2157_v60, %v2156_v29 }
 0x1b2   : > { %2725 = shalt.err (!%p2722_p5)
}
 0x1b3   : > { %s2726_s22 = scalar_lea.hbm %s6242_s10, 16  ;;  %s2730_s29 = scalar_lea.hbm %s6327_s3, 32 }
 0x1b4   : > { %p2727_p6 = scmp.ne.s32.totalorder %s6242_s10, %s2726_s22  ;;  %p2731_p10 = scmp.lt.u32.totalorder %s6242_s10, %s6327_s3 }
 0x1b5   : > { %p2732_p11 = scmp.lt.u32.totalorder %s2730_s29, %s2726_s22  ;;  %p2734_p13 = scmp.lt.u32.totalorder %s2726_s22, %s6242_s10 }
 0x1b6   : > { %p2728_p7 = pnand %p2727_p6, %p2891_p4 }
 0x1b7   : > { %p2733_p12 = por %p2732_p11, %p2731_p10 }
 0x1b8   : > { %p2729_p9 = pneg %p2728_p7 }
 0x1b9   : > { %p2735_p0 = por %p2734_p13, %p2733_p12 }
 0x1bb   : > { %p2736_p1 = pnand %p2735_p0, %p2729_p9 }
 0x1bd   : > { %2739 = shalt.err (!%p2736_p1)
}
 0x1be   : > { %2603 = dma.vmem_to_hbm [thread:$0]  (%p2891_p4), %s6232_s6, 16, %s6242_s10, %s2340_s11   ;;  %v2160_v18 = vadd.f32 %v2159_v6, %v2158_v41 }
 0x1bf   : > { %s248_s9 = scalar_lea.vmem [#allocation4], %s6216_s30  ;;  %s6277_s6 = scalar_lea.hbm %s6328_s4, %s2565_s7 }
 0x1c0   : > { %v2162_v23 = vadd.f32 %v2161_v32, %v2160_v18  ;;  %s2374_s12 = sshll.u32 %s248_s9, 4  ;;  %s2344_s10 = scalar_lea.sflag [#allocation5], %s6216_s30  ;;  %s6270_s12 = int_to_ptr.vmem [resolvable:$true] %s2374_s12 }
 0x1c1   : > { %s2740_s11 = scalar_lea.vmem %s6270_s12, 16  ;;  %s2825_s21 = smov [#allocation4]  }
 0x1c2   : > { %v2163_v42 = vrot.slane %v2162_v23, 4  ;;  %p2741_p2 = scmp.ne.s32.totalorder %s6270_s12, %s2740_s11  ;;  %s2744_s22 = sshll.u32 %s2825_s21, 4  ;;  %s2745_s22 = int_to_ptr.vmem [resolvable:$false] %s2744_s22 }
 0x1c3   : > { %s2746_s24 = scalar_lea.vmem %s2745_s22, 32  ;;  %p2747_p6 = scmp.lt.s32.totalorder %s6270_s12, %s2745_s22 }
 0x1c4   : > { %v2164_v61 = vadd.f32 %v2163_v42, %v2162_v23  ;;  %p2742_p3 = pnand %p2741_p2, %p2891_p4  ;;  %p2748_p7 = scmp.lt.s32.totalorder %s2746_s24, %s2740_s11 }
 0x1c6   : > { %v2165_v15 = vrot.slane %v2164_v61, 2  ;;  %p2743_p5 = pneg %p2742_p3  ;;  %p2749_p9 = por %p2748_p7, %p2747_p6 }
 0x1c8   : > { %v2166_v59 = vadd.f32 %v2165_v15, %v2164_v61  ;;  %p2750_p10 = pnand %p2749_p9, %p2743_p5 }
 0x1ca   : > { %v2167_v38 = vrot.slane %v2166_v59, 1 }
 0x1cc   : > { %v2168_v55 = vadd.f32 %v2167_v38, %v2166_v59 }
 0x1ce   : > { %2169 = vst.msk [vmem:[%s248_s9] sm:$0x1] %vm2066_vm4, %v2168_v55 }
 0x1cf   : > { %2753 = shalt.err (!%p2750_p10)
}
 0x1d0   : > { %s2754_s18 = scalar_lea.hbm %s6277_s6, 16  ;;  %s2758_s26 = scalar_lea.hbm %s6328_s4, 32 }
 0x1d1   : > { %p2755_p11 = scmp.ne.s32.totalorder %s6277_s6, %s2754_s18  ;;  %p2759_p0 = scmp.lt.u32.totalorder %s6277_s6, %s6328_s4 }
 0x1d2   : > { %p2760_p1 = scmp.lt.u32.totalorder %s2758_s26, %s2754_s18  ;;  %p2762_p3 = scmp.lt.u32.totalorder %s2754_s18, %s6277_s6 }
 0x1d3   : > { %p2756_p12 = pnand %p2755_p11, %p2891_p4 }
 0x1d4   : > { %p2761_p2 = por %p2760_p1, %p2759_p0 }
 0x1d5   : > { %p2757_p13 = pneg %p2756_p12 }
 0x1d6   : > { %p2763_p5 = por %p2762_p3, %p2761_p2 }
 0x1d8   : > { %p2764_p6 = pnand %p2763_p5, %p2757_p13 }
 0x1da   : > { %2767 = shalt.err (!%p2764_p6)
}
 0x1db   : > { %2604 = dma.vmem_to_hbm [thread:$0]  (%p2891_p4), %s6270_s12, 16, %s6277_s6, %s2344_s10  }
 0x1dc PF: > { %p2614_p7 = scmp.ge.s32.totalorder %s2822_s20, 2  ;;  %s2397_s8 = sand.u32 1, %s2802_s15  }
 0x1dd   : > { %s2398_s9 = scalar_lea.sflag [#allocation3], %s2397_s8 }
 0x1de   : > { %p2608_p9 = pnand %p2614_p7, %p2898_p8 }
 0x1e0   : > { %2793 = dma.done.wait (!%p2608_p9), %s2398_s9, 16  }
 0x1e1   : > { %2795 = vsyncadd (!%p2608_p9), %s2398_s9, 4294967280  ;;  %s2406_s13 = scalar_lea.sflag [#allocation5], %s2397_s8 }
 0x1e2   : > { %2797 = dma.done.wait (!%p2608_p9), %s2406_s13, 16  }
 0x1e3   : > { %2799 = vsyncadd (!%p2608_p9), %s2406_s13, 4294967280  ;;  %s21_s20 = sadd.s32 1, %s2822_s20   ;;  %s7232_s15 = smov %s2806_s16 }
 0x1e4   : > { %p18_p10 = scmp.ge.s32.totalorder %s21_s20, 4   ;;  %s7233_s16 = smov %s2810_s17 }
 0x1e5   : > { %s7234_s17 = smov %s2904_s28  ;;  %s7235_s18 = smov %s2818_s19 }
 0x1e6   : > { %s7236_s19 = smov %s7238_s23  ;;  %20 = sbr.rel (!%p18_p10) target bundleno = 6 (0x6), region = 95 }
 0x1ed   :  { %2410 = vsyncpa [#allocation3], 1 }
 0x1ee   :  { %2412 = vsyncpa [#allocation3 + $0x1], 1 }
 0x1ef   :  { %2413 = vsyncpa [#allocation5], 1 }
 0x1f0   :  { %2415 = vsyncpa [#allocation5 + $0x1], 1 }

</bundles_post_ra>
